<compile_context>
chip_gen: v6e
topology: v6e:2x2x1
jax: 0.10.0
libtpu: 0.0.40
codegen_flags: <defaults>
</compile_context>

<pallas_src>
import jax
import jax.numpy as jnp
from jax.experimental import pallas as pl
from jax.experimental.pallas import tpu as pltpu  # noqa: F401  (TPU backend)

# ---- static problem sizes implied by the module (40 * L == 9*2*40 -> L = 18) ----
B = 2            # batch
L = 18           # sequence length
CIN = 1          # input channels
C1, K1 = 8, 5    # conv1
C2, K2 = 30, 3   # conv2
C3, K3 = 40, 3   # conv3
F1, F2, F3 = 500, 200, 18
F1P, F2P = 512, 256          # lane-dense padded FC widths
EPS = 1e-5


def cnn1d_kernel(x_ref, w1_ref, b1_ref, w2_ref, b2_ref, w3_ref, b3_ref,
                 sel_ref, selt_ref, gamma_ref, beta_ref,
                 fc1w_ref, fc1b_ref, fc2w_ref, fc2b_ref, fc3w_ref, fc3b_ref,
                 out_ref):
    f32 = jnp.float32

    def dot(a, b):
        return jnp.dot(a, b, preferred_element_type=f32)

    # conv1 + ReLU: padding and taps folded into banded weight (B,22)@(22,144)
    h1 = jnp.maximum(dot(x_ref[...], w1_ref[...]) + b1_ref[...], 0.0)      # (B, L*C1)
    # conv2 + ReLU: block-tridiagonal weight, single contraction (B,144)@(144,540)
    h2 = jnp.maximum(dot(h1, w2_ref[...]) + b2_ref[...], 0.0)              # (B, L*C2)
    # conv3 (pre-BN): block-tridiagonal weight (B,540)@(540,720)
    h3 = dot(h2, w3_ref[...]) + b3_ref[...]                                # (B, L*C3)

    # ---- BatchNorm1d, training mode: biased batch stats over (B, L) per channel ----
    n = float(B * L)
    ssum = dot(h3, sel_ref[...])                     # (B, C3) per-sample channel sums over L
    sqsum = dot(h3 * h3, sel_ref[...])               # (B, C3)
    mu = jnp.sum(ssum, axis=0, keepdims=True) / n    # (1, C3)
    var = jnp.sum(sqsum, axis=0, keepdims=True) / n - mu * mu
    inv = jax.lax.rsqrt(var + EPS)
    scale = gamma_ref[...] * inv                     # (1, C3)
    shift = beta_ref[...] - mu * scale               # (1, C3)
    scale_f = dot(scale, selt_ref[...])              # (1, L*C3) broadcast to flat layout
    shift_f = dot(shift, selt_ref[...])              # (1, L*C3)
    a = jnp.maximum(h3 * scale_f + shift_f, 0.0)     # (B, 720) == flattened activation

    # ---- FC head, batched over B, lane-dense padded widths ----
    y1 = jnp.maximum(dot(a, fc1w_ref[...]) + fc1b_ref[...], 0.0)    # (B, 512)
    y2 = jnp.maximum(dot(y1, fc2w_ref[...]) + fc2b_ref[...], 0.0)   # (B, 256)
    out_ref[...] = dot(y2, fc3w_ref[...]) + fc3b_ref[...]           # (B, 18)


def cnn1d_forward(x, p):
    """x: (B, 1, L) float32 (PyTorch NCL). Returns (B, 18)."""
    f32 = jnp.float32

    # ---------------- wrapper-side layout plumbing (weight banding etc.) ----------------
    x2d = x[:, 0, :]                                        # (B, L)
    xpad = jnp.pad(x2d, ((0, 0), (K1 // 2, K1 // 2)))       # (B, L+4) conv1 'same' padding

    # conv1 banded weight: W[j, l*C1+c] = conv1_w[c,0,j-l] when 0 <= j-l < K1
    j = jnp.arange(L + K1 - 1)[:, None]                     # padded-input position
    lc = jnp.arange(L * C1)[None, :]
    l_out, c_out = lc // C1, lc % C1
    k1 = j - l_out
    w1_kc = jnp.transpose(p['conv1_w'][:, 0, :], (1, 0))    # (K1, C1)
    w1b = jnp.where((k1 >= 0) & (k1 < K1),
                    w1_kc[jnp.clip(k1, 0, K1 - 1), c_out], 0.0).astype(f32)
    b1t = jnp.tile(p['conv1_b'], L)[None, :]                # (1, L*C1)

    def banded(w, cin, cout, ksz):
        # w: (cout, cin, ksz), 'same' padding ksz//2.
        # Band[l_in*cin + ci, l_out*cout + co] = w[co, ci, l_in - l_out + ksz//2]
        r = jnp.arange(L * cin)[:, None]
        s = jnp.arange(L * cout)[None, :]
        l_in, ci = r // cin, r % cin
        l_o, co = s // cout, s % cout
        kk = l_in - l_o + ksz // 2
        valid = (kk >= 0) & (kk < ksz)
        return jnp.where(valid, w[co, ci, jnp.clip(kk, 0, ksz - 1)], 0.0).astype(f32)

    w2b = banded(p['conv2_w'], C1, C2, K2)                  # (L*C1, L*C2) = (144, 540)
    b2t = jnp.tile(p['conv2_b'], L)[None, :]
    w3b = banded(p['conv3_w'], C2, C3, K3)                  # (L*C2, L*C3) = (540, 720)
    b3t = jnp.tile(p['conv3_b'], L)[None, :]

    # BN channel selector (L*C3, C3): sel[l*C3+c, c] = 1  (stats + broadcast via matmul)
    sel = (jnp.arange(L * C3)[:, None] % C3 == jnp.arange(C3)[None, :]).astype(f32)
    selt = sel.T
    gamma = p['gamma'][None, :]
    beta = p['beta'][None, :]

    # fc1: fold PyTorch's channel-major view(-1, 720) into the weight permutation:
    # kernel flat order is l*C3 + c, PyTorch is c*L + l.
    fc1w = jnp.transpose(p['fc1_w'].reshape(F1, C3, L), (2, 1, 0)).reshape(L * C3, F1)
    fc1w = jnp.pad(fc1w, ((0, 0), (0, F1P - F1)))           # (720, 512)
    fc1b = jnp.pad(p['fc1_b'], (0, F1P - F1))[None, :]
    fc2w = jnp.pad(p['fc2_w'].T, ((0, F1P - F1), (0, F2P - F2)))   # (512, 256)
    fc2b = jnp.pad(p['fc2_b'], (0, F2P - F2))[None, :]
    fc3w = jnp.pad(p['fc3_w'].T, ((0, F2P - F2), (0, 0)))          # (256, 18)
    fc3b = p['fc3_b'][None, :]

    inputs = (xpad, w1b, b1t, w2b, b2t, w3b, b3t, sel, selt, gamma, beta,
              fc1w, fc1b, fc2w, fc2b, fc3w, fc3b)

    # No grid, no BlockSpecs: single invocation, whole arrays resident in VMEM (~4 MB).
    return pl.pallas_call(
        cnn1d_kernel,
        out_shape=jax.ShapeDtypeStruct((B, F3), jnp.float32),
    )(*inputs)


# ---------------------------- pure-JAX reference (for validation) -----------------------
def reference_forward(x, p):
    def conv1d(h, w, b, pad):
        out = jax.lax.conv_general_dilated(
            h, w, window_strides=(1,), padding=[(pad, pad)],
            dimension_numbers=('NCH', 'OIH', 'NCH'))
        return out + b[None, :, None]

    h = jax.nn.relu(conv1d(x, p['conv1_w'], p['conv1_b'], 2))
    h = jax.nn.relu(conv1d(h, p['conv2_w'], p['conv2_b'], 1))
    h = conv1d(h, p['conv3_w'], p['conv3_b'], 1)
    mu = jnp.mean(h, axis=(0, 2), keepdims=True)
    var = jnp.mean((h - mu) ** 2, axis=(0, 2), keepdims=True)
    h = (h - mu) / jnp.sqrt(var + EPS) * p['gamma'][None, :, None] + p['beta'][None, :, None]
    h = jax.nn.relu(h)
    flat = h.reshape(h.shape[0], -1)                        # == x.view(-1, 40*18)
    y = jax.nn.relu(flat @ p['fc1_w'].T + p['fc1_b'])
    y = jax.nn.relu(y @ p['fc2_w'].T + p['fc2_b'])
    return y @ p['fc3_w'].T + p['fc3_b']


def make_params(key):
    ks = jax.random.split(key, 12)
    f32 = jnp.float32
    return {
        'conv1_w': 0.3 * jax.random.normal(ks[0], (C1, CIN, K1), f32),
        'conv1_b': 0.1 * jax.random.normal(ks[1], (C1,), f32),
        'conv2_w': 0.2 * jax.random.normal(ks[2], (C2, C1, K2), f32),
        'conv2_b': 0.1 * jax.random.normal(ks[3], (C2,), f32),
        'conv3_w': 0.15 * jax.random.normal(ks[4], (C3, C2, K3), f32),
        'conv3_b': 0.1 * jax.random.normal(ks[5], (C3,), f32),
        'gamma': jnp.ones((C3,), f32),      # BatchNorm1d affine init
        'beta': jnp.zeros((C3,), f32),
        'fc1_w': 0.05 * jax.random.normal(ks[6], (F1, C3 * L), f32),
        'fc1_b': 0.05 * jax.random.normal(ks[7], (F1,), f32),
        'fc2_w': 0.05 * jax.random.normal(ks[8], (F2, F1), f32),
        'fc2_b': 0.05 * jax.random.normal(ks[9], (F2,), f32),
        'fc3_w': 0.05 * jax.random.normal(ks[10], (F3, F2), f32),
        'fc3_b': 0.05 * jax.random.normal(ks[11], (F3,), f32),
    }


if __name__ == "__main__":
    key = jax.random.PRNGKey(0)
    kx, kp = jax.random.split(key)
    params = make_params(kp)
    x = jax.random.normal(kx, (B, CIN, L), jnp.float32)     # PyTorch NCL input

    out = jax.block_until_ready(cnn1d_forward(x, params))
    ref = jax.block_until_ready(reference_forward(x, params))

    assert out.shape == (B, F3), out.shape
    assert jnp.allclose(out, ref, rtol=1e-3, atol=1e-3), (out, ref)
    print("KERNEL_OK")
</pallas_src>

<mosaic_0001>
module attributes {stable_mosaic.version = 11 : i64} {
  func.func @cnn1d_kernel(%arg0: memref<2x22xf32, #tpu.memory_space<vmem>>, %arg1: memref<22x144xf32, #tpu.memory_space<vmem>>, %arg2: memref<1x144xf32, #tpu.memory_space<vmem>>, %arg3: memref<144x540xf32, #tpu.memory_space<vmem>>, %arg4: memref<1x540xf32, #tpu.memory_space<vmem>>, %arg5: memref<540x720xf32, #tpu.memory_space<vmem>>, %arg6: memref<1x720xf32, #tpu.memory_space<vmem>>, %arg7: memref<720x40xf32, #tpu.memory_space<vmem>>, %arg8: memref<40x720xf32, #tpu.memory_space<vmem>>, %arg9: memref<1x40xf32, #tpu.memory_space<vmem>>, %arg10: memref<1x40xf32, #tpu.memory_space<vmem>>, %arg11: memref<720x512xf32, #tpu.memory_space<vmem>>, %arg12: memref<1x512xf32, #tpu.memory_space<vmem>>, %arg13: memref<512x256xf32, #tpu.memory_space<vmem>>, %arg14: memref<1x256xf32, #tpu.memory_space<vmem>>, %arg15: memref<256x18xf32, #tpu.memory_space<vmem>>, %arg16: memref<1x18xf32, #tpu.memory_space<vmem>>, %arg17: memref<2x18xf32, #tpu.memory_space<vmem>>) attributes {dimension_semantics = [], scalar_prefetch = 0 : i64, scratch_operands = 0 : i64, tpu.core_type = #tpu.core_type<tc>} {
    %c0 = arith.constant 0 : index
    %c0_0 = arith.constant 0 : index
    %0 = vector.load %arg0[%c0, %c0_0] : memref<2x22xf32, #tpu.memory_space<vmem>>, vector<2x22xf32>
    %c0_1 = arith.constant 0 : index
    %c0_2 = arith.constant 0 : index
    %1 = vector.load %arg1[%c0_1, %c0_2] : memref<22x144xf32, #tpu.memory_space<vmem>>, vector<22x144xf32>
    %cst = arith.constant dense<0.000000e+00> : vector<2x144xf32>
    %2 = tpu.matmul %0, %1, %cst {dimension_numbers = #tpu.dot_dimension_numbers<[1], [0], [0], [1], [0, 0, 1, 1], [], []>} : vector<2x22xf32>, vector<22x144xf32>, vector<2x144xf32> -> vector<2x144xf32>
    %c0_3 = arith.constant 0 : index
    %c0_4 = arith.constant 0 : index
    %3 = vector.load %arg2[%c0_3, %c0_4] : memref<1x144xf32, #tpu.memory_space<vmem>>, vector<1x144xf32>
    %4 = vector.broadcast %3 : vector<1x144xf32> to vector<2x144xf32>
    %5 = arith.addf %2, %4 : vector<2x144xf32>
    %cst_5 = arith.constant 0.000000e+00 : f32
    %6 = vector.broadcast %cst_5 : f32 to vector<2x144xf32>
    %7 = arith.maximumf %5, %6 : vector<2x144xf32>
    %c0_6 = arith.constant 0 : index
    %c0_7 = arith.constant 0 : index
    %8 = vector.load %arg3[%c0_6, %c0_7] : memref<144x540xf32, #tpu.memory_space<vmem>>, vector<144x540xf32>
    %cst_8 = arith.constant dense<0.000000e+00> : vector<2x540xf32>
    %9 = tpu.matmul %7, %8, %cst_8 {dimension_numbers = #tpu.dot_dimension_numbers<[1], [0], [0], [1], [0, 0, 1, 1], [], []>} : vector<2x144xf32>, vector<144x540xf32>, vector<2x540xf32> -> vector<2x540xf32>
    %c0_9 = arith.constant 0 : index
    %c0_10 = arith.constant 0 : index
    %10 = vector.load %arg4[%c0_9, %c0_10] : memref<1x540xf32, #tpu.memory_space<vmem>>, vector<1x540xf32>
    %11 = vector.broadcast %10 : vector<1x540xf32> to vector<2x540xf32>
    %12 = arith.addf %9, %11 : vector<2x540xf32>
    %cst_11 = arith.constant 0.000000e+00 : f32
    %13 = vector.broadcast %cst_11 : f32 to vector<2x540xf32>
    %14 = arith.maximumf %12, %13 : vector<2x540xf32>
    %c0_12 = arith.constant 0 : index
    %c0_13 = arith.constant 0 : index
    %15 = vector.load %arg5[%c0_12, %c0_13] : memref<540x720xf32, #tpu.memory_space<vmem>>, vector<540x720xf32>
    %cst_14 = arith.constant dense<0.000000e+00> : vector<2x720xf32>
    %16 = tpu.matmul %14, %15, %cst_14 {dimension_numbers = #tpu.dot_dimension_numbers<[1], [0], [0], [1], [0, 0, 1, 1], [], []>} : vector<2x540xf32>, vector<540x720xf32>, vector<2x720xf32> -> vector<2x720xf32>
    %c0_15 = arith.constant 0 : index
    %c0_16 = arith.constant 0 : index
    %17 = vector.load %arg6[%c0_15, %c0_16] : memref<1x720xf32, #tpu.memory_space<vmem>>, vector<1x720xf32>
    %18 = vector.broadcast %17 : vector<1x720xf32> to vector<2x720xf32>
    %19 = arith.addf %16, %18 : vector<2x720xf32>
    %c0_17 = arith.constant 0 : index
    %c0_18 = arith.constant 0 : index
    %20 = vector.load %arg7[%c0_17, %c0_18] : memref<720x40xf32, #tpu.memory_space<vmem>>, vector<720x40xf32>
    %cst_19 = arith.constant dense<0.000000e+00> : vector<2x40xf32>
    %21 = tpu.matmul %19, %20, %cst_19 {dimension_numbers = #tpu.dot_dimension_numbers<[1], [0], [0], [1], [0, 0, 1, 1], [], []>} : vector<2x720xf32>, vector<720x40xf32>, vector<2x40xf32> -> vector<2x40xf32>
    %22 = arith.mulf %19, %19 : vector<2x720xf32>
    %c0_20 = arith.constant 0 : index
    %c0_21 = arith.constant 0 : index
    %23 = vector.load %arg7[%c0_20, %c0_21] : memref<720x40xf32, #tpu.memory_space<vmem>>, vector<720x40xf32>
    %cst_22 = arith.constant dense<0.000000e+00> : vector<2x40xf32>
    %24 = tpu.matmul %22, %23, %cst_22 {dimension_numbers = #tpu.dot_dimension_numbers<[1], [0], [0], [1], [0, 0, 1, 1], [], []>} : vector<2x720xf32>, vector<720x40xf32>, vector<2x40xf32> -> vector<2x40xf32>
    %cst_23 = arith.constant dense<0.000000e+00> : vector<40xf32>
    %25 = vector.multi_reduction <add>, %21, %cst_23 [0] : vector<2x40xf32> to vector<40xf32>
    %26 = vector.shape_cast %25 : vector<40xf32> to vector<1x40xf32>
    %cst_24 = arith.constant 3.600000e+01 : f32
    %27 = vector.broadcast %cst_24 : f32 to vector<1x40xf32>
    %28 = arith.divf %26, %27 : vector<1x40xf32>
    %cst_25 = arith.constant dense<0.000000e+00> : vector<40xf32>
    %29 = vector.multi_reduction <add>, %24, %cst_25 [0] : vector<2x40xf32> to vector<40xf32>
    %30 = vector.shape_cast %29 : vector<40xf32> to vector<1x40xf32>
    %cst_26 = arith.constant 3.600000e+01 : f32
    %31 = vector.broadcast %cst_26 : f32 to vector<1x40xf32>
    %32 = arith.divf %30, %31 : vector<1x40xf32>
    %33 = arith.mulf %28, %28 : vector<1x40xf32>
    %34 = arith.subf %32, %33 : vector<1x40xf32>
    %cst_27 = arith.constant 9.99999974E-6 : f32
    %35 = vector.broadcast %cst_27 : f32 to vector<1x40xf32>
    %36 = arith.addf %34, %35 : vector<1x40xf32>
    %37 = math.rsqrt %36 : vector<1x40xf32>
    %c0_28 = arith.constant 0 : index
    %c0_29 = arith.constant 0 : index
    %38 = vector.load %arg9[%c0_28, %c0_29] : memref<1x40xf32, #tpu.memory_space<vmem>>, vector<1x40xf32>
    %39 = arith.mulf %38, %37 : vector<1x40xf32>
    %c0_30 = arith.constant 0 : index
    %c0_31 = arith.constant 0 : index
    %40 = vector.load %arg10[%c0_30, %c0_31] : memref<1x40xf32, #tpu.memory_space<vmem>>, vector<1x40xf32>
    %41 = arith.mulf %28, %39 : vector<1x40xf32>
    %42 = arith.subf %40, %41 : vector<1x40xf32>
    %c0_32 = arith.constant 0 : index
    %c0_33 = arith.constant 0 : index
    %43 = vector.load %arg8[%c0_32, %c0_33] : memref<40x720xf32, #tpu.memory_space<vmem>>, vector<40x720xf32>
    %cst_34 = arith.constant dense<0.000000e+00> : vector<1x720xf32>
    %44 = tpu.matmul %39, %43, %cst_34 {dimension_numbers = #tpu.dot_dimension_numbers<[1], [0], [0], [1], [0, 0, 1, 1], [], []>} : vector<1x40xf32>, vector<40x720xf32>, vector<1x720xf32> -> vector<1x720xf32>
    %c0_35 = arith.constant 0 : index
    %c0_36 = arith.constant 0 : index
    %45 = vector.load %arg8[%c0_35, %c0_36] : memref<40x720xf32, #tpu.memory_space<vmem>>, vector<40x720xf32>
    %cst_37 = arith.constant dense<0.000000e+00> : vector<1x720xf32>
    %46 = tpu.matmul %42, %45, %cst_37 {dimension_numbers = #tpu.dot_dimension_numbers<[1], [0], [0], [1], [0, 0, 1, 1], [], []>} : vector<1x40xf32>, vector<40x720xf32>, vector<1x720xf32> -> vector<1x720xf32>
    %47 = vector.broadcast %44 : vector<1x720xf32> to vector<2x720xf32>
    %48 = arith.mulf %19, %47 : vector<2x720xf32>
    %49 = vector.broadcast %46 : vector<1x720xf32> to vector<2x720xf32>
    %50 = arith.addf %48, %49 : vector<2x720xf32>
    %cst_38 = arith.constant 0.000000e+00 : f32
    %51 = vector.broadcast %cst_38 : f32 to vector<2x720xf32>
    %52 = arith.maximumf %50, %51 : vector<2x720xf32>
    %c0_39 = arith.constant 0 : index
    %c0_40 = arith.constant 0 : index
    %53 = vector.load %arg11[%c0_39, %c0_40] : memref<720x512xf32, #tpu.memory_space<vmem>>, vector<720x512xf32>
    %cst_41 = arith.constant dense<0.000000e+00> : vector<2x512xf32>
    %54 = tpu.matmul %52, %53, %cst_41 {dimension_numbers = #tpu.dot_dimension_numbers<[1], [0], [0], [1], [0, 0, 1, 1], [], []>} : vector<2x720xf32>, vector<720x512xf32>, vector<2x512xf32> -> vector<2x512xf32>
    %c0_42 = arith.constant 0 : index
    %c0_43 = arith.constant 0 : index
    %55 = vector.load %arg12[%c0_42, %c0_43] : memref<1x512xf32, #tpu.memory_space<vmem>>, vector<1x512xf32>
    %56 = vector.broadcast %55 : vector<1x512xf32> to vector<2x512xf32>
    %57 = arith.addf %54, %56 : vector<2x512xf32>
    %cst_44 = arith.constant 0.000000e+00 : f32
    %58 = vector.broadcast %cst_44 : f32 to vector<2x512xf32>
    %59 = arith.maximumf %57, %58 : vector<2x512xf32>
    %c0_45 = arith.constant 0 : index
    %c0_46 = arith.constant 0 : index
    %60 = vector.load %arg13[%c0_45, %c0_46] : memref<512x256xf32, #tpu.memory_space<vmem>>, vector<512x256xf32>
    %cst_47 = arith.constant dense<0.000000e+00> : vector<2x256xf32>
    %61 = tpu.matmul %59, %60, %cst_47 {dimension_numbers = #tpu.dot_dimension_numbers<[1], [0], [0], [1], [0, 0, 1, 1], [], []>} : vector<2x512xf32>, vector<512x256xf32>, vector<2x256xf32> -> vector<2x256xf32>
    %c0_48 = arith.constant 0 : index
    %c0_49 = arith.constant 0 : index
    %62 = vector.load %arg14[%c0_48, %c0_49] : memref<1x256xf32, #tpu.memory_space<vmem>>, vector<1x256xf32>
    %63 = vector.broadcast %62 : vector<1x256xf32> to vector<2x256xf32>
    %64 = arith.addf %61, %63 : vector<2x256xf32>
    %cst_50 = arith.constant 0.000000e+00 : f32
    %65 = vector.broadcast %cst_50 : f32 to vector<2x256xf32>
    %66 = arith.maximumf %64, %65 : vector<2x256xf32>
    %c0_51 = arith.constant 0 : index
    %c0_52 = arith.constant 0 : index
    %67 = vector.load %arg15[%c0_51, %c0_52] : memref<256x18xf32, #tpu.memory_space<vmem>>, vector<256x18xf32>
    %cst_53 = arith.constant dense<0.000000e+00> : vector<2x18xf32>
    %68 = tpu.matmul %66, %67, %cst_53 {dimension_numbers = #tpu.dot_dimension_numbers<[1], [0], [0], [1], [0, 0, 1, 1], [], []>} : vector<2x256xf32>, vector<256x18xf32>, vector<2x18xf32> -> vector<2x18xf32>
    %c0_54 = arith.constant 0 : index
    %c0_55 = arith.constant 0 : index
    %69 = vector.load %arg16[%c0_54, %c0_55] : memref<1x18xf32, #tpu.memory_space<vmem>>, vector<1x18xf32>
    %70 = vector.broadcast %69 : vector<1x18xf32> to vector<2x18xf32>
    %71 = arith.addf %68, %70 : vector<2x18xf32>
    %c0_56 = arith.constant 0 : index
    %c0_57 = arith.constant 0 : index
    %72 = vector.load %arg17[%c0_56, %c0_57] : memref<2x18xf32, #tpu.memory_space<vmem>>, vector<2x18xf32>
    tpu.vector_store %arg17[%c0_56, %c0_57], %71 {strides = array<i32>} : memref<2x18xf32, #tpu.memory_space<vmem>>, vector<2x18xf32>,
    return
  }
}

</mosaic_0001>

<bundles_post_ra>
// kernel: tpu_custom_call.1
= control target key start
LH: loop header
LB: loop body
LE: loop exit
PB: predicated region body
PF: predicated region fallthrough
CT: control target
= control target key end

     0   :  { %s5871_s0 = inlined_call_operand.hbm [shape: f32[2,22], index: 0, kind: input, shape index: {}]   ;;  %s5872_s1 = inlined_call_operand.hbm [shape: f32[22,144], index: 1, kind: input, shape index: {}]   ;;  %s5873_s2 = inlined_call_operand.hbm [shape: f32[1,144], index: 2, kind: input, shape index: {}]   ;;  %s5874_s3 = inlined_call_operand.hbm [shape: f32[144,540], index: 3, kind: input, shape index: {}]   ;;  %s5875_s4 = inlined_call_operand.hbm [shape: f32[1,540], index: 4, kind: input, shape index: {}]   ;;  %s5876_s5 = inlined_call_operand.hbm [shape: f32[540,720], index: 5, kind: input, shape index: {}]   ;;  %s5877_s6 = inlined_call_operand.hbm [shape: f32[1,720], index: 6, kind: input, shape index: {}]   ;;  %s5878_s7 = inlined_call_operand.vmem [shape: f32[720,40], index: 7, kind: input, shape index: {}]   ;;  %s5879_s8 = inlined_call_operand.hbm [shape: f32[40,720], index: 8, kind: input, shape index: {}]   ;;  %s5880_s9 = inlined_call_operand.hbm [shape: f32[1,40], index: 9, kind: input, shape index: {}]   ;;  %s5881_s10 = inlined_call_operand.hbm [shape: f32[1,40], index: 10, kind: input, shape index: {}]   ;;  %s5882_s11 = inlined_call_operand.hbm [shape: f32[720,512], index: 11, kind: input, shape index: {}]   ;;  %s5883_s12 = inlined_call_operand.hbm [shape: f32[1,512], index: 12, kind: input, shape index: {}]   ;;  %s5884_s13 = inlined_call_operand.hbm [shape: f32[512,256], index: 13, kind: input, shape index: {}]   ;;  %s5885_s14 = inlined_call_operand.hbm [shape: f32[1,256], index: 14, kind: input, shape index: {}]   ;;  %s5886_s15 = inlined_call_operand.vmem [shape: f32[256,18], index: 15, kind: input, shape index: {}]   ;;  %s5887_s16 = inlined_call_operand.hbm [shape: f32[1,18], index: 16, kind: input, shape index: {}]   ;;  %s5888_s17 = inlined_call_operand.hbm [shape: f32[2,18], index: 17, kind: output, shape index: {}]  }
   0x1   :  { %5945 = sst [smem:[#allocation85_spill]] %s5871_s0 }
   0x2   :  { %5946 = sst [smem:[#allocation86_spill]] %s5872_s1 }
   0x3   :  { %22 = vsyncpa [#allocation3], 0 }
   0x4   :  { %23 = vsyncpa [#allocation6], 0 }
   0x5   :  { %24 = vsyncpa [#allocation9], 0 }
   0x6   :  { %25 = vsyncpa [#allocation12], 0 }
   0x7   :  { %26 = vsyncpa [#allocation15], 0 }
   0x8   :  { %27 = vsyncpa [#allocation18], 0 }
   0x9   :  { %28 = vsyncpa [#allocation21], 0 }
   0xa   :  { %29 = vsyncpa [#allocation24], 0 }
   0xb   :  { %30 = vsyncpa [#allocation4], 0  ;;  %s4662_s24 = smov [#allocation5]  }
   0xc   :  { %s46_s25 = sshll.u32 %s4662_s24, 4  ;;  %s47_s25 = int_to_ptr.vmem [resolvable:$true] %s46_s25 }
   0xd   :  { %s4332_s26 = scalar_lea.vmem %s47_s25, 768  ;;  %p4337_p1 = scmp.lt.s32.totalorder %s47_s25, %s47_s25 }
   0xe   :  { %p4333_p0 = scmp.ne.s32.totalorder %s47_s25, %s4332_s26  ;;  %p4338_p2 = scmp.lt.s32.totalorder %s4332_s26, %s4332_s26 }
  0x10   :  { %p4339_p3 = por %p4338_p2, %p4337_p1 }
  0x12   :  { %p4340_p4 = pnand %p4339_p3, %p4333_p0 }
  0x14   :  { %4343 = shalt.err (!%p4340_p4)
}
  0x15   :  { %s5889_s27 = smov 256   ;;  %s4664_s28 = smov 16  }
  0x16   :  { %s5947_s30 = sld [smem:[#allocation86_spill]]  ;;  %s4665_s18 = smov [#allocation8]  }
  0x17   :  { %s68_s19 = sshll.u32 %s4665_s18, 4  ;;  %s69_s19 = int_to_ptr.vmem [resolvable:$true] %s68_s19 }
  0x18   :  { %s4352_s1 = scalar_lea.vmem %s69_s19, 11520  ;;  %p4357_p6 = scmp.lt.s32.totalorder %s69_s19, %s69_s19 }
  0x19   :  { %p4353_p5 = scmp.ne.s32.totalorder %s69_s19, %s4352_s1  ;;  %p4358_p7 = scmp.lt.s32.totalorder %s4352_s1, %s4352_s1 }
  0x1b   :  { %p4359_p8 = por %p4358_p7, %p4357_p6 }
  0x1c   :  { %52 = dma.hbm_to_vmem [thread:$0]  %s5947_s30, 768, %s47_s25, [#allocation6], %s5889_s27, %s5889_s27, %s4664_s28  }
  0x1d   :  { %p4360_p9 = pnand %p4359_p8, %p4353_p5 }
  0x1f   :  { %4363 = shalt.err (!%p4360_p9)
}
  0x20   :  { %s4666_s20 = smov 640   ;;  %s4667_s21 = smov 40  }
  0x21   :  { %74 = dma.hbm_to_vmem [thread:$0]  %s5874_s3, 11520, %s69_s19, [#allocation9], %s4666_s20, %s4666_s20, %s4667_s21  }
  0x22   :  { %s4668_s24 = smov [#allocation11]  }
  0x23   :  { %s90_s26 = sshll.u32 %s4668_s24, 4  ;;  %s91_s26 = int_to_ptr.vmem [resolvable:$true] %s90_s26 }
  0x24   :  { %s4372_s25 = scalar_lea.vmem %s91_s26, 52224  ;;  %p4377_p11 = scmp.lt.s32.totalorder %s91_s26, %s91_s26 }
  0x25   :  { %p4373_p10 = scmp.ne.s32.totalorder %s91_s26, %s4372_s25  ;;  %p4378_p12 = scmp.lt.s32.totalorder %s4372_s25, %s4372_s25 }
  0x27   :  { %p4379_p13 = por %p4378_p12, %p4377_p11 }
  0x29   :  { %p4380_p0 = pnand %p4379_p13, %p4373_p10 }
  0x2b   :  { %4383 = shalt.err (!%p4380_p0)
}
  0x2c   :  { %s4669_s29 = smov 768   ;;  %s4670_s0 = smov 48  }
  0x2d   :  { %96 = dma.hbm_to_vmem [thread:$0]  %s5876_s5, 52224, %s91_s26, [#allocation12], %s4669_s29, %s4669_s29, %s4670_s0  }
  0x2e   :  { %s4671_s1 = smov [#allocation14]   ;;  %s4672_s3 = smov [#allocation17]  }
  0x2f   :  { %s114_s27 = sshll.u32 %s4671_s1, 4  ;;  %s137_s19 = sshll.u32 %s4672_s3, 4  ;;  %s115_s27 = int_to_ptr.vmem [resolvable:$true] %s114_s27  ;;  %s138_s19 = int_to_ptr.vmem [resolvable:$true] %s137_s19 }
  0x30   :  { %s4392_s20 = scalar_lea.vmem %s115_s27, 3840  ;;  %p4397_p2 = scmp.lt.s32.totalorder %s115_s27, %s115_s27 }
  0x31   :  { %p4393_p1 = scmp.ne.s32.totalorder %s115_s27, %s4392_s20  ;;  %p4398_p3 = scmp.lt.s32.totalorder %s4392_s20, %s4392_s20 }
  0x33   :  { %p4399_p4 = por %p4398_p3, %p4397_p2 }
  0x35   :  { %p4400_p5 = pnand %p4399_p4, %p4393_p1 }
  0x37   :  { %4403 = shalt.err (!%p4400_p5)
}
  0x38   :  { %120 = dma.hbm_to_vmem [thread:$0]  %s5879_s8, 3840, %s115_s27, [#allocation15], %s4669_s29, %s4669_s29, %s4670_s0  }
  0x39   :  { %s4412_s23 = scalar_lea.vmem %s138_s19, 16  ;;  %s4416_s5 = scalar_lea.vmem %s138_s19, 32 }
  0x3a   :  { %p4413_p6 = scmp.ne.s32.totalorder %s138_s19, %s4412_s23  ;;  %p4417_p7 = scmp.lt.s32.totalorder %s138_s19, %s138_s19 }
  0x3b   :  { %p4418_p8 = scmp.lt.s32.totalorder %s4416_s5, %s4412_s23 }
  0x3d   :  { %p4419_p9 = por %p4418_p8, %p4417_p7 }
  0x3f   :  { %p4420_p10 = pnand %p4419_p9, %p4413_p6 }
  0x41   :  { %4423 = shalt.err (!%p4420_p10)
}
  0x42   :  { %140 = dma.hbm_to_vmem [thread:$0]  %s5881_s10, 16, %s138_s19, [#allocation18]  }
  0x43   :  { %s4673_s25 = smov [#allocation20]   ;;  %s4674_s18 = smov [#allocation23]  }
  0x44   :  { %s159_s30 = sshll.u32 %s4673_s25, 4  ;;  %s181_s1 = sshll.u32 %s4674_s18, 4  ;;  %s160_s30 = int_to_ptr.vmem [resolvable:$true] %s159_s30  ;;  %s182_s1 = int_to_ptr.vmem [resolvable:$true] %s181_s1 }
  0x45   :  { %s4432_s3 = scalar_lea.vmem %s160_s30, 64  ;;  %p4437_p12 = scmp.lt.s32.totalorder %s160_s30, %s160_s30 }
  0x46   :  { %p4433_p11 = scmp.ne.s32.totalorder %s160_s30, %s4432_s3  ;;  %p4438_p13 = scmp.lt.s32.totalorder %s4432_s3, %s4432_s3 }
  0x48   :  { %p4439_p0 = por %p4438_p13, %p4437_p12 }
  0x4a   :  { %p4440_p1 = pnand %p4439_p0, %p4433_p11 }
  0x4c   :  { %4443 = shalt.err (!%p4440_p1)
}
  0x4d   :  { %162 = dma.hbm_to_vmem [thread:$0]  %s5883_s12, 64, %s160_s30, [#allocation21]  }
  0x4e   :  { %s4452_s29 = scalar_lea.vmem %s182_s1, 32  ;;  %p4457_p3 = scmp.lt.s32.totalorder %s182_s1, %s182_s1 }
  0x4f   :  { %p4453_p2 = scmp.ne.s32.totalorder %s182_s1, %s4452_s29  ;;  %p4458_p4 = scmp.lt.s32.totalorder %s4452_s29, %s4452_s29 }
  0x51   :  { %p4459_p5 = por %p4458_p4, %p4457_p3 }
  0x53   :  { %p4460_p6 = pnand %p4459_p5, %p4453_p2 }
  0x55   :  { %4463 = shalt.err (!%p4460_p6)
}
  0x56   :  { %184 = dma.hbm_to_vmem [thread:$0]  %s5885_s14, 32, %s182_s1, [#allocation24]  }
  0x57   :  { %s4675_s19 = smov [#allocation2]   ;;  %s4676_s21 = smov [#allocation7]  }
  0x58   :  { %s37_s20 = sshll.u32 %s4675_s19, 4  ;;  %s59_s22 = sshll.u32 %s4676_s21, 4  ;;  %s38_s20 = int_to_ptr.vmem [resolvable:$true] %s37_s20  ;;  %s60_s22 = int_to_ptr.vmem [resolvable:$true] %s59_s22 }
  0x59   :  { %s4472_s23 = scalar_lea.vmem %s38_s20, 32  ;;  %p4477_p8 = scmp.lt.s32.totalorder %s38_s20, %s38_s20 }
  0x5a   :  { %p4473_p7 = scmp.ne.s32.totalorder %s38_s20, %s4472_s23  ;;  %p4478_p9 = scmp.lt.s32.totalorder %s4472_s23, %s4472_s23 }
  0x5c   :  { %p4479_p10 = por %p4478_p9, %p4477_p8 }
  0x5e   :  { %p4480_p11 = pnand %p4479_p10, %p4473_p7 }
  0x60   :  { %4483 = shalt.err (!%p4480_p11)
}
  0x61   :  { %s5948_s24 = sld [smem:[#allocation85_spill]]  ;;  %s4492_s26 = scalar_lea.vmem %s60_s22, 32 }
  0x62   :  { %p4493_p12 = scmp.ne.s32.totalorder %s60_s22, %s4492_s26  ;;  %p4497_p13 = scmp.lt.s32.totalorder %s60_s22, %s60_s22 }
  0x63   :  { %p4498_p0 = scmp.lt.s32.totalorder %s4492_s26, %s4492_s26 }
  0x65   :  { %p4499_p1 = por %p4498_p0, %p4497_p13 }
  0x67   :  { %40 = dma.hbm_to_vmem [thread:$0]  %s5948_s24, 32, %s38_s20, [#allocation3]  }
  0x68   :  { %p4500_p2 = pnand %p4499_p1, %p4493_p12 }
  0x6a   :  { %4503 = shalt.err (!%p4500_p2)
}
  0x6b   :  { %62 = dma.hbm_to_vmem [thread:$0]  %s5873_s2, 32, %s60_s22, [#allocation6]  }
  0x6c   :  { %s4677_s30 = smov [#allocation10]   ;;  %s4678_s1 = smov [#allocation13]  }
  0x6d   :  { %s81_s18 = sshll.u32 %s4677_s30, 4  ;;  %s103_s3 = sshll.u32 %s4678_s1, 4  ;;  %s82_s18 = int_to_ptr.vmem [resolvable:$true] %s81_s18  ;;  %s104_s3 = int_to_ptr.vmem [resolvable:$true] %s103_s3 }
  0x6e   :  { %s4512_s8 = scalar_lea.vmem %s82_s18, 80  ;;  %s4516_s27 = scalar_lea.vmem %s82_s18, 96 }
  0x6f   :  { %p4513_p3 = scmp.ne.s32.totalorder %s82_s18, %s4512_s8  ;;  %p4517_p4 = scmp.lt.s32.totalorder %s82_s18, %s82_s18 }
  0x70   :  { %p4518_p5 = scmp.lt.s32.totalorder %s4516_s27, %s4512_s8 }
  0x72   :  { %p4519_p6 = por %p4518_p5, %p4517_p4 }
  0x74   :  { %p4520_p7 = pnand %p4519_p6, %p4513_p3 }
  0x76   :  { %4523 = shalt.err (!%p4520_p7)
}
  0x77   :  { %84 = dma.hbm_to_vmem [thread:$0]  %s5875_s4, 80, %s82_s18, [#allocation9]  }
  0x78   :  { %s4532_s0 = scalar_lea.vmem %s104_s3, 96  ;;  %p4537_p9 = scmp.lt.s32.totalorder %s104_s3, %s104_s3 }
  0x79   :  { %p4533_p8 = scmp.ne.s32.totalorder %s104_s3, %s4532_s0  ;;  %p4538_p10 = scmp.lt.s32.totalorder %s4532_s0, %s4532_s0 }
  0x7b   :  { %p4539_p11 = por %p4538_p10, %p4537_p9 }
  0x7d   :  { %p4540_p12 = pnand %p4539_p11, %p4533_p8 }
  0x7f   :  { %4543 = shalt.err (!%p4540_p12)
}
  0x80   :  { %106 = dma.hbm_to_vmem [thread:$0]  %s5877_s6, 96, %s104_s3, [#allocation12]  }
  0x81   :  { %s4679_s20 = smov [#allocation16]   ;;  %s4680_s22 = smov [#allocation19]  }
  0x82   :  { %s127_s21 = sshll.u32 %s4679_s20, 4  ;;  %s146_s23 = sshll.u32 %s4680_s22, 4  ;;  %s128_s21 = int_to_ptr.vmem [resolvable:$true] %s127_s21  ;;  %s147_s23 = int_to_ptr.vmem [resolvable:$true] %s146_s23 }
  0x83   :  { %s4552_s12 = scalar_lea.vmem %s128_s21, 16  ;;  %s4556_s4 = scalar_lea.vmem %s128_s21, 32 }
  0x84   :  { %p4553_p13 = scmp.ne.s32.totalorder %s128_s21, %s4552_s12  ;;  %p4557_p0 = scmp.lt.s32.totalorder %s128_s21, %s128_s21 }
  0x85   :  { %p4558_p1 = scmp.lt.s32.totalorder %s4556_s4, %s4552_s12 }
  0x87   :  { %p4559_p2 = por %p4558_p1, %p4557_p0 }
  0x89   :  { %p4560_p3 = pnand %p4559_p2, %p4553_p13 }
  0x8b   :  { %4563 = shalt.err (!%p4560_p3)
}
  0x8c   :  { %130 = dma.hbm_to_vmem [thread:$0]  %s5880_s9, 16, %s128_s21, [#allocation15]  }
  0x8d   :  { %s4572_s26 = scalar_lea.vmem %s147_s23, 46080  ;;  %p4577_p5 = scmp.lt.s32.totalorder %s147_s23, %s147_s23 }
  0x8e   :  { %p4573_p4 = scmp.ne.s32.totalorder %s147_s23, %s4572_s26  ;;  %p4578_p6 = scmp.lt.s32.totalorder %s4572_s26, %s4572_s26 }
  0x90   :  { %p4579_p7 = por %p4578_p6, %p4577_p5 }
  0x92   :  { %p4580_p8 = pnand %p4579_p7, %p4573_p4 }
  0x94   :  { %4583 = shalt.err (!%p4580_p8)
}
  0x95   :  { %s4681_s6 = smov 512   ;;  %s4682_s14 = smov 32  }
  0x96   :  { %152 = dma.hbm_to_vmem [thread:$0]  %s5882_s11, 46080, %s147_s23, [#allocation18], %s4681_s6, %s4681_s6, %s4682_s14  }
  0x97   :  { %s4683_s18 = smov [#allocation22]   ;;  %s4684_s3 = smov [#allocation25]  }
  0x98   :  { %s168_s1 = sshll.u32 %s4683_s18, 4  ;;  %s193_s8 = sshll.u32 %s4684_s3, 4  ;;  %s169_s1 = int_to_ptr.vmem [resolvable:$true] %s168_s1  ;;  %s194_s8 = int_to_ptr.vmem [resolvable:$true] %s193_s8 }
  0x99   :  { %s4592_s9 = scalar_lea.vmem %s169_s1, 16384  ;;  %p4597_p10 = scmp.lt.s32.totalorder %s169_s1, %s169_s1 }
  0x9a   :  { %p4593_p9 = scmp.ne.s32.totalorder %s169_s1, %s4592_s9  ;;  %p4598_p11 = scmp.lt.s32.totalorder %s4592_s9, %s4592_s9 }
  0x9c   :  { %p4599_p12 = por %p4598_p11, %p4597_p10 }
  0x9e   :  { %p4600_p13 = pnand %p4599_p12, %p4593_p9 }
  0xa0   :  { %4603 = shalt.err (!%p4600_p13)
}
  0xa1   :  { %s5949_s27 = smov 256   ;;  %s4612_s11 = scalar_lea.vmem %s194_s8, 16 }
  0xa2   :  { %174 = dma.hbm_to_vmem [thread:$0]  %s5884_s13, 16384, %s169_s1, [#allocation21], %s5949_s27, %s5949_s27, %s4664_s28  }
  0xa3   :  { %p4613_p0 = scmp.ne.s32.totalorder %s194_s8, %s4612_s11  ;;  %s4616_s0 = scalar_lea.vmem %s194_s8, 32 }
  0xa4   :  { %p4617_p1 = scmp.lt.s32.totalorder %s194_s8, %s194_s8  ;;  %p4618_p2 = scmp.lt.s32.totalorder %s4616_s0, %s4612_s11 }
  0xa6   :  { %p4619_p3 = por %p4618_p2, %p4617_p1 }
  0xa8   :  { %p4620_p4 = pnand %p4619_p3, %p4613_p0 }
  0xaa   :  { %4623 = shalt.err (!%p4620_p4)
}
  0xab   :  { %196 = dma.hbm_to_vmem [thread:$0]  %s5887_s16, 16, %s194_s8, [#allocation24]  }
  0xac   :  { %4644 = dma.done.wait [#allocation3], 32  }
  0xad   :  { %4645 = vsyncadd [#allocation3], 4294967264 }
  0xae   :  { %4646 = dma.done.wait [#allocation6], 800  }
  0xaf   :  { %4647 = vsyncadd [#allocation6], 4294966496 }
  0xb0   :  { %4648 = dma.done.wait [#allocation9], 11600  }
  0xb1   :  { %4649 = vsyncadd [#allocation9], 4294955696 }
  0xb2   :  { %4650 = dma.done.wait [#allocation12], 52320  }
  0xb3   :  { %4651 = vsyncadd [#allocation12], 4294914976 }
  0xb4   :  { %4652 = dma.done.wait [#allocation15], 3856  }
  0xb5   :  { %4653 = vsyncadd [#allocation15], 4294963440 }
  0xb6   :  { %4654 = dma.done.wait [#allocation18], 46096  }
  0xb7   :  { %4655 = vsyncadd [#allocation18], 4294921200 }
  0xb8   :  { %4656 = dma.done.wait [#allocation21], 16448  }
  0xb9   :  { %4657 = vsyncadd [#allocation21], 4294950848 }
  0xba   :  { %4658 = dma.done.wait [#allocation24], 48  }
  0xbb   :  { %4659 = vsyncadd [#allocation24], 4294967248  ;;  %v5891_v0 = vmov 0.0   ;;  %vm265_vm0 = vcmask 1045504   ;;  %v248_v1 = vld [vmem:[#allocation5 + $0x28] sm:$0x3f] }
  0xbc   :  { %336 = vmatprep.mubr.f32.mxu0 %v5891_v0  ;;  %v247_v2 = vld [vmem:[#allocation5 + $0x20] sm:$0x3f]  ;;  %v246_v3 = vld [vmem:[#allocation5 + $0x18] sm:$0xff]  ;;  %4096 = vmatprep.subr.msk.mxu0 %vm265_vm0, %v248_v1  ;;  %v245_v4 = vld [vmem:[#allocation5 + $0x10] sm:$0xff]  ;;  %vm261_vm1 = vcmask 179200   ;;  %vm462_vm2 = vcmask 130048  }
  0xbd   :  { %4097 = vmatpush1.msk.msra.mxu0 %vm265_vm0, %v247_v2  ;;  %v244_v5 = vld [vmem:[#allocation5 + $0x8] sm:$0xff]  ;;  %v421_v6 = vld [vmem:[#allocation8 + $0x260] sm:$0xff]  ;;  %v243_v8 = vld [vmem:[#allocation5] sm:$0xff]  ;;  %vm1127_vm3 = vcmask 1043456   ;;  %vm1123_vm4 = vcmask 228352   ;;  %vm1875_vm5 = vcmask 654336  }
  0xbe   :  { %v420_v7 = vld [vmem:[#allocation8 + $0x258] sm:$0xff]  ;;  %300 = vmatprep.subr.mxu0 %v246_v3  ;;  %466 = vmatprep.subr.mxu1 %v421_v6  ;;  %v242_v10 = vld [vmem:[#allocation2] sm:$0x3]  ;;  %v423_v11 = vld [vmem:[#allocation8 + $0x270] sm:$0xff]  ;;  %vm2308_vm6 = vcmask 320512   ;;  %vm2365_vm7 = vcmask 326656  }
  0xbf   :  { %v416_v9 = vld [vmem:[#allocation8 + $0x238] sm:$0xff]  ;;  %301 = vmatpush1.msra.mxu0 %v245_v4  ;;  %467 = vmatpush1.msra.mxu1 %v420_v7  ;;  %v415_v12 = vld [vmem:[#allocation8 + $0x230] sm:$0xff]  ;;  %v422_v13 = vld [vmem:[#allocation8 + $0x268] sm:$0xff]  ;;  %vm4072_vm8 = vcmask 140288  }
  0xc0   :  { %302 = vmatprep.subr.mxu0 %v244_v5  ;;  %468 = vmatprep.subr.mxu1 %v416_v9  ;;  %v411_v14 = vld [vmem:[#allocation8 + $0x210] sm:$0xff]  ;;  %v418_v15 = vld [vmem:[#allocation8 + $0x248] sm:$0xff]  ;;  %v417_v17 = vld [vmem:[#allocation8 + $0x240] sm:$0xff] }
  0xc1   :  { %303 = vmatpush1.msra.mxu0 %v243_v8  ;;  %469 = vmatpush1.msra.mxu1 %v415_v12  ;;  %v410_v16 = vld [vmem:[#allocation8 + $0x208] sm:$0xff]  ;;  %v413_v19 = vld [vmem:[#allocation8 + $0x220] sm:$0xff]  ;;  %v412_v21 = vld [vmem:[#allocation8 + $0x218] sm:$0xff] }
  0xc2   :  { %4098 = vmatmul.mubr.msk.f32.vlgmr.msra.gmra.mxu0 %vm261_vm1, %v242_v10  ;;  %537 = vmatprep.subr.mxu0 %v423_v11  ;;  %v406_v18 = vld [vmem:[#allocation8 + $0x1e8] sm:$0xff]  ;;  %v405_v20 = vld [vmem:[#allocation8 + $0x1e0] sm:$0xff]  ;;  %v408_v23 = vld [vmem:[#allocation8 + $0x1f8] sm:$0xff] }
  0xc3   :  { %538 = vmatpush1.msra.mxu0 %v422_v13  ;;  %470 = vmatprep.subr.mxu1 %v411_v14  ;;  %v401_v22 = vld [vmem:[#allocation8 + $0x1c0] sm:$0xff]  ;;  %v400_v24 = vld [vmem:[#allocation8 + $0x1b8] sm:$0xff]  ;;  %v407_v25 = vld [vmem:[#allocation8 + $0x1f0] sm:$0xff] }
  0xc4   :  { %539 = vmatprep.subr.mxu0 %v418_v15  ;;  %471 = vmatpush1.msra.mxu1 %v410_v16  ;;  %v396_v26 = vld [vmem:[#allocation8 + $0x198] sm:$0xff]  ;;  %v403_v27 = vld [vmem:[#allocation8 + $0x1d0] sm:$0xff]  ;;  %v402_v29 = vld [vmem:[#allocation8 + $0x1c8] sm:$0xff] }
  0xc5   :  { %540 = vmatpush1.msra.mxu0 %v417_v17  ;;  %472 = vmatprep.subr.mxu1 %v406_v18  ;;  %v395_v28 = vld [vmem:[#allocation8 + $0x190] sm:$0xff]  ;;  %v398_v31 = vld [vmem:[#allocation8 + $0x1a8] sm:$0xff]  ;;  %v397_v33 = vld [vmem:[#allocation8 + $0x1a0] sm:$0xff]  ;;  %v251_v18 = vlaneseq }
  0xc6   :  { %541 = vmatprep.subr.mxu0 %v413_v19  ;;  %473 = vmatpush1.msra.mxu1 %v405_v20  ;;  %v391_v30 = vld [vmem:[#allocation8 + $0x170] sm:$0xff]  ;;  %v390_v32 = vld [vmem:[#allocation8 + $0x168] sm:$0xff]  ;;  %v393_v35 = vld [vmem:[#allocation8 + $0x180] sm:$0xff] }
  0xc7   :  { %542 = vmatpush1.msra.mxu0 %v412_v21  ;;  %474 = vmatprep.subr.mxu1 %v401_v22  ;;  %v386_v34 = vld [vmem:[#allocation8 + $0x148] sm:$0xff]  ;;  %v385_v36 = vld [vmem:[#allocation8 + $0x140] sm:$0xff]  ;;  %v392_v37 = vld [vmem:[#allocation8 + $0x178] sm:$0xff]  ;;  %v4830_v19 = vshrl.u32 %v251_v18, 7 }
  0xc8   :  { %543 = vmatprep.subr.mxu0 %v408_v23  ;;  %475 = vmatpush1.msra.mxu1 %v400_v24  ;;  %v381_v38 = vld [vmem:[#allocation8 + $0x120] sm:$0xff]  ;;  %v388_v39 = vld [vmem:[#allocation8 + $0x158] sm:$0xff]  ;;  %v387_v41 = vld [vmem:[#allocation8 + $0x150] sm:$0xff] }
  0xc9   :  { %544 = vmatpush1.msra.mxu0 %v407_v25  ;;  %476 = vmatprep.subr.mxu1 %v396_v26  ;;  %v380_v40 = vld [vmem:[#allocation8 + $0x118] sm:$0xff]  ;;  %v383_v43 = vld [vmem:[#allocation8 + $0x130] sm:$0xff]  ;;  %v382_v45 = vld [vmem:[#allocation8 + $0x128] sm:$0xff]  ;;  %5950 = vst [vmem:[#allocation36_spill] sm:$0xff] %v4830_v19  ;;  %v4833_v20 = vsub.s32 0, %v4830_v19  ;;  %v4836_v22 = vsub.s32 1, %v4830_v19 }
  0xca   :  { %545 = vmatprep.subr.mxu0 %v403_v27  ;;  %477 = vmatpush1.msra.mxu1 %v395_v28  ;;  %v376_v42 = vld [vmem:[#allocation8 + $0xf8] sm:$0xff]  ;;  %v375_v44 = vld [vmem:[#allocation8 + $0xf0] sm:$0xff]  ;;  %v378_v47 = vld [vmem:[#allocation8 + $0x108] sm:$0xff] }
  0xcb   :  { %546 = vmatpush1.msra.mxu0 %v402_v29  ;;  %478 = vmatprep.subr.mxu1 %v391_v30  ;;  %v371_v46 = vld [vmem:[#allocation8 + $0xd0] sm:$0xff]  ;;  %v370_v48 = vld [vmem:[#allocation8 + $0xc8] sm:$0xff]  ;;  %v377_v49 = vld [vmem:[#allocation8 + $0x100] sm:$0xff]  ;;  %5951 = vst [vmem:[#allocation37_spill] sm:$0xff] %v4833_v20 }
  0xcc   :  { %547 = vmatprep.subr.mxu0 %v398_v31  ;;  %479 = vmatpush1.msra.mxu1 %v390_v32  ;;  %v366_v50 = vld [vmem:[#allocation8 + $0xa8] sm:$0xff]  ;;  %v373_v51 = vld [vmem:[#allocation8 + $0xe0] sm:$0xff]  ;;  %v372_v53 = vld [vmem:[#allocation8 + $0xd8] sm:$0xff]  ;;  %5952 = vst [vmem:[#allocation38_spill] sm:$0xff] %v4836_v22 }
  0xcd   :  { %548 = vmatpush1.msra.mxu0 %v397_v33  ;;  %480 = vmatprep.subr.mxu1 %v386_v34  ;;  %v365_v52 = vld [vmem:[#allocation8 + $0xa0] sm:$0xff]  ;;  %v368_v55 = vld [vmem:[#allocation8 + $0xb8] sm:$0xff]  ;;  %v367_v57 = vld [vmem:[#allocation8 + $0xb0] sm:$0xff] }
  0xce   :  { %549 = vmatprep.subr.mxu0 %v393_v35  ;;  %481 = vmatpush1.msra.mxu1 %v385_v36  ;;  %v361_v54 = vld [vmem:[#allocation8 + $0x80] sm:$0xff]  ;;  %v360_v56 = vld [vmem:[#allocation8 + $0x78] sm:$0xff]  ;;  %v363_v59 = vld [vmem:[#allocation8 + $0x90] sm:$0xff] }
  0xcf   :  { %550 = vmatpush1.msra.mxu0 %v392_v37  ;;  %482 = vmatprep.subr.mxu1 %v381_v38  ;;  %v356_v58 = vld [vmem:[#allocation8 + $0x58] sm:$0xff]  ;;  %v355_v60 = vld [vmem:[#allocation8 + $0x50] sm:$0xff]  ;;  %v362_v61 = vld [vmem:[#allocation8 + $0x88] sm:$0xff] }
  0xd0   :  { %551 = vmatprep.subr.mxu0 %v388_v39  ;;  %483 = vmatpush1.msra.mxu1 %v380_v40  ;;  %v351_v62 = vld [vmem:[#allocation8 + $0x30] sm:$0xff]  ;;  %v358_v63 = vld [vmem:[#allocation8 + $0x68] sm:$0xff]  ;;  %v357_v1 = vld [vmem:[#allocation8 + $0x60] sm:$0xff] }
  0xd1   :  { %552 = vmatpush1.msra.mxu0 %v387_v41  ;;  %484 = vmatprep.subr.mxu1 %v376_v42  ;;  %v350_v2 = vld [vmem:[#allocation8 + $0x28] sm:$0xff]  ;;  %v353_v3 = vld [vmem:[#allocation8 + $0x40] sm:$0xff]  ;;  %v352_v5 = vld [vmem:[#allocation8 + $0x38] sm:$0xff] }
  0xd2   :  { %553 = vmatprep.subr.mxu0 %v383_v43  ;;  %485 = vmatpush1.msra.mxu1 %v375_v44  ;;  %v346_v4 = vld [vmem:[#allocation8 + $0x8] sm:$0xff]  ;;  %v345_v6 = vld [vmem:[#allocation8] sm:$0xff]  ;;  %v348_v7 = vld [vmem:[#allocation8 + $0x18] sm:$0xff] }
  0xd3   :  { %554 = vmatpush1.msra.mxu0 %v382_v45  ;;  %486 = vmatprep.subr.mxu1 %v371_v46  ;;  %v431_v8 = vld [vmem:[#allocation8 + $0x2b0] sm:$0xff]  ;;  %v430_v10 = vld [vmem:[#allocation8 + $0x2a8] sm:$0xff]  ;;  %v433_v11 = vld [vmem:[#allocation8 + $0x2c0] sm:$0xff] }
  0xd4   :  { %555 = vmatprep.subr.mxu0 %v378_v47  ;;  %487 = vmatpush1.msra.mxu1 %v370_v48  ;;  %v347_v9 = vld [vmem:[#allocation8 + $0x10] sm:$0xff]  ;;  %v426_v12 = vld [vmem:[#allocation8 + $0x288] sm:$0xff]  ;;  %v432_v13 = vld [vmem:[#allocation8 + $0x2b8] sm:$0xff] }
  0xd5   :  { %556 = vmatpush1.msra.mxu0 %v377_v49  ;;  %488 = vmatprep.subr.mxu1 %v366_v50  ;;  %v425_v14 = vld [vmem:[#allocation8 + $0x280] sm:$0xff]  ;;  %v428_v15 = vld [vmem:[#allocation8 + $0x298] sm:$0xff]  ;;  %v427_v16 = vld [vmem:[#allocation8 + $0x290] sm:$0xff] }
  0xd6   :  { %557 = vmatprep.subr.mxu0 %v373_v51  ;;  %489 = vmatpush1.msra.mxu1 %v365_v52  ;;  %v774_v17 = vld [vmem:[#allocation11 + $0x2d8] sm:$0xff]  ;;  %v249_v21 = vld [vmem:[#allocation7] sm:$0x3]  ;;  %v773_v32 = vld [vmem:[#allocation11 + $0x2d0] sm:$0xff] }
  0xd7   :  { %558 = vmatpush1.msra.mxu0 %v372_v53  ;;  %490 = vmatprep.subr.mxu1 %v361_v54  ;;  %v254_v23 = vrot.slane %v249_v21, %v4833_v20  ;;  %v258_v24 = vrot.slane %v249_v21, %v4836_v22  ;;  %v424_v31 = vld [vmem:[#allocation8 + $0x278] sm:$0xff]  ;;  %v419_v33 = vld [vmem:[#allocation8 + $0x250] sm:$0xff]  ;;  %v414_v36 = vld [vmem:[#allocation8 + $0x228] sm:$0xff] }
  0xd8   :  { %559 = vmatprep.subr.mxu0 %v368_v55  ;;  %491 = vmatpush1.msra.mxu1 %v360_v56  ;;  %v768_v34 = vld [vmem:[#allocation11 + $0x2a8] sm:$0xff]  ;;  %v767_v35 = vld [vmem:[#allocation11 + $0x2a0] sm:$0xff]  ;;  %v762_v37 = vld [vmem:[#allocation11 + $0x278] sm:$0xff] }
  0xd9   :  { %560 = vmatpush1.msra.mxu0 %v367_v57  ;;  %492 = vmatprep.subr.mxu1 %v356_v58  ;;  %v761_v38 = vld [vmem:[#allocation11 + $0x270] sm:$0xff]  ;;  %v756_v40 = vld [vmem:[#allocation11 + $0x248] sm:$0xff]  ;;  %v755_v41 = vld [vmem:[#allocation11 + $0x240] sm:$0xff] }
  0xda   :  { %561 = vmatprep.subr.mxu0 %v363_v59  ;;  %493 = vmatpush1.msra.mxu1 %v355_v60  ;;  %v409_v39 = vld [vmem:[#allocation8 + $0x200] sm:$0xff]  ;;  %v404_v42 = vld [vmem:[#allocation8 + $0x1d8] sm:$0xff]  ;;  %v750_v43 = vld [vmem:[#allocation11 + $0x218] sm:$0xff] }
  0xdb   :  { %562 = vmatpush1.msra.mxu0 %v362_v61  ;;  %494 = vmatprep.subr.mxu1 %v351_v62  ;;  %v749_v44 = vld [vmem:[#allocation11 + $0x210] sm:$0xff]  ;;  %v399_v45 = vld [vmem:[#allocation8 + $0x1b0] sm:$0xff]  ;;  %v744_v46 = vld [vmem:[#allocation11 + $0x1e8] sm:$0xff] }
  0xdc   :  { %563 = vmatprep.subr.mxu0 %v358_v63  ;;  %495 = vmatpush1.msra.mxu1 %v350_v2  ;;  %v743_v47 = vld [vmem:[#allocation11 + $0x1e0] sm:$0xff]  ;;  %v394_v48 = vld [vmem:[#allocation8 + $0x188] sm:$0xff]  ;;  %v389_v51 = vld [vmem:[#allocation8 + $0x160] sm:$0xff] }
  0xdd   :  { %564 = vmatpush1.msra.mxu0 %v357_v1  ;;  %496 = vmatprep.subr.mxu1 %v346_v4  ;;  %v738_v49 = vld [vmem:[#allocation11 + $0x1b8] sm:$0xff]  ;;  %v737_v50 = vld [vmem:[#allocation11 + $0x1b0] sm:$0xff]  ;;  %v732_v52 = vld [vmem:[#allocation11 + $0x188] sm:$0xff] }
  0xde   :  { %565 = vmatprep.subr.mxu0 %v353_v3  ;;  %497 = vmatpush1.msra.mxu1 %v345_v6  ;;  %v731_v53 = vld [vmem:[#allocation11 + $0x180] sm:$0xff]  ;;  %v726_v55 = vld [vmem:[#allocation11 + $0x158] sm:$0xff]  ;;  %v725_v56 = vld [vmem:[#allocation11 + $0x150] sm:$0xff] }
  0xdf   :  { %566 = vmatpush1.msra.mxu0 %v352_v5  ;;  %526 = vmatprep.subr.mxu1 %v431_v8  ;;  %v384_v54 = vld [vmem:[#allocation8 + $0x138] sm:$0xff]  ;;  %v379_v57 = vld [vmem:[#allocation8 + $0x110] sm:$0xff]  ;;  %v374_v60 = vld [vmem:[#allocation8 + $0xe8] sm:$0xff] }
  0xe0   :  { %567 = vmatprep.subr.mxu0 %v348_v7  ;;  %527 = vmatpush2.msra.mxu1 %v430_v10  ;;  %v720_v58 = vld [vmem:[#allocation11 + $0x128] sm:$0xff]  ;;  %v719_v59 = vld [vmem:[#allocation11 + $0x120] sm:$0xff]  ;;  %v714_v61 = vld [vmem:[#allocation11 + $0xf8] sm:$0xff] }
  0xe1   :  { %568 = vmatpush1.msra.mxu0 %v347_v9  ;;  %528 = vmatprep.subr.mxu1 %v426_v12  ;;  %v713_v62 = vld [vmem:[#allocation11 + $0xf0] sm:$0xff]  ;;  %v708_v1 = vld [vmem:[#allocation11 + $0xc8] sm:$0xff]  ;;  %v707_v2 = vld [vmem:[#allocation11 + $0xc0] sm:$0xff] }
  0xe2   :  { %597 = vmatprep.subr.mxu0 %v433_v11  ;;  %529 = vmatpush2.msra.mxu1 %v425_v14  ;;  %v369_v63 = vld [vmem:[#allocation8 + $0xc0] sm:$0xff]  ;;  %v364_v3 = vld [vmem:[#allocation8 + $0x98] sm:$0xff]  ;;  %v702_v4 = vld [vmem:[#allocation11 + $0x98] sm:$0xff] }
  0xe3   :  { %598 = vmatpush2.msra.mxu0 %v432_v13  ;;  %608 = vmatprep.subr.mxu1 %v5891_v0  ;;  %v701_v5 = vld [vmem:[#allocation11 + $0x90] sm:$0xff]  ;;  %v359_v6 = vld [vmem:[#allocation8 + $0x70] sm:$0xff]  ;;  %v696_v7 = vld [vmem:[#allocation11 + $0x68] sm:$0xff] }
  0xe4   :  { %599 = vmatprep.subr.mxu0 %v428_v15  ;;  %v695_v8 = vld [vmem:[#allocation11 + $0x60] sm:$0xff]  ;;  %v354_v9 = vld [vmem:[#allocation8 + $0x48] sm:$0xff]  ;;  %v349_v12 = vld [vmem:[#allocation8 + $0x20] sm:$0xff] }
  0xe5   :  { %600 = vmatpush2.msra.mxu0 %v427_v16  ;;  %v690_v10 = vld [vmem:[#allocation11 + $0x38] sm:$0xff]  ;;  %v689_v11 = vld [vmem:[#allocation11 + $0x30] sm:$0xff]  ;;  %v684_v13 = vld [vmem:[#allocation11 + $0x8] sm:$0xff] }
  0xe6   :  { %1146 = vmatprep.subr.mxu0 %v774_v17  ;;  %v683_v14 = vld [vmem:[#allocation11] sm:$0xff]  ;;  %v434_v15 = vld [vmem:[#allocation8 + $0x2c8] sm:$0xff]  ;;  %v429_v18 = vld [vmem:[#allocation8 + $0x2a0] sm:$0xff] }
  0xe7   :  { %v870_v16 = vld [vmem:[#allocation11 + $0x5d8] sm:$0xff]  ;;  %v869_v17 = vld [vmem:[#allocation11 + $0x5d0] sm:$0xff]  ;;  %v864_v21 = vld [vmem:[#allocation11 + $0x5a8] sm:$0xff] }
 0x182   :  { %v338_v25 = vpop.f32.mrf.mxu0 }
 0x183   :  { %v339_v26 = vadd.f32 %v338_v25, %v254_v23  ;;  %v966_v23 = vld [vmem:[#allocation11 + $0x8d8] sm:$0xff]  ;;  %v863_v25 = vld [vmem:[#allocation11 + $0x5a0] sm:$0xff] }
 0x184   :  { %v340_v27 = vpop.f32.mrf.mxu0 }
 0x185   :  { %v341_v28 = vadd.f32 %v340_v27, %v258_v24  ;;  %v4840_v30 = vmax.f32 %v339_v26, 0.0  ;;  %v965_v24 = vld [vmem:[#allocation11 + $0x8d0] sm:$0xff]  ;;  %v960_v26 = vld [vmem:[#allocation11 + $0x8a8] sm:$0xff]  ;;  %v858_v27 = vld [vmem:[#allocation11 + $0x578] sm:$0xff] }
 0x187   :  { %v344_v29 = vmax.f32 %v341_v28, 0.0  ;;  %v959_v28 = vld [vmem:[#allocation11 + $0x8a0] sm:$0xff] }
 0x189   :  { %4099 = vmatprep.mubr.msk.f32.mxu1 %vm462_vm2, %v344_v29  ;;  %4100 = vmatprep.mubr.msk.f32.mxu0 %vm462_vm2, %v344_v29 }
 0x18a   :  { %531 = vmatmul.mubr.f32.vlgmr.msra.gmra.mxu1 %v4840_v30  ;;  %602 = vmatmul.mubr.f32.vlgmr.msra.gmra.mxu0 %v4840_v30 }
 0x18b   :  { %609 = vmatpush1.msra.mxu1 %v424_v31  ;;  %4101 = vmatprep.mubr.msk.f32.mxu1 %vm462_vm2, %v344_v29  ;;  %v857_v29 = vld [vmem:[#allocation11 + $0x570] sm:$0xff]  ;;  %v954_v31 = vld [vmem:[#allocation11 + $0x878] sm:$0xff] }
 0x18c   :  { %610 = vmatprep.subr.mxu1 %v5891_v0  ;;  %1147 = vmatpush1.msra.mxu0 %v773_v32  ;;  %v852_v32 = vld [vmem:[#allocation11 + $0x548] sm:$0xff] }
 0x18d   :  { %611 = vmatpush1.msra.mxu1 %v419_v33  ;;  %1148 = vmatprep.subr.mxu0 %v768_v34  ;;  %v953_v33 = vld [vmem:[#allocation11 + $0x870] sm:$0xff]  ;;  %v851_v34 = vld [vmem:[#allocation11 + $0x540] sm:$0xff] }
 0x18e   :  { %612 = vmatprep.subr.mxu1 %v5891_v0  ;;  %1149 = vmatpush1.msra.mxu0 %v767_v35  ;;  %v948_v35 = vld [vmem:[#allocation11 + $0x848] sm:$0xff] }
 0x18f   :  { %613 = vmatpush1.msra.mxu1 %v414_v36  ;;  %1150 = vmatprep.subr.mxu0 %v762_v37  ;;  %v846_v36 = vld [vmem:[#allocation11 + $0x518] sm:$0xff]  ;;  %v947_v37 = vld [vmem:[#allocation11 + $0x840] sm:$0xff] }
 0x190   :  { %614 = vmatprep.subr.mxu1 %v5891_v0  ;;  %1151 = vmatpush1.msra.mxu0 %v761_v38  ;;  %v845_v38 = vld [vmem:[#allocation11 + $0x510] sm:$0xff] }
 0x191   :  { %615 = vmatpush1.msra.mxu1 %v409_v39  ;;  %1152 = vmatprep.subr.mxu0 %v756_v40  ;;  %v840_v39 = vld [vmem:[#allocation11 + $0x4e8] sm:$0xff]  ;;  %v941_v40 = vld [vmem:[#allocation11 + $0x810] sm:$0xff] }
 0x192   :  { %616 = vmatprep.subr.mxu1 %v5891_v0  ;;  %1153 = vmatpush1.msra.mxu0 %v755_v41  ;;  %v839_v41 = vld [vmem:[#allocation11 + $0x4e0] sm:$0xff] }
 0x193   :  { %617 = vmatpush1.msra.mxu1 %v404_v42  ;;  %1154 = vmatprep.subr.mxu0 %v750_v43  ;;  %v936_v42 = vld [vmem:[#allocation11 + $0x7e8] sm:$0xff]  ;;  %v834_v43 = vld [vmem:[#allocation11 + $0x4b8] sm:$0xff] }
 0x194   :  { %618 = vmatprep.subr.mxu1 %v5891_v0  ;;  %1155 = vmatpush1.msra.mxu0 %v749_v44  ;;  %v935_v44 = vld [vmem:[#allocation11 + $0x7e0] sm:$0xff] }
 0x195   :  { %619 = vmatpush1.msra.mxu1 %v399_v45  ;;  %1156 = vmatprep.subr.mxu0 %v744_v46  ;;  %v833_v45 = vld [vmem:[#allocation11 + $0x4b0] sm:$0xff]  ;;  %v930_v46 = vld [vmem:[#allocation11 + $0x7b8] sm:$0xff] }
 0x196   :  { %620 = vmatprep.subr.mxu1 %v5891_v0  ;;  %1157 = vmatpush1.msra.mxu0 %v743_v47  ;;  %v828_v47 = vld [vmem:[#allocation11 + $0x488] sm:$0xff] }
 0x197   :  { %621 = vmatpush1.msra.mxu1 %v394_v48  ;;  %1158 = vmatprep.subr.mxu0 %v738_v49  ;;  %v929_v48 = vld [vmem:[#allocation11 + $0x7b0] sm:$0xff]  ;;  %v827_v49 = vld [vmem:[#allocation11 + $0x480] sm:$0xff] }
 0x198   :  { %622 = vmatprep.subr.mxu1 %v5891_v0  ;;  %1159 = vmatpush1.msra.mxu0 %v737_v50  ;;  %v924_v50 = vld [vmem:[#allocation11 + $0x788] sm:$0xff] }
 0x199   :  { %623 = vmatpush1.msra.mxu1 %v389_v51  ;;  %1160 = vmatprep.subr.mxu0 %v732_v52  ;;  %v822_v51 = vld [vmem:[#allocation11 + $0x458] sm:$0xff]  ;;  %v923_v52 = vld [vmem:[#allocation11 + $0x780] sm:$0xff] }
 0x19a   :  { %624 = vmatprep.subr.mxu1 %v5891_v0  ;;  %1161 = vmatpush1.msra.mxu0 %v731_v53  ;;  %v821_v53 = vld [vmem:[#allocation11 + $0x450] sm:$0xff] }
 0x19b   :  { %625 = vmatpush1.msra.mxu1 %v384_v54  ;;  %1162 = vmatprep.subr.mxu0 %v726_v55  ;;  %v918_v54 = vld [vmem:[#allocation11 + $0x758] sm:$0xff]  ;;  %v816_v55 = vld [vmem:[#allocation11 + $0x428] sm:$0xff] }
 0x19c   :  { %626 = vmatprep.subr.mxu1 %v5891_v0  ;;  %1163 = vmatpush1.msra.mxu0 %v725_v56  ;;  %v917_v56 = vld [vmem:[#allocation11 + $0x750] sm:$0xff] }
 0x19d   :  { %627 = vmatpush1.msra.mxu1 %v379_v57  ;;  %1164 = vmatprep.subr.mxu0 %v720_v58  ;;  %v815_v57 = vld [vmem:[#allocation11 + $0x420] sm:$0xff]  ;;  %v912_v58 = vld [vmem:[#allocation11 + $0x728] sm:$0xff] }
 0x19e   :  { %628 = vmatprep.subr.mxu1 %v5891_v0  ;;  %1165 = vmatpush1.msra.mxu0 %v719_v59  ;;  %v810_v59 = vld [vmem:[#allocation11 + $0x3f8] sm:$0xff] }
 0x19f   :  { %629 = vmatpush1.msra.mxu1 %v374_v60  ;;  %1166 = vmatprep.subr.mxu0 %v714_v61  ;;  %v911_v60 = vld [vmem:[#allocation11 + $0x720] sm:$0xff]  ;;  %v809_v61 = vld [vmem:[#allocation11 + $0x3f0] sm:$0xff] }
 0x1a0   :  { %630 = vmatprep.subr.mxu1 %v5891_v0  ;;  %1167 = vmatpush1.msra.mxu0 %v713_v62  ;;  %v906_v62 = vld [vmem:[#allocation11 + $0x6f8] sm:$0xff] }
 0x1a1   :  { %631 = vmatpush1.msra.mxu1 %v369_v63  ;;  %1168 = vmatprep.subr.mxu0 %v708_v1  ;;  %v804_v63 = vld [vmem:[#allocation11 + $0x3c8] sm:$0xff]  ;;  %v905_v1 = vld [vmem:[#allocation11 + $0x6f0] sm:$0xff] }
 0x1a2   :  { %632 = vmatprep.subr.mxu1 %v5891_v0  ;;  %1169 = vmatpush1.msra.mxu0 %v707_v2  ;;  %v803_v2 = vld [vmem:[#allocation11 + $0x3c0] sm:$0xff] }
 0x1a3   :  { %633 = vmatpush1.msra.mxu1 %v364_v3  ;;  %1170 = vmatprep.subr.mxu0 %v702_v4  ;;  %v900_v3 = vld [vmem:[#allocation11 + $0x6c8] sm:$0xff]  ;;  %v899_v4 = vld [vmem:[#allocation11 + $0x6c0] sm:$0xff] }
 0x1a4   :  { %634 = vmatprep.subr.mxu1 %v5891_v0  ;;  %1171 = vmatpush1.msra.mxu0 %v701_v5  ;;  %v894_v5 = vld [vmem:[#allocation11 + $0x698] sm:$0xff] }
 0x1a5   :  { %635 = vmatpush1.msra.mxu1 %v359_v6  ;;  %1172 = vmatprep.subr.mxu0 %v696_v7  ;;  %v893_v6 = vld [vmem:[#allocation11 + $0x690] sm:$0xff]  ;;  %v888_v7 = vld [vmem:[#allocation11 + $0x668] sm:$0xff] }
 0x1a6   :  { %636 = vmatprep.subr.mxu1 %v5891_v0  ;;  %1173 = vmatpush1.msra.mxu0 %v695_v8  ;;  %v887_v8 = vld [vmem:[#allocation11 + $0x660] sm:$0xff] }
 0x1a7   :  { %637 = vmatpush1.msra.mxu1 %v354_v9  ;;  %1174 = vmatprep.subr.mxu0 %v690_v10  ;;  %v882_v9 = vld [vmem:[#allocation11 + $0x638] sm:$0xff]  ;;  %v881_v10 = vld [vmem:[#allocation11 + $0x630] sm:$0xff] }
 0x1a8   :  { %638 = vmatprep.subr.mxu1 %v5891_v0  ;;  %1175 = vmatpush1.msra.mxu0 %v689_v11  ;;  %v876_v11 = vld [vmem:[#allocation11 + $0x608] sm:$0xff] }
 0x1a9   :  { %639 = vmatpush1.msra.mxu1 %v349_v12  ;;  %1176 = vmatprep.subr.mxu0 %v684_v13  ;;  %v875_v12 = vld [vmem:[#allocation11 + $0x600] sm:$0xff]  ;;  %v798_v13 = vld [vmem:[#allocation11 + $0x398] sm:$0xff] }
 0x1aa   :  { %668 = vmatprep.subr.mxu1 %v5891_v0  ;;  %1177 = vmatpush1.msra.mxu0 %v683_v14  ;;  %v1062_v14 = vld [vmem:[#allocation11 + $0xbd8] sm:$0xff] }
 0x1ab   :  { %669 = vmatpush2.msra.mxu1 %v434_v15  ;;  %1178 = vmatprep.subr.mxu0 %v870_v16  ;;  %v797_v15 = vld [vmem:[#allocation11 + $0x390] sm:$0xff] }
 0x1ac   :  { %670 = vmatprep.subr.mxu1 %v5891_v0  ;;  %1179 = vmatpush2.msra.mxu0 %v869_v17  ;;  %v1061_v16 = vld [vmem:[#allocation11 + $0xbd0] sm:$0xff]  ;;  %v792_v17 = vld [vmem:[#allocation11 + $0x368] sm:$0xff] }
 0x1ad   :  { %671 = vmatpush2.msra.mxu1 %v429_v18  ;;  %1180 = vmatprep.subr.mxu0 %v864_v21  ;;  %v1056_v18 = vld [vmem:[#allocation11 + $0xba8] sm:$0xff]  ;;  %v791_v21 = vld [vmem:[#allocation11 + $0x360] sm:$0xff] }
 0x1ae   :  { %673 = vmatmul.mubr.f32.vlgmr.msra.gmra.mxu1 %v4840_v30  ;;  %1217 = vmatprep.subr.mxu1 %v966_v23  ;;  %v942_v30 = vld [vmem:[#allocation11 + $0x818] sm:$0xff]  ;;  %v1055_v23 = vld [vmem:[#allocation11 + $0xba0] sm:$0xff] }
 0x1af   :  { %1218 = vmatpush1.msra.mxu1 %v965_v24  ;;  %1181 = vmatpush2.msra.mxu0 %v863_v25  ;;  %v786_v24 = vld [vmem:[#allocation11 + $0x338] sm:$0xff] }
 0x1b0   :  { %1219 = vmatprep.subr.mxu1 %v960_v26  ;;  %1182 = vmatprep.subr.mxu0 %v858_v27  ;;  %v1050_v25 = vld [vmem:[#allocation11 + $0xb78] sm:$0xff]  ;;  %v785_v26 = vld [vmem:[#allocation11 + $0x330] sm:$0xff]  ;;  %v780_v27 = vld [vmem:[#allocation11 + $0x308] sm:$0xff] }
 0x1b1   :  { %1220 = vmatpush1.msra.mxu1 %v959_v28  ;;  %1183 = vmatpush2.msra.mxu0 %v857_v29  ;;  %v1049_v28 = vld [vmem:[#allocation11 + $0xb70] sm:$0xff]  ;;  %v779_v29 = vld [vmem:[#allocation11 + $0x300] sm:$0xff] }
 0x1b2   :  { %1221 = vmatprep.subr.mxu1 %v954_v31  ;;  %1184 = vmatprep.subr.mxu0 %v852_v32  ;;  %v1044_v31 = vld [vmem:[#allocation11 + $0xb48] sm:$0xff]  ;;  %v1043_v32 = vld [vmem:[#allocation11 + $0xb40] sm:$0xff] }
 0x1b3   :  { %1222 = vmatpush1.msra.mxu1 %v953_v33  ;;  %1185 = vmatpush2.msra.mxu0 %v851_v34  ;;  %v1038_v33 = vld [vmem:[#allocation11 + $0xb18] sm:$0xff]  ;;  %v1037_v34 = vld [vmem:[#allocation11 + $0xb10] sm:$0xff] }
 0x1b4   :  { %1223 = vmatprep.subr.mxu1 %v948_v35  ;;  %1186 = vmatprep.subr.mxu0 %v846_v36  ;;  %v1032_v35 = vld [vmem:[#allocation11 + $0xae8] sm:$0xff]  ;;  %v1031_v36 = vld [vmem:[#allocation11 + $0xae0] sm:$0xff] }
 0x1b5   :  { %1224 = vmatpush1.msra.mxu1 %v947_v37  ;;  %1187 = vmatpush2.msra.mxu0 %v845_v38  ;;  %v1026_v37 = vld [vmem:[#allocation11 + $0xab8] sm:$0xff]  ;;  %v1025_v38 = vld [vmem:[#allocation11 + $0xab0] sm:$0xff] }
 0x1b6   :  { %1225 = vmatprep.subr.mxu1 %v942_v30  ;;  %1188 = vmatprep.subr.mxu0 %v840_v39  ;;  %v1020_v30 = vld [vmem:[#allocation11 + $0xa88] sm:$0xff]  ;;  %v1019_v39 = vld [vmem:[#allocation11 + $0xa80] sm:$0xff] }
 0x1b7   :  { %1226 = vmatpush1.msra.mxu1 %v941_v40  ;;  %1189 = vmatpush2.msra.mxu0 %v839_v41  ;;  %v1014_v40 = vld [vmem:[#allocation11 + $0xa58] sm:$0xff]  ;;  %v1013_v41 = vld [vmem:[#allocation11 + $0xa50] sm:$0xff] }
 0x1b8   :  { %1227 = vmatprep.subr.mxu1 %v936_v42  ;;  %1190 = vmatprep.subr.mxu0 %v834_v43  ;;  %v1008_v42 = vld [vmem:[#allocation11 + $0xa28] sm:$0xff]  ;;  %v1007_v43 = vld [vmem:[#allocation11 + $0xa20] sm:$0xff] }
 0x1b9   :  { %1228 = vmatpush1.msra.mxu1 %v935_v44  ;;  %1191 = vmatpush2.msra.mxu0 %v833_v45  ;;  %v1002_v44 = vld [vmem:[#allocation11 + $0x9f8] sm:$0xff]  ;;  %v1001_v45 = vld [vmem:[#allocation11 + $0x9f0] sm:$0xff] }
 0x1ba   :  { %1229 = vmatprep.subr.mxu1 %v930_v46  ;;  %1192 = vmatprep.subr.mxu0 %v828_v47  ;;  %v996_v46 = vld [vmem:[#allocation11 + $0x9c8] sm:$0xff]  ;;  %v995_v47 = vld [vmem:[#allocation11 + $0x9c0] sm:$0xff] }
 0x1bb   :  { %1230 = vmatpush1.msra.mxu1 %v929_v48  ;;  %1193 = vmatpush2.msra.mxu0 %v827_v49  ;;  %v990_v48 = vld [vmem:[#allocation11 + $0x998] sm:$0xff]  ;;  %v989_v49 = vld [vmem:[#allocation11 + $0x990] sm:$0xff] }
 0x1bc   :  { %1231 = vmatprep.subr.mxu1 %v924_v50  ;;  %1194 = vmatprep.subr.mxu0 %v822_v51  ;;  %v984_v50 = vld [vmem:[#allocation11 + $0x968] sm:$0xff]  ;;  %v983_v51 = vld [vmem:[#allocation11 + $0x960] sm:$0xff] }
 0x1bd   :  { %1232 = vmatpush1.msra.mxu1 %v923_v52  ;;  %1195 = vmatpush2.msra.mxu0 %v821_v53  ;;  %v978_v52 = vld [vmem:[#allocation11 + $0x938] sm:$0xff]  ;;  %v977_v53 = vld [vmem:[#allocation11 + $0x930] sm:$0xff] }
 0x1be   :  { %1233 = vmatprep.subr.mxu1 %v918_v54  ;;  %1196 = vmatprep.subr.mxu0 %v816_v55  ;;  %v972_v54 = vld [vmem:[#allocation11 + $0x908] sm:$0xff]  ;;  %v1086_v55 = vld [vmem:[#allocation11 + $0xc98] sm:$0xf] }
 0x1bf   :  { %1234 = vmatpush1.msra.mxu1 %v917_v56  ;;  %1197 = vmatpush2.msra.mxu0 %v815_v57  ;;  %v971_v56 = vld [vmem:[#allocation11 + $0x900] sm:$0xff]  ;;  %v968_v57 = vld [vmem:[#allocation11 + $0x8e8] sm:$0xff] }
 0x1c0   :  { %1235 = vmatprep.subr.mxu1 %v912_v58  ;;  %1198 = vmatprep.subr.mxu0 %v810_v59  ;;  %v4864_v58 = vsub.s32 2, %v4830_v19  ;;  %v4866_v59 = vld [vmem:[#allocation10] sm:$0x1f] }
 0x1c1   :  { %1236 = vmatpush1.msra.mxu1 %v911_v60  ;;  %1199 = vmatpush2.msra.mxu0 %v809_v61  ;;  %v4869_v60 = vsub.s32 3, %v4830_v19  ;;  %v440_v61 = vrot.slane %v4866_v59, %v4833_v20 }
 0x1c2   :  { %1237 = vmatprep.subr.mxu1 %v906_v62  ;;  %1200 = vmatprep.subr.mxu0 %v804_v63  ;;  %v448_v62 = vrot.slane %v4866_v59, %v4864_v58  ;;  %v444_v63 = vrot.slane %v4866_v59, %v4836_v22 }
 0x1c3   :  { %1238 = vmatpush1.msra.mxu1 %v905_v1  ;;  %1201 = vmatpush2.msra.mxu0 %v803_v2  ;;  %5953 = vst [vmem:[#allocation39_spill] sm:$0xff] %v4869_v60  ;;  %v452_v1 = vrot.slane %v4866_v59, %v4869_v60 }
 0x1c4   :  { %1239 = vmatprep.subr.mxu1 %v900_v3  ;;  %1202 = vmatprep.subr.mxu0 %v798_v13 }
 0x1c5   :  { %1240 = vmatpush1.msra.mxu1 %v899_v4  ;;  %1203 = vmatpush2.msra.mxu0 %v797_v15  ;;  %v962_v15 = vld [vmem:[#allocation11 + $0x8b8] sm:$0xff] }
 0x1c6   :  { %1241 = vmatprep.subr.mxu1 %v894_v5  ;;  %1204 = vmatprep.subr.mxu0 %v792_v17  ;;  %v961_v17 = vld [vmem:[#allocation11 + $0x8b0] sm:$0xff] }
 0x1c7   :  { %1242 = vmatpush1.msra.mxu1 %v893_v6  ;;  %1205 = vmatpush2.msra.mxu0 %v791_v21  ;;  %v956_v21 = vld [vmem:[#allocation11 + $0x888] sm:$0xff] }
 0x1c8   :  { %1243 = vmatprep.subr.mxu1 %v888_v7  ;;  %1206 = vmatprep.subr.mxu0 %v786_v24  ;;  %v955_v24 = vld [vmem:[#allocation11 + $0x880] sm:$0xff] }
 0x1c9   :  { %1244 = vmatpush1.msra.mxu1 %v887_v8  ;;  %1207 = vmatpush2.msra.mxu0 %v785_v26  ;;  %v950_v26 = vld [vmem:[#allocation11 + $0x858] sm:$0xff] }
 0x1ca   :  { %1245 = vmatprep.subr.mxu1 %v882_v9  ;;  %1208 = vmatprep.subr.mxu0 %v780_v27  ;;  %v1073_v27 = vld [vmem:[#allocation11 + $0xc30] sm:$0xff] }
 0x1cb   :  { %1246 = vmatpush1.msra.mxu1 %v881_v10  ;;  %1209 = vmatpush2.msra.mxu0 %v779_v29  ;;  %v1068_v29 = vld [vmem:[#allocation11 + $0xc08] sm:$0xff] }
 0x1cc   :  { %1247 = vmatprep.subr.mxu1 %v876_v11  ;;  %4102 = vmatprep.subr.msk.mxu0 %vm1127_vm3, %v1086_v55  ;;  %v883_v55 = vld [vmem:[#allocation11 + $0x640] sm:$0xff] }
 0x1cd   :  { %1248 = vmatpush1.msra.mxu1 %v875_v12 }
 0x1ce   :  { %1249 = vmatprep.subr.mxu1 %v1062_v14  ;;  %v967_v14 = vld [vmem:[#allocation11 + $0x8e0] sm:$0xff] }
 0x1cf   :  { %1250 = vmatpush2.msra.mxu1 %v1061_v16  ;;  %v1085_v16 = vld [vmem:[#allocation11 + $0xc90] sm:$0xf] }
 0x1d0   :  { %1251 = vmatprep.subr.mxu1 %v1056_v18  ;;  %v1080_v18 = vld [vmem:[#allocation11 + $0xc68] sm:$0xff] }
 0x1d1   :  { %1252 = vmatpush2.msra.mxu1 %v1055_v23  ;;  %v1079_v23 = vld [vmem:[#allocation11 + $0xc60] sm:$0xff] }
 0x1d2   :  { %1253 = vmatprep.subr.mxu1 %v1050_v25  ;;  %v1074_v25 = vld [vmem:[#allocation11 + $0xc38] sm:$0xff] }
 0x1d3   :  { %1254 = vmatpush2.msra.mxu1 %v1049_v28  ;;  %v949_v28 = vld [vmem:[#allocation11 + $0x850] sm:$0xff] }
 0x1d4   :  { %1255 = vmatprep.subr.mxu1 %v1044_v31  ;;  %v944_v31 = vld [vmem:[#allocation11 + $0x828] sm:$0xff] }
 0x1d5   :  { %1256 = vmatpush2.msra.mxu1 %v1043_v32  ;;  %v1067_v32 = vld [vmem:[#allocation11 + $0xc00] sm:$0xff] }
 0x1d6   :  { %1257 = vmatprep.subr.mxu1 %v1038_v33  ;;  %v943_v33 = vld [vmem:[#allocation11 + $0x820] sm:$0xff] }
 0x1d7   :  { %1258 = vmatpush2.msra.mxu1 %v1037_v34  ;;  %v938_v34 = vld [vmem:[#allocation11 + $0x7f8] sm:$0xff] }
 0x1d8   :  { %1259 = vmatprep.subr.mxu1 %v1032_v35  ;;  %v776_v35 = vld [vmem:[#allocation11 + $0x2e8] sm:$0xff] }
 0x1d9   :  { %1260 = vmatpush2.msra.mxu1 %v1031_v36  ;;  %v937_v36 = vld [vmem:[#allocation11 + $0x7f0] sm:$0xff] }
 0x1da   :  { %1261 = vmatprep.subr.mxu1 %v1026_v37  ;;  %v932_v37 = vld [vmem:[#allocation11 + $0x7c8] sm:$0xff] }
 0x1db   :  { %1262 = vmatpush2.msra.mxu1 %v1025_v38  ;;  %v931_v38 = vld [vmem:[#allocation11 + $0x7c0] sm:$0xff] }
 0x1dc   :  { %1263 = vmatprep.subr.mxu1 %v1020_v30  ;;  %v926_v30 = vld [vmem:[#allocation11 + $0x798] sm:$0xff] }
 0x1dd   :  { %1264 = vmatpush2.msra.mxu1 %v1019_v39  ;;  %v925_v39 = vld [vmem:[#allocation11 + $0x790] sm:$0xff] }
 0x1de   :  { %1265 = vmatprep.subr.mxu1 %v1014_v40  ;;  %v920_v40 = vld [vmem:[#allocation11 + $0x768] sm:$0xff] }
 0x1df   :  { %1266 = vmatpush2.msra.mxu1 %v1013_v41  ;;  %v919_v41 = vld [vmem:[#allocation11 + $0x760] sm:$0xff] }
 0x1e0   :  { %1267 = vmatprep.subr.mxu1 %v1008_v42  ;;  %v914_v42 = vld [vmem:[#allocation11 + $0x738] sm:$0xff] }
 0x1e1   :  { %1268 = vmatpush2.msra.mxu1 %v1007_v43  ;;  %v913_v43 = vld [vmem:[#allocation11 + $0x730] sm:$0xff] }
 0x1e2   :  { %1269 = vmatprep.subr.mxu1 %v1002_v44  ;;  %v908_v44 = vld [vmem:[#allocation11 + $0x708] sm:$0xff] }
 0x1e3   :  { %1270 = vmatpush2.msra.mxu1 %v1001_v45  ;;  %v907_v45 = vld [vmem:[#allocation11 + $0x700] sm:$0xff] }
 0x1e4   :  { %1271 = vmatprep.subr.mxu1 %v996_v46  ;;  %v902_v46 = vld [vmem:[#allocation11 + $0x6d8] sm:$0xff] }
 0x1e5   :  { %1272 = vmatpush2.msra.mxu1 %v995_v47  ;;  %v901_v47 = vld [vmem:[#allocation11 + $0x6d0] sm:$0xff] }
 0x1e6   :  { %1273 = vmatprep.subr.mxu1 %v990_v48  ;;  %v896_v48 = vld [vmem:[#allocation11 + $0x6a8] sm:$0xff] }
 0x1e7   :  { %1274 = vmatpush2.msra.mxu1 %v989_v49  ;;  %v5890_v49 = vsub.s32 4, %v4830_v19 }
 0x1e8   :  { %1275 = vmatprep.subr.mxu1 %v984_v50  ;;  %v895_v50 = vld [vmem:[#allocation11 + $0x6a0] sm:$0xff] }
 0x1e9   :  { %1276 = vmatpush2.msra.mxu1 %v983_v51  ;;  %v890_v51 = vld [vmem:[#allocation11 + $0x678] sm:$0xff] }
 0x1ea   :  { %1277 = vmatprep.subr.mxu1 %v978_v52  ;;  %v889_v52 = vld [vmem:[#allocation11 + $0x670] sm:$0xff] }
 0x1eb   :  { %1278 = vmatpush2.msra.mxu1 %v977_v53  ;;  %v456_v53 = vrot.slane %v4866_v59, %v5890_v49  ;;  %v770_v59 = vld [vmem:[#allocation11 + $0x2b8] sm:$0xff]  ;;  %v5265_v49 = vld [vmem:[%s5878_s7 + $0x90] sm:$0xff] }
 0x1ec   :  { %1279 = vmatprep.subr.mxu1 %v972_v54  ;;  %v884_v54 = vld [vmem:[#allocation11 + $0x648] sm:$0xff] }
 0x1ed   :  { %1280 = vmatpush2.msra.mxu1 %v971_v56  ;;  %v878_v56 = vld [vmem:[#allocation11 + $0x618] sm:$0xff] }
 0x1ee   :  { %1430 = vmatprep.subr.mxu1 %v968_v57 }
 0x24a   :  { %v532_v2 = vpop.f32.mrf.mxu1  ;;  %v603_v3 = vpop.f32.mrf.mxu0 }
 0x24b   :  { %v533_v4 = vadd.f32 %v532_v2, %v440_v61  ;;  %v604_v5 = vadd.f32 %v603_v3, %v448_v62  ;;  %v877_v61 = vld [vmem:[#allocation11 + $0x610] sm:$0xff]  ;;  %v1063_v2 = vld [vmem:[#allocation11 + $0xbe0] sm:$0xff] }
 0x24c   :  { %v534_v6 = vpop.f32.mrf.mxu1  ;;  %v605_v7 = vpop.f32.mrf.mxu0 }
 0x24d   :  { %v535_v8 = vadd.f32 %v534_v6, %v444_v63  ;;  %v606_v9 = vadd.f32 %v605_v7, %v452_v1  ;;  %v4883_v12 = vmax.f32 %v533_v4, 0.0  ;;  %v4885_v13 = vmax.f32 %v604_v5, 0.0  ;;  %v1064_v63 = vld [vmem:[#allocation11 + $0xbe8] sm:$0xff]  ;;  %v775_v4 = vld [vmem:[#allocation11 + $0x2e0] sm:$0xff]  ;;  %v1058_v5 = vld [vmem:[#allocation11 + $0xbb8] sm:$0xff] }
 0x24e   :  { %v769_v6 = vld [vmem:[#allocation11 + $0x2b0] sm:$0xff] }
 0x24f   :  { %v4879_v10 = vmax.f32 %v535_v8, 0.0  ;;  %v4881_v11 = vmax.f32 %v606_v9, 0.0  ;;  %v1057_v7 = vld [vmem:[#allocation11 + $0xbb0] sm:$0xff]  ;;  %v764_v8 = vld [vmem:[#allocation11 + $0x288] sm:$0xff] }
 0x250   :  { %v1052_v9 = vld [vmem:[#allocation11 + $0xb88] sm:$0xff] }
 0x251   :  { %1210 = vmatprep.mubr.f32.mxu0 %v4879_v10  ;;  %1281 = vmatprep.mubr.f32.mxu1 %v4881_v11 }
 0x252   :  { %1211 = vmatmul.mubr.f32.vlgmr.msra.gmra.mxu0 %v4883_v12  ;;  %1282 = vmatmul.mubr.f32.vlgmr.msra.gmra.mxu1 %v4885_v13 }
 0x253   :  { %1431 = vmatpush1.msra.mxu1 %v967_v14  ;;  %1494 = vmatprep.mubr.f32.mxu1 %v4881_v11  ;;  %v763_v14 = vld [vmem:[#allocation11 + $0x280] sm:$0xff] }
 0x254   :  { %1432 = vmatprep.subr.mxu1 %v962_v15  ;;  %4103 = vmatpush1.msk.msra.mxu0 %vm1127_vm3, %v1085_v16  ;;  %v1051_v15 = vld [vmem:[#allocation11 + $0xb80] sm:$0xff]  ;;  %v758_v16 = vld [vmem:[#allocation11 + $0x258] sm:$0xff] }
 0x255   :  { %1433 = vmatpush1.msra.mxu1 %v961_v17  ;;  %1314 = vmatprep.subr.mxu0 %v1080_v18  ;;  %v1046_v17 = vld [vmem:[#allocation11 + $0xb58] sm:$0xff]  ;;  %v757_v18 = vld [vmem:[#allocation11 + $0x250] sm:$0xff] }
 0x256   :  { %1434 = vmatprep.subr.mxu1 %v956_v21  ;;  %1315 = vmatpush1.msra.mxu0 %v1079_v23  ;;  %v1045_v21 = vld [vmem:[#allocation11 + $0xb50] sm:$0xff]  ;;  %v752_v23 = vld [vmem:[#allocation11 + $0x228] sm:$0xff] }
 0x257   :  { %1435 = vmatpush1.msra.mxu1 %v955_v24  ;;  %1316 = vmatprep.subr.mxu0 %v1074_v25  ;;  %v1040_v24 = vld [vmem:[#allocation11 + $0xb28] sm:$0xff]  ;;  %v751_v25 = vld [vmem:[#allocation11 + $0x220] sm:$0xff] }
 0x258   :  { %1436 = vmatprep.subr.mxu1 %v950_v26  ;;  %1317 = vmatpush1.msra.mxu0 %v1073_v27  ;;  %v1039_v26 = vld [vmem:[#allocation11 + $0xb20] sm:$0xff]  ;;  %v746_v27 = vld [vmem:[#allocation11 + $0x1f8] sm:$0xff] }
 0x259   :  { %1437 = vmatpush1.msra.mxu1 %v949_v28  ;;  %1318 = vmatprep.subr.mxu0 %v1068_v29  ;;  %v1034_v28 = vld [vmem:[#allocation11 + $0xaf8] sm:$0xff]  ;;  %v745_v29 = vld [vmem:[#allocation11 + $0x1f0] sm:$0xff] }
 0x25a   :  { %1438 = vmatprep.subr.mxu1 %v944_v31  ;;  %1319 = vmatpush1.msra.mxu0 %v1067_v32  ;;  %v1033_v31 = vld [vmem:[#allocation11 + $0xaf0] sm:$0xff]  ;;  %v740_v32 = vld [vmem:[#allocation11 + $0x1c8] sm:$0xff] }
 0x25b   :  { %1439 = vmatpush1.msra.mxu1 %v943_v33  ;;  %1352 = vmatprep.mubr.f32.mxu0 %v5891_v0  ;;  %v1028_v33 = vld [vmem:[#allocation11 + $0xac8] sm:$0xff] }
 0x25c   :  { %1440 = vmatprep.subr.mxu1 %v938_v34  ;;  %1359 = vmatprep.subr.mxu0 %v776_v35  ;;  %v739_v34 = vld [vmem:[#allocation11 + $0x1c0] sm:$0xff] }
 0x25d   :  { %1441 = vmatpush1.msra.mxu1 %v937_v36  ;;  %v1027_v35 = vld [vmem:[#allocation11 + $0xac0] sm:$0xff]  ;;  %v734_v36 = vld [vmem:[#allocation11 + $0x198] sm:$0xff] }
 0x25e   :  { %1442 = vmatprep.subr.mxu1 %v932_v37  ;;  %v1022_v37 = vld [vmem:[#allocation11 + $0xa98] sm:$0xff] }
 0x25f   :  { %1443 = vmatpush1.msra.mxu1 %v931_v38  ;;  %v733_v38 = vld [vmem:[#allocation11 + $0x190] sm:$0xff] }
 0x260   :  { %1444 = vmatprep.subr.mxu1 %v926_v30  ;;  %v1021_v30 = vld [vmem:[#allocation11 + $0xa90] sm:$0xff] }
 0x261   :  { %1445 = vmatpush1.msra.mxu1 %v925_v39  ;;  %v728_v39 = vld [vmem:[#allocation11 + $0x168] sm:$0xff] }
 0x262   :  { %1446 = vmatprep.subr.mxu1 %v920_v40  ;;  %v1016_v40 = vld [vmem:[#allocation11 + $0xa68] sm:$0xff] }
 0x263   :  { %1447 = vmatpush1.msra.mxu1 %v919_v41  ;;  %v727_v41 = vld [vmem:[#allocation11 + $0x160] sm:$0xff] }
 0x264   :  { %1448 = vmatprep.subr.mxu1 %v914_v42  ;;  %v1015_v42 = vld [vmem:[#allocation11 + $0xa60] sm:$0xff] }
 0x265   :  { %1449 = vmatpush1.msra.mxu1 %v913_v43  ;;  %v722_v43 = vld [vmem:[#allocation11 + $0x138] sm:$0xff] }
 0x266   :  { %1450 = vmatprep.subr.mxu1 %v908_v44  ;;  %v1010_v44 = vld [vmem:[#allocation11 + $0xa38] sm:$0xff] }
 0x267   :  { %1451 = vmatpush1.msra.mxu1 %v907_v45  ;;  %v721_v45 = vld [vmem:[#allocation11 + $0x130] sm:$0xff] }
 0x268   :  { %1452 = vmatprep.subr.mxu1 %v902_v46  ;;  %v1009_v46 = vld [vmem:[#allocation11 + $0xa30] sm:$0xff] }
 0x269   :  { %1453 = vmatpush1.msra.mxu1 %v901_v47  ;;  %v716_v47 = vld [vmem:[#allocation11 + $0x108] sm:$0xff] }
 0x26a   :  { %1454 = vmatprep.subr.mxu1 %v896_v48  ;;  %v1004_v48 = vld [vmem:[#allocation11 + $0xa08] sm:$0xff] }
 0x26b   :  { %1455 = vmatpush1.msra.mxu1 %v895_v50  ;;  %v715_v50 = vld [vmem:[#allocation11 + $0x100] sm:$0xff] }
 0x26c   :  { %1456 = vmatprep.subr.mxu1 %v890_v51  ;;  %v1003_v51 = vld [vmem:[#allocation11 + $0xa00] sm:$0xff] }
 0x26d   :  { %1457 = vmatpush1.msra.mxu1 %v889_v52  ;;  %v710_v52 = vld [vmem:[#allocation11 + $0xd8] sm:$0xff] }
 0x26e   :  { %v674_v57 = vpop.f32.mrf.mxu1  ;;  %1458 = vmatprep.subr.mxu1 %v884_v54  ;;  %v709_v54 = vld [vmem:[#allocation11 + $0xd0] sm:$0xff] }
 0x26f   :  { %v675_v62 = vadd.f32 %v674_v57, %v456_v53  ;;  %1459 = vmatpush1.msra.mxu1 %v883_v55  ;;  %v998_v53 = vld [vmem:[#allocation11 + $0x9d8] sm:$0xff]  ;;  %v997_v55 = vld [vmem:[#allocation11 + $0x9d0] sm:$0xff]  ;;  %v992_v57 = vld [vmem:[#allocation11 + $0x9a8] sm:$0xff] }
 0x270   :  { %v676_v1 = vpop.f32.mrf.mxu1  ;;  %1460 = vmatprep.subr.mxu1 %v878_v56  ;;  %v704_v56 = vld [vmem:[#allocation11 + $0xa8] sm:$0xff] }
 0x271   :  { %v4898_v3 = vmax.f32 %v675_v62, 0.0  ;;  %1461 = vmatpush1.msra.mxu1 %v877_v61  ;;  %v703_v61 = vld [vmem:[#allocation11 + $0xa0] sm:$0xff]  ;;  %v986_v1 = vld [vmem:[#allocation11 + $0x978] sm:$0xff] }
 0x272   :  { %1462 = vmatprep.subr.mxu1 %v1064_v63  ;;  %v991_v62 = vld [vmem:[#allocation11 + $0x9a0] sm:$0xff]  ;;  %v698_v63 = vld [vmem:[#allocation11 + $0x78] sm:$0xff] }
 0x273   :  { %4104 = vmatmul.mubr.msk.f32.vlgmr.msra.gmra.mxu0 %vm1123_vm4, %v4898_v3  ;;  %1463 = vmatpush2.msra.mxu1 %v1063_v2  ;;  %v697_v2 = vld [vmem:[#allocation11 + $0x70] sm:$0xff] }
 0x274   :  { %1360 = vmatpush1.msra.mxu0 %v775_v4  ;;  %1423 = vmatprep.mubr.f32.mxu0 %v4879_v10  ;;  %v985_v4 = vld [vmem:[#allocation11 + $0x970] sm:$0xff] }
 0x275   :  { %1361 = vmatprep.subr.mxu0 %v770_v59  ;;  %1464 = vmatprep.subr.mxu1 %v1058_v5  ;;  %v692_v59 = vld [vmem:[#allocation11 + $0x48] sm:$0xff] }
 0x276   :  { %1362 = vmatpush1.msra.mxu0 %v769_v6  ;;  %1465 = vmatpush2.msra.mxu1 %v1057_v7  ;;  %v980_v5 = vld [vmem:[#allocation11 + $0x948] sm:$0xff]  ;;  %v691_v6 = vld [vmem:[#allocation11 + $0x40] sm:$0xff] }
 0x277   :  { %1363 = vmatprep.subr.mxu0 %v764_v8  ;;  %1466 = vmatprep.subr.mxu1 %v1052_v9  ;;  %v979_v7 = vld [vmem:[#allocation11 + $0x940] sm:$0xff]  ;;  %v686_v8 = vld [vmem:[#allocation11 + $0x18] sm:$0xff] }
 0x278   :  { %1364 = vmatpush1.msra.mxu0 %v763_v14  ;;  %1467 = vmatpush2.msra.mxu1 %v1051_v15  ;;  %v974_v9 = vld [vmem:[#allocation11 + $0x918] sm:$0xff]  ;;  %v685_v14 = vld [vmem:[#allocation11 + $0x10] sm:$0xff] }
 0x279   :  { %1365 = vmatprep.subr.mxu0 %v758_v16  ;;  %1468 = vmatprep.subr.mxu1 %v1046_v17  ;;  %v973_v15 = vld [vmem:[#allocation11 + $0x910] sm:$0xff]  ;;  %v872_v16 = vld [vmem:[#allocation11 + $0x5e8] sm:$0xff]  ;;  %v970_v17 = vld [vmem:[#allocation11 + $0x8f8] sm:$0xff] }
 0x27a   :  { %1366 = vmatpush1.msra.mxu0 %v757_v18  ;;  %1469 = vmatpush2.msra.mxu1 %v1045_v21  ;;  %v871_v18 = vld [vmem:[#allocation11 + $0x5e0] sm:$0xff]  ;;  %v969_v21 = vld [vmem:[#allocation11 + $0x8f0] sm:$0xff] }
 0x27b   :  { %1367 = vmatprep.subr.mxu0 %v752_v23  ;;  %1470 = vmatprep.subr.mxu1 %v1040_v24  ;;  %v866_v23 = vld [vmem:[#allocation11 + $0x5b8] sm:$0xff]  ;;  %v964_v24 = vld [vmem:[#allocation11 + $0x8c8] sm:$0xff] }
 0x27c   :  { %1368 = vmatpush1.msra.mxu0 %v751_v25  ;;  %1471 = vmatpush2.msra.mxu1 %v1039_v26  ;;  %v865_v25 = vld [vmem:[#allocation11 + $0x5b0] sm:$0xff]  ;;  %v963_v26 = vld [vmem:[#allocation11 + $0x8c0] sm:$0xff] }
 0x27d   :  { %1369 = vmatprep.subr.mxu0 %v746_v27  ;;  %1472 = vmatprep.subr.mxu1 %v1034_v28  ;;  %v860_v27 = vld [vmem:[#allocation11 + $0x588] sm:$0xff]  ;;  %v958_v28 = vld [vmem:[#allocation11 + $0x898] sm:$0xff] }
 0x27e   :  { %1370 = vmatpush1.msra.mxu0 %v745_v29  ;;  %1473 = vmatpush2.msra.mxu1 %v1033_v31  ;;  %v859_v29 = vld [vmem:[#allocation11 + $0x580] sm:$0xff]  ;;  %v957_v31 = vld [vmem:[#allocation11 + $0x890] sm:$0xff] }
 0x27f   :  { %1371 = vmatprep.subr.mxu0 %v740_v32  ;;  %1474 = vmatprep.subr.mxu1 %v1028_v33  ;;  %v854_v32 = vld [vmem:[#allocation11 + $0x558] sm:$0xff]  ;;  %v952_v33 = vld [vmem:[#allocation11 + $0x868] sm:$0xff] }
 0x280   :  { %1372 = vmatpush1.msra.mxu0 %v739_v34  ;;  %1475 = vmatpush2.msra.mxu1 %v1027_v35  ;;  %v853_v34 = vld [vmem:[#allocation11 + $0x550] sm:$0xff]  ;;  %v951_v35 = vld [vmem:[#allocation11 + $0x860] sm:$0xff] }
 0x281   :  { %1373 = vmatprep.subr.mxu0 %v734_v36  ;;  %1476 = vmatprep.subr.mxu1 %v1022_v37  ;;  %v848_v36 = vld [vmem:[#allocation11 + $0x528] sm:$0xff]  ;;  %v946_v37 = vld [vmem:[#allocation11 + $0x838] sm:$0xff] }
 0x282   :  { %1374 = vmatpush1.msra.mxu0 %v733_v38  ;;  %1477 = vmatpush2.msra.mxu1 %v1021_v30  ;;  %v945_v38 = vld [vmem:[#allocation11 + $0x830] sm:$0xff]  ;;  %v842_v30 = vld [vmem:[#allocation11 + $0x4f8] sm:$0xff] }
 0x283   :  { %1375 = vmatprep.subr.mxu0 %v728_v39  ;;  %1478 = vmatprep.subr.mxu1 %v1016_v40  ;;  %v940_v39 = vld [vmem:[#allocation11 + $0x808] sm:$0xff]  ;;  %v841_v40 = vld [vmem:[#allocation11 + $0x4f0] sm:$0xff] }
 0x284   :  { %1376 = vmatpush1.msra.mxu0 %v727_v41  ;;  %1479 = vmatpush2.msra.mxu1 %v1015_v42  ;;  %v939_v41 = vld [vmem:[#allocation11 + $0x800] sm:$0xff]  ;;  %v836_v42 = vld [vmem:[#allocation11 + $0x4c8] sm:$0xff] }
 0x285   :  { %1377 = vmatprep.subr.mxu0 %v722_v43  ;;  %1480 = vmatprep.subr.mxu1 %v1010_v44  ;;  %v934_v43 = vld [vmem:[#allocation11 + $0x7d8] sm:$0xff]  ;;  %v835_v44 = vld [vmem:[#allocation11 + $0x4c0] sm:$0xff] }
 0x286   :  { %1378 = vmatpush1.msra.mxu0 %v721_v45  ;;  %1481 = vmatpush2.msra.mxu1 %v1009_v46  ;;  %v933_v45 = vld [vmem:[#allocation11 + $0x7d0] sm:$0xff]  ;;  %v830_v46 = vld [vmem:[#allocation11 + $0x498] sm:$0xff] }
 0x287   :  { %1379 = vmatprep.subr.mxu0 %v716_v47  ;;  %1482 = vmatprep.subr.mxu1 %v1004_v48  ;;  %v928_v47 = vld [vmem:[#allocation11 + $0x7a8] sm:$0xff]  ;;  %v829_v48 = vld [vmem:[#allocation11 + $0x490] sm:$0xff] }
 0x288   :  { %1380 = vmatpush1.msra.mxu0 %v715_v50  ;;  %1483 = vmatpush2.msra.mxu1 %v1003_v51  ;;  %v927_v50 = vld [vmem:[#allocation11 + $0x7a0] sm:$0xff]  ;;  %v824_v51 = vld [vmem:[#allocation11 + $0x468] sm:$0xff] }
 0x289   :  { %1381 = vmatprep.subr.mxu0 %v710_v52  ;;  %1484 = vmatprep.subr.mxu1 %v998_v53  ;;  %v922_v52 = vld [vmem:[#allocation11 + $0x778] sm:$0xff]  ;;  %v823_v53 = vld [vmem:[#allocation11 + $0x460] sm:$0xff] }
 0x28a   :  { %1382 = vmatpush1.msra.mxu0 %v709_v54  ;;  %1485 = vmatpush2.msra.mxu1 %v997_v55  ;;  %v921_v54 = vld [vmem:[#allocation11 + $0x770] sm:$0xff]  ;;  %v818_v55 = vld [vmem:[#allocation11 + $0x438] sm:$0xff] }
 0x28b   :  { %1383 = vmatprep.subr.mxu0 %v704_v56  ;;  %1486 = vmatprep.subr.mxu1 %v992_v57  ;;  %v916_v56 = vld [vmem:[#allocation11 + $0x748] sm:$0xff]  ;;  %v817_v57 = vld [vmem:[#allocation11 + $0x430] sm:$0xff] }
 0x28c   :  { %1384 = vmatpush1.msra.mxu0 %v703_v61  ;;  %1487 = vmatpush2.msra.mxu1 %v991_v62  ;;  %v915_v61 = vld [vmem:[#allocation11 + $0x740] sm:$0xff]  ;;  %v812_v62 = vld [vmem:[#allocation11 + $0x408] sm:$0xff] }
 0x28d   :  { %1385 = vmatprep.subr.mxu0 %v698_v63  ;;  %1488 = vmatprep.subr.mxu1 %v986_v1  ;;  %v910_v63 = vld [vmem:[#allocation11 + $0x718] sm:$0xff]  ;;  %v811_v1 = vld [vmem:[#allocation11 + $0x400] sm:$0xff] }
 0x28e   :  { %1386 = vmatpush1.msra.mxu0 %v697_v2  ;;  %1489 = vmatpush2.msra.mxu1 %v985_v4  ;;  %v909_v2 = vld [vmem:[#allocation11 + $0x710] sm:$0xff]  ;;  %v806_v4 = vld [vmem:[#allocation11 + $0x3d8] sm:$0xff] }
 0x28f   :  { %1387 = vmatprep.subr.mxu0 %v692_v59  ;;  %1490 = vmatprep.subr.mxu1 %v980_v5  ;;  %v904_v59 = vld [vmem:[#allocation11 + $0x6e8] sm:$0xff]  ;;  %v805_v5 = vld [vmem:[#allocation11 + $0x3d0] sm:$0xff] }
 0x290   :  { %1388 = vmatpush1.msra.mxu0 %v691_v6  ;;  %1491 = vmatpush2.msra.mxu1 %v979_v7  ;;  %v903_v6 = vld [vmem:[#allocation11 + $0x6e0] sm:$0xff]  ;;  %v800_v7 = vld [vmem:[#allocation11 + $0x3a8] sm:$0xff] }
 0x291   :  { %1389 = vmatprep.subr.mxu0 %v686_v8  ;;  %1492 = vmatprep.subr.mxu1 %v974_v9  ;;  %v898_v8 = vld [vmem:[#allocation11 + $0x6b8] sm:$0xff]  ;;  %v799_v9 = vld [vmem:[#allocation11 + $0x3a0] sm:$0xff] }
 0x292   :  { %1390 = vmatpush1.msra.mxu0 %v685_v14  ;;  %1493 = vmatpush2.msra.mxu1 %v973_v15  ;;  %v897_v14 = vld [vmem:[#allocation11 + $0x6b0] sm:$0xff]  ;;  %v794_v15 = vld [vmem:[#allocation11 + $0x378] sm:$0xff] }
 0x293   :  { %1391 = vmatprep.subr.mxu0 %v872_v16  ;;  %1495 = vmatmul.mubr.f32.vlgmr.msra.gmra.mxu1 %v4885_v13  ;;  %v892_v16 = vld [vmem:[#allocation11 + $0x688] sm:$0xff] }
 0x294   :  { %1643 = vmatprep.subr.mxu1 %v970_v17  ;;  %1392 = vmatpush2.msra.mxu0 %v871_v18  ;;  %v793_v17 = vld [vmem:[#allocation11 + $0x370] sm:$0xff]  ;;  %v891_v18 = vld [vmem:[#allocation11 + $0x680] sm:$0xff] }
 0x295   :  { %1644 = vmatpush1.msra.mxu1 %v969_v21  ;;  %1707 = vmatprep.mubr.f32.mxu1 %v4881_v11  ;;  %v847_v11 = vld [vmem:[#allocation11 + $0x520] sm:$0xff]  ;;  %v788_v21 = vld [vmem:[#allocation11 + $0x348] sm:$0xff] }
 0x296   :  { %1393 = vmatprep.subr.mxu0 %v866_v23  ;;  %1645 = vmatprep.subr.mxu1 %v964_v24  ;;  %v886_v23 = vld [vmem:[#allocation11 + $0x658] sm:$0xff]  ;;  %v787_v24 = vld [vmem:[#allocation11 + $0x340] sm:$0xff] }
 0x297   :  { %1394 = vmatpush2.msra.mxu0 %v865_v25  ;;  %1646 = vmatpush1.msra.mxu1 %v963_v26  ;;  %v885_v25 = vld [vmem:[#allocation11 + $0x650] sm:$0xff]  ;;  %v782_v26 = vld [vmem:[#allocation11 + $0x318] sm:$0xff] }
 0x298   :  { %1395 = vmatprep.subr.mxu0 %v860_v27  ;;  %1647 = vmatprep.subr.mxu1 %v958_v28  ;;  %v880_v27 = vld [vmem:[#allocation11 + $0x628] sm:$0xff]  ;;  %v781_v28 = vld [vmem:[#allocation11 + $0x310] sm:$0xff] }
 0x299   :  { %1396 = vmatpush2.msra.mxu0 %v859_v29  ;;  %1648 = vmatpush1.msra.mxu1 %v957_v31  ;;  %v879_v29 = vld [vmem:[#allocation11 + $0x620] sm:$0xff]  ;;  %v1088_v31 = vld [vmem:[#allocation11 + $0xca8] sm:$0xf] }
 0x29a   :  { %1397 = vmatprep.subr.mxu0 %v854_v32  ;;  %1649 = vmatprep.subr.mxu1 %v952_v33  ;;  %v1066_v32 = vld [vmem:[#allocation11 + $0xbf8] sm:$0xff]  ;;  %v1087_v33 = vld [vmem:[#allocation11 + $0xca0] sm:$0xf] }
 0x29b   :  { %1398 = vmatpush2.msra.mxu0 %v853_v34  ;;  %1650 = vmatpush1.msra.mxu1 %v951_v35  ;;  %v1065_v34 = vld [vmem:[#allocation11 + $0xbf0] sm:$0xff]  ;;  %v1082_v35 = vld [vmem:[#allocation11 + $0xc78] sm:$0xff] }
 0x29c   :  { %1399 = vmatprep.subr.mxu0 %v848_v36  ;;  %1651 = vmatprep.subr.mxu1 %v946_v37  ;;  %v1060_v36 = vld [vmem:[#allocation11 + $0xbc8] sm:$0xff]  ;;  %v1081_v37 = vld [vmem:[#allocation11 + $0xc70] sm:$0xff] }
 0x29d   :  { %1400 = vmatpush2.msra.mxu0 %v847_v11  ;;  %1652 = vmatpush1.msra.mxu1 %v945_v38  ;;  %v1059_v11 = vld [vmem:[#allocation11 + $0xbc0] sm:$0xff]  ;;  %v1076_v38 = vld [vmem:[#allocation11 + $0xc48] sm:$0xff] }
 0x29e   :  { %1401 = vmatprep.subr.mxu0 %v842_v30  ;;  %1653 = vmatprep.subr.mxu1 %v940_v39  ;;  %v1054_v30 = vld [vmem:[#allocation11 + $0xb98] sm:$0xff]  ;;  %v1075_v39 = vld [vmem:[#allocation11 + $0xc40] sm:$0xff] }
 0x29f   :  { %1402 = vmatpush2.msra.mxu0 %v841_v40  ;;  %1654 = vmatpush1.msra.mxu1 %v939_v41  ;;  %v1053_v40 = vld [vmem:[#allocation11 + $0xb90] sm:$0xff]  ;;  %v1070_v41 = vld [vmem:[#allocation11 + $0xc18] sm:$0xff] }
 0x2a0   :  { %1403 = vmatprep.subr.mxu0 %v836_v42  ;;  %1655 = vmatprep.subr.mxu1 %v934_v43  ;;  %v1048_v42 = vld [vmem:[#allocation11 + $0xb68] sm:$0xff]  ;;  %v1069_v43 = vld [vmem:[#allocation11 + $0xc10] sm:$0xff] }
 0x2a1   :  { %1404 = vmatpush2.msra.mxu0 %v835_v44  ;;  %1656 = vmatpush1.msra.mxu1 %v933_v45  ;;  %v1047_v44 = vld [vmem:[#allocation11 + $0xb60] sm:$0xff]  ;;  %v778_v45 = vld [vmem:[#allocation11 + $0x2f8] sm:$0xff] }
 0x2a2   :  { %1405 = vmatprep.subr.mxu0 %v830_v46  ;;  %1657 = vmatprep.subr.mxu1 %v928_v47  ;;  %v1042_v46 = vld [vmem:[#allocation11 + $0xb38] sm:$0xff]  ;;  %v777_v47 = vld [vmem:[#allocation11 + $0x2f0] sm:$0xff] }
 0x2a3   :  { %1406 = vmatpush2.msra.mxu0 %v829_v48  ;;  %1658 = vmatpush1.msra.mxu1 %v927_v50  ;;  %v1041_v48 = vld [vmem:[#allocation11 + $0xb30] sm:$0xff]  ;;  %v772_v50 = vld [vmem:[#allocation11 + $0x2c8] sm:$0xff] }
 0x2a4   :  { %1407 = vmatprep.subr.mxu0 %v824_v51  ;;  %1659 = vmatprep.subr.mxu1 %v922_v52  ;;  %v1036_v51 = vld [vmem:[#allocation11 + $0xb08] sm:$0xff]  ;;  %v771_v52 = vld [vmem:[#allocation11 + $0x2c0] sm:$0xff] }
 0x2a5   :  { %1408 = vmatpush2.msra.mxu0 %v823_v53  ;;  %1660 = vmatpush1.msra.mxu1 %v921_v54  ;;  %v1035_v53 = vld [vmem:[#allocation11 + $0xb00] sm:$0xff]  ;;  %v766_v54 = vld [vmem:[#allocation11 + $0x298] sm:$0xff] }
 0x2a6   :  { %1409 = vmatprep.subr.mxu0 %v818_v55  ;;  %1661 = vmatprep.subr.mxu1 %v916_v56  ;;  %v1030_v55 = vld [vmem:[#allocation11 + $0xad8] sm:$0xff]  ;;  %v765_v56 = vld [vmem:[#allocation11 + $0x290] sm:$0xff] }
 0x2a7   :  { %1410 = vmatpush2.msra.mxu0 %v817_v57  ;;  %1662 = vmatpush1.msra.mxu1 %v915_v61  ;;  %v1029_v57 = vld [vmem:[#allocation11 + $0xad0] sm:$0xff]  ;;  %v760_v61 = vld [vmem:[#allocation11 + $0x268] sm:$0xff] }
 0x2a8   :  { %1411 = vmatprep.subr.mxu0 %v812_v62  ;;  %1663 = vmatprep.subr.mxu1 %v910_v63  ;;  %v1024_v62 = vld [vmem:[#allocation11 + $0xaa8] sm:$0xff]  ;;  %v759_v63 = vld [vmem:[#allocation11 + $0x260] sm:$0xff] }
 0x2a9   :  { %1412 = vmatpush2.msra.mxu0 %v811_v1  ;;  %1664 = vmatpush1.msra.mxu1 %v909_v2  ;;  %v1023_v1 = vld [vmem:[#allocation11 + $0xaa0] sm:$0xff]  ;;  %v754_v2 = vld [vmem:[#allocation11 + $0x238] sm:$0xff] }
 0x2aa   :  { %1413 = vmatprep.subr.mxu0 %v806_v4  ;;  %1665 = vmatprep.subr.mxu1 %v904_v59  ;;  %v1018_v4 = vld [vmem:[#allocation11 + $0xa78] sm:$0xff]  ;;  %v1017_v59 = vld [vmem:[#allocation11 + $0xa70] sm:$0xff] }
 0x2ab   :  { %1414 = vmatpush2.msra.mxu0 %v805_v5  ;;  %1666 = vmatpush1.msra.mxu1 %v903_v6  ;;  %v748_v5 = vld [vmem:[#allocation11 + $0x208] sm:$0xff] }
 0x2ac   :  { %1415 = vmatprep.subr.mxu0 %v800_v7  ;;  %1667 = vmatprep.subr.mxu1 %v898_v8  ;;  %v1012_v6 = vld [vmem:[#allocation11 + $0xa48] sm:$0xff]  ;;  %v747_v7 = vld [vmem:[#allocation11 + $0x200] sm:$0xff] }
 0x2ad   :  { %1416 = vmatpush2.msra.mxu0 %v799_v9  ;;  %1668 = vmatpush1.msra.mxu1 %v897_v14  ;;  %v1011_v8 = vld [vmem:[#allocation11 + $0xa40] sm:$0xff]  ;;  %v742_v9 = vld [vmem:[#allocation11 + $0x1d8] sm:$0xff] }
 0x2ae   :  { %1417 = vmatprep.subr.mxu0 %v794_v15  ;;  %1669 = vmatprep.subr.mxu1 %v892_v16  ;;  %v1006_v14 = vld [vmem:[#allocation11 + $0xa18] sm:$0xff]  ;;  %v741_v15 = vld [vmem:[#allocation11 + $0x1d0] sm:$0xff] }
 0x2af   :  { %1418 = vmatpush2.msra.mxu0 %v793_v17  ;;  %1670 = vmatpush1.msra.mxu1 %v891_v18  ;;  %v1005_v16 = vld [vmem:[#allocation11 + $0xa10] sm:$0xff]  ;;  %v736_v17 = vld [vmem:[#allocation11 + $0x1a8] sm:$0xff] }
 0x2b0   :  { %1419 = vmatprep.subr.mxu0 %v788_v21  ;;  %1671 = vmatprep.subr.mxu1 %v886_v23  ;;  %v1000_v18 = vld [vmem:[#allocation11 + $0x9e8] sm:$0xff]  ;;  %v735_v21 = vld [vmem:[#allocation11 + $0x1a0] sm:$0xff] }
 0x2b1   :  { %1420 = vmatpush2.msra.mxu0 %v787_v24  ;;  %1672 = vmatpush1.msra.mxu1 %v885_v25  ;;  %v999_v23 = vld [vmem:[#allocation11 + $0x9e0] sm:$0xff]  ;;  %v730_v24 = vld [vmem:[#allocation11 + $0x178] sm:$0xff] }
 0x2b2   :  { %1421 = vmatprep.subr.mxu0 %v782_v26  ;;  %1673 = vmatprep.subr.mxu1 %v880_v27  ;;  %v994_v25 = vld [vmem:[#allocation11 + $0x9b8] sm:$0xff]  ;;  %v729_v26 = vld [vmem:[#allocation11 + $0x170] sm:$0xff] }
 0x2b3   :  { %1422 = vmatpush2.msra.mxu0 %v781_v28  ;;  %1674 = vmatpush1.msra.mxu1 %v879_v29  ;;  %v993_v27 = vld [vmem:[#allocation11 + $0x9b0] sm:$0xff]  ;;  %v724_v28 = vld [vmem:[#allocation11 + $0x148] sm:$0xff] }
 0x2b4   :  { %1424 = vmatmul.mubr.f32.vlgmr.msra.gmra.mxu0 %v4883_v12  ;;  %4105 = vmatprep.subr.msk.mxu0 %vm1127_vm3, %v1088_v31  ;;  %v988_v29 = vld [vmem:[#allocation11 + $0x988] sm:$0xff]  ;;  %v723_v31 = vld [vmem:[#allocation11 + $0x140] sm:$0xff] }
 0x2b5   :  { %1675 = vmatprep.subr.mxu1 %v1066_v32  ;;  %4106 = vmatpush1.msk.msra.mxu0 %vm1127_vm3, %v1087_v33  ;;  %v987_v32 = vld [vmem:[#allocation11 + $0x980] sm:$0xff]  ;;  %v718_v33 = vld [vmem:[#allocation11 + $0x118] sm:$0xff] }
 0x2b6   :  { %1676 = vmatpush2.msra.mxu1 %v1065_v34  ;;  %1527 = vmatprep.subr.mxu0 %v1082_v35  ;;  %v982_v34 = vld [vmem:[#allocation11 + $0x958] sm:$0xff]  ;;  %v717_v35 = vld [vmem:[#allocation11 + $0x110] sm:$0xff] }
 0x2b7   :  { %1677 = vmatprep.subr.mxu1 %v1060_v36  ;;  %1528 = vmatpush1.msra.mxu0 %v1081_v37  ;;  %v981_v36 = vld [vmem:[#allocation11 + $0x950] sm:$0xff]  ;;  %v712_v37 = vld [vmem:[#allocation11 + $0xe8] sm:$0xff] }
 0x2b8   :  { %1678 = vmatpush2.msra.mxu1 %v1059_v11  ;;  %1529 = vmatprep.subr.mxu0 %v1076_v38  ;;  %v976_v11 = vld [vmem:[#allocation11 + $0x928] sm:$0xff]  ;;  %v711_v38 = vld [vmem:[#allocation11 + $0xe0] sm:$0xff] }
 0x2b9   :  { %1679 = vmatprep.subr.mxu1 %v1054_v30  ;;  %1530 = vmatpush1.msra.mxu0 %v1075_v39  ;;  %v975_v30 = vld [vmem:[#allocation11 + $0x920] sm:$0xff]  ;;  %v706_v39 = vld [vmem:[#allocation11 + $0xb8] sm:$0xff] }
 0x2ba   :  { %1680 = vmatpush2.msra.mxu1 %v1053_v40  ;;  %1531 = vmatprep.subr.mxu0 %v1070_v41  ;;  %v705_v40 = vld [vmem:[#allocation11 + $0xb0] sm:$0xff]  ;;  %v700_v41 = vld [vmem:[#allocation11 + $0x88] sm:$0xff] }
 0x2bb   :  { %1681 = vmatprep.subr.mxu1 %v1048_v42  ;;  %1532 = vmatpush1.msra.mxu0 %v1069_v43  ;;  %v4915_v42 = vld [vmem:[%s5878_s7 + $0x1f8] sm:$0xff] }
 0x2bc   :  { %1565 = vmatprep.mubr.f32.mxu0 %v5891_v0  ;;  %1682 = vmatpush2.msra.mxu1 %v1047_v44  ;;  %v4920_v43 = vld [vmem:[%s5878_s7 + $0x178] sm:$0xff]  ;;  %v699_v44 = vld [vmem:[#allocation11 + $0x80] sm:$0xff] }
 0x2bd   :  { %4107 = vmatmul.mubr.msk.f32.vlgmr.msra.gmra.mxu0 %vm1123_vm4, %v4898_v3  ;;  %1572 = vmatprep.subr.mxu0 %v778_v45  ;;  %v4926_v45 = vld [vmem:[%s5878_s7 + $0x1f0] sm:$0xff] }
 0x2be   :  { %1683 = vmatprep.subr.mxu1 %v1042_v46  ;;  %1573 = vmatpush1.msra.mxu0 %v777_v47  ;;  %v694_v46 = vld [vmem:[#allocation11 + $0x58] sm:$0xff]  ;;  %v4932_v47 = vld [vmem:[%s5878_s7 + $0x170] sm:$0xff] }
 0x2bf   :  { %1636 = vmatprep.mubr.f32.mxu0 %v4879_v10  ;;  %1684 = vmatpush2.msra.mxu1 %v1041_v48  ;;  %v753_v10 = vld [vmem:[#allocation11 + $0x230] sm:$0xff] }
 0x2c0   :  { %1574 = vmatprep.subr.mxu0 %v772_v50  ;;  %1685 = vmatprep.subr.mxu1 %v1036_v51  ;;  %v693_v48 = vld [vmem:[#allocation11 + $0x50] sm:$0xff]  ;;  %v688_v50 = vld [vmem:[#allocation11 + $0x28] sm:$0xff]  ;;  %v4944_v51 = vld [vmem:[%s5878_s7 + $0x168] sm:$0xff] }
 0x2c1   :  { %1575 = vmatpush1.msra.mxu0 %v771_v52  ;;  %1686 = vmatpush2.msra.mxu1 %v1035_v53  ;;  %v687_v52 = vld [vmem:[#allocation11 + $0x20] sm:$0xff]  ;;  %v4950_v53 = vld [vmem:[%s5878_s7 + $0x1e0] sm:$0xff] }
 0x2c2   :  { %1576 = vmatprep.subr.mxu0 %v766_v54  ;;  %1687 = vmatprep.subr.mxu1 %v1030_v55  ;;  %v874_v54 = vld [vmem:[#allocation11 + $0x5f8] sm:$0xff] }
 0x2c3   :  { %1577 = vmatpush1.msra.mxu0 %v765_v56  ;;  %1688 = vmatpush2.msra.mxu1 %v1029_v57  ;;  %v4956_v55 = vld [vmem:[%s5878_s7 + $0x160] sm:$0xff]  ;;  %v4962_v57 = vld [vmem:[%s5878_s7 + $0x1d8] sm:$0xff] }
 0x2c4   :  { %1578 = vmatprep.subr.mxu0 %v760_v61  ;;  %1689 = vmatprep.subr.mxu1 %v1024_v62  ;;  %v873_v56 = vld [vmem:[#allocation11 + $0x5f0] sm:$0xff]  ;;  %v868_v61 = vld [vmem:[#allocation11 + $0x5c8] sm:$0xff] }
 0x2c5   :  { %1579 = vmatpush1.msra.mxu0 %v759_v63  ;;  %1690 = vmatpush2.msra.mxu1 %v1023_v1  ;;  %v4968_v62 = vld [vmem:[%s5878_s7 + $0x158] sm:$0xff]  ;;  %v867_v63 = vld [vmem:[#allocation11 + $0x5c0] sm:$0xff] }
 0x2c6   :  { %1580 = vmatprep.subr.mxu0 %v754_v2  ;;  %1691 = vmatprep.subr.mxu1 %v1018_v4  ;;  %v4974_v1 = vld [vmem:[%s5878_s7 + $0x1d0] sm:$0xff]  ;;  %v862_v2 = vld [vmem:[#allocation11 + $0x598] sm:$0xff] }
 0x2c7   :  { %1581 = vmatpush1.msra.mxu0 %v753_v10  ;;  %1692 = vmatpush2.msra.mxu1 %v1017_v59  ;;  %v4980_v4 = vld [vmem:[%s5878_s7 + $0x150] sm:$0xff]  ;;  %v861_v10 = vld [vmem:[#allocation11 + $0x590] sm:$0xff]  ;;  %v4986_v59 = vld [vmem:[%s5878_s7 + $0x1c8] sm:$0xff] }
 0x2c8   :  { %1582 = vmatprep.subr.mxu0 %v748_v5  ;;  %1693 = vmatprep.subr.mxu1 %v1012_v6  ;;  %v856_v5 = vld [vmem:[#allocation11 + $0x568] sm:$0xff]  ;;  %v4992_v6 = vld [vmem:[%s5878_s7 + $0x148] sm:$0xff] }
 0x2c9   :  { %1583 = vmatpush1.msra.mxu0 %v747_v7  ;;  %1694 = vmatpush2.msra.mxu1 %v1011_v8  ;;  %5954 = vst [vmem:[#allocation40_spill] sm:$0xff] %v4992_v6  ;;  %v855_v7 = vld [vmem:[#allocation11 + $0x560] sm:$0xff]  ;;  %v4998_v8 = vld [vmem:[%s5878_s7 + $0x1c0] sm:$0xff] }
 0x2ca   :  { %1584 = vmatprep.subr.mxu0 %v742_v9  ;;  %1695 = vmatprep.subr.mxu1 %v1006_v14  ;;  %5955 = vst [vmem:[#allocation41_spill] sm:$0xff] %v4998_v8  ;;  %v850_v9 = vld [vmem:[#allocation11 + $0x538] sm:$0xff] }
 0x2cb   :  { %1585 = vmatpush1.msra.mxu0 %v741_v15  ;;  %1696 = vmatpush2.msra.mxu1 %v1005_v16  ;;  %v5004_v14 = vld [vmem:[%s5878_s7 + $0x140] sm:$0xff]  ;;  %v5010_v16 = vld [vmem:[%s5878_s7 + $0x1b8] sm:$0xff] }
 0x2cc   :  { %1586 = vmatprep.subr.mxu0 %v736_v17  ;;  %1697 = vmatprep.subr.mxu1 %v1000_v18  ;;  %5956 = vst [vmem:[#allocation42_spill] sm:$0xff] %v5004_v14  ;;  %v849_v15 = vld [vmem:[#allocation11 + $0x530] sm:$0xff]  ;;  %5957 = vst [vmem:[#allocation43_spill] sm:$0xff] %v5010_v16  ;;  %v844_v17 = vld [vmem:[#allocation11 + $0x508] sm:$0xff] }
 0x2cd   :  { %1587 = vmatpush1.msra.mxu0 %v735_v21  ;;  %1698 = vmatpush2.msra.mxu1 %v999_v23  ;;  %v5016_v18 = vld [vmem:[%s5878_s7 + $0x138] sm:$0xff]  ;;  %v843_v21 = vld [vmem:[#allocation11 + $0x500] sm:$0xff] }
 0x2ce   :  { %1588 = vmatprep.subr.mxu0 %v730_v24  ;;  %1699 = vmatprep.subr.mxu1 %v994_v25  ;;  %5958 = vst [vmem:[#allocation44_spill] sm:$0xff] %v5016_v18  ;;  %v5022_v23 = vld [vmem:[%s5878_s7 + $0x1b0] sm:$0xff]  ;;  %v838_v24 = vld [vmem:[#allocation11 + $0x4d8] sm:$0xff]  ;;  %v837_v25 = vld [vmem:[#allocation11 + $0x4d0] sm:$0xff] }
 0x2cf   :  { %1589 = vmatpush1.msra.mxu0 %v729_v26  ;;  %1700 = vmatpush2.msra.mxu1 %v993_v27  ;;  %5959 = vst [vmem:[#allocation45_spill] sm:$0xff] %v5022_v23  ;;  %v832_v26 = vld [vmem:[#allocation11 + $0x4a8] sm:$0xff]  ;;  %v831_v27 = vld [vmem:[#allocation11 + $0x4a0] sm:$0xff] }
 0x2d0   :  { %1590 = vmatprep.subr.mxu0 %v724_v28  ;;  %1701 = vmatprep.subr.mxu1 %v988_v29  ;;  %v826_v28 = vld [vmem:[#allocation11 + $0x478] sm:$0xff]  ;;  %v825_v29 = vld [vmem:[#allocation11 + $0x470] sm:$0xff] }
 0x2d1   :  { %1591 = vmatpush1.msra.mxu0 %v723_v31  ;;  %1702 = vmatpush2.msra.mxu1 %v987_v32  ;;  %v820_v31 = vld [vmem:[#allocation11 + $0x448] sm:$0xff]  ;;  %v819_v32 = vld [vmem:[#allocation11 + $0x440] sm:$0xff] }
 0x2d2   :  { %1592 = vmatprep.subr.mxu0 %v718_v33  ;;  %1703 = vmatprep.subr.mxu1 %v982_v34  ;;  %v814_v33 = vld [vmem:[#allocation11 + $0x418] sm:$0xff]  ;;  %v813_v34 = vld [vmem:[#allocation11 + $0x410] sm:$0xff] }
 0x2d3   :  { %1593 = vmatpush1.msra.mxu0 %v717_v35  ;;  %1704 = vmatpush2.msra.mxu1 %v981_v36  ;;  %v808_v35 = vld [vmem:[#allocation11 + $0x3e8] sm:$0xff]  ;;  %v807_v36 = vld [vmem:[#allocation11 + $0x3e0] sm:$0xff] }
 0x2d4   :  { %1594 = vmatprep.subr.mxu0 %v712_v37  ;;  %1705 = vmatprep.subr.mxu1 %v976_v11  ;;  %v802_v37 = vld [vmem:[#allocation11 + $0x3b8] sm:$0xff]  ;;  %v801_v11 = vld [vmem:[#allocation11 + $0x3b0] sm:$0xff] }
 0x2d5   :  { %1595 = vmatpush1.msra.mxu0 %v711_v38  ;;  %1706 = vmatpush2.msra.mxu1 %v975_v30  ;;  %v796_v38 = vld [vmem:[#allocation11 + $0x388] sm:$0xff] }
 0x2d6   :  { %1596 = vmatprep.subr.mxu0 %v706_v39  ;;  %1708 = vmatmul.mubr.f32.vlgmr.msra.gmra.mxu1 %v4885_v13  ;;  %v4938_v13 = vld [vmem:[%s5878_s7 + $0x1e8] sm:$0xff]  ;;  %v5030_v30 = vld [vmem:[%s5878_s7 + $0x130] sm:$0xff] }
 0x2d7   :  { %1597 = vmatpush1.msra.mxu0 %v705_v40  ;;  %4157 = vmatprep.subr.mxu1 %v4915_v42  ;;  %5960 = vst [vmem:[#allocation46_spill] sm:$0xff] %v5030_v30  ;;  %v5035_v39 = vld [vmem:[%s5878_s7 + $0x1a8] sm:$0xff] }
 0x2d8   :  { %1598 = vmatprep.subr.mxu0 %v700_v41  ;;  %4158 = vmatpush3.msra.mxu1 %v4920_v43  ;;  %5961 = vst [vmem:[#allocation47_spill] sm:$0xff] %v5035_v39  ;;  %v795_v40 = vld [vmem:[#allocation11 + $0x380] sm:$0xff]  ;;  %v790_v41 = vld [vmem:[#allocation11 + $0x358] sm:$0xff] }
 0x2d9   :  { %1599 = vmatpush1.msra.mxu0 %v699_v44  ;;  %4159 = vmatprep.subr.mxu1 %v4926_v45  ;;  %v5042_v44 = vld [vmem:[%s5878_s7 + $0x128] sm:$0xff] }
 0x2da   :  { %1600 = vmatprep.subr.mxu0 %v694_v46  ;;  %4160 = vmatpush3.msra.mxu1 %v4932_v47  ;;  %5962 = vst [vmem:[#allocation48_spill] sm:$0xff] %v5042_v44  ;;  %v5047_v46 = vld [vmem:[%s5878_s7 + $0x1a0] sm:$0xff] }
 0x2db   :  { %1601 = vmatpush1.msra.mxu0 %v693_v48  ;;  %4161 = vmatprep.subr.mxu1 %v4938_v13  ;;  %5963 = vst [vmem:[#allocation49_spill] sm:$0xff] %v5047_v46  ;;  %v5052_v48 = vld [vmem:[%s5878_s7 + $0x120] sm:$0xff] }
 0x2dc   :  { %1602 = vmatprep.subr.mxu0 %v688_v50  ;;  %4162 = vmatpush3.msra.mxu1 %v4944_v51  ;;  %5964 = vst [vmem:[#allocation50_spill] sm:$0xff] %v5052_v48  ;;  %v789_v50 = vld [vmem:[#allocation11 + $0x350] sm:$0xff] }
 0x2dd   :  { %1603 = vmatpush1.msra.mxu0 %v687_v52  ;;  %4163 = vmatprep.subr.mxu1 %v4950_v53  ;;  %v5058_v52 = vld [vmem:[%s5878_s7 + $0x198] sm:$0xff] }
 0x2de   :  { %1604 = vmatprep.subr.mxu0 %v874_v54  ;;  %4164 = vmatpush3.msra.mxu1 %v4956_v55  ;;  %5965 = vst [vmem:[#allocation51_spill] sm:$0xff] %v5058_v52  ;;  %v784_v54 = vld [vmem:[#allocation11 + $0x328] sm:$0xff] }
 0x2df   :  { %1605 = vmatpush2.msra.mxu0 %v873_v56  ;;  %4165 = vmatprep.subr.mxu1 %v4962_v57  ;;  %v5064_v56 = vld [vmem:[%s5878_s7 + $0x118] sm:$0xff] }
 0x2e0   :  { %1606 = vmatprep.subr.mxu0 %v868_v61  ;;  %4166 = vmatpush3.msra.mxu1 %v4968_v62  ;;  %5966 = vst [vmem:[#allocation52_spill] sm:$0xff] %v5064_v56  ;;  %v783_v61 = vld [vmem:[#allocation11 + $0x320] sm:$0xff] }
 0x2e1   :  { %1607 = vmatpush2.msra.mxu0 %v867_v63  ;;  %4167 = vmatprep.subr.mxu1 %v4974_v1  ;;  %v5070_v63 = vld [vmem:[%s5878_s7 + $0x190] sm:$0xff] }
 0x2e2   :  { %1608 = vmatprep.subr.mxu0 %v862_v2  ;;  %4168 = vmatpush3.msra.mxu1 %v4980_v4  ;;  %5967 = vst [vmem:[#allocation53_spill] sm:$0xff] %v5070_v63  ;;  %v1090_v2 = vld [vmem:[#allocation11 + $0xcb8] sm:$0xf] }
 0x2e3   :  { %1609 = vmatpush2.msra.mxu0 %v861_v10  ;;  %4169 = vmatprep.subr.mxu1 %v4986_v59  ;;  %v1089_v10 = vld [vmem:[#allocation11 + $0xcb0] sm:$0xf] }
 0x2e4   :  { %1610 = vmatprep.subr.mxu0 %v856_v5  ;;  %4170 = vmatpush3.msra.mxu1 %v4992_v6  ;;  %v1084_v5 = vld [vmem:[#allocation11 + $0xc88] sm:$0xff] }
 0x2e5   :  { %1611 = vmatpush2.msra.mxu0 %v855_v7  ;;  %4171 = vmatprep.subr.mxu1 %v4998_v8  ;;  %v5078_v7 = vld [vmem:[%s5878_s7 + $0x110] sm:$0xff] }
 0x2e6   :  { %1612 = vmatprep.subr.mxu0 %v850_v9  ;;  %4172 = vmatpush3.msra.mxu1 %v5004_v14  ;;  %5968 = vst [vmem:[#allocation54_spill] sm:$0xff] %v5078_v7  ;;  %v1083_v9 = vld [vmem:[#allocation11 + $0xc80] sm:$0xff] }
 0x2e7   :  { %1613 = vmatpush2.msra.mxu0 %v849_v15  ;;  %4173 = vmatprep.subr.mxu1 %v5010_v16  ;;  %v5085_v15 = vld [vmem:[%s5878_s7 + $0x188] sm:$0xff] }
 0x2e8   :  { %1614 = vmatprep.subr.mxu0 %v844_v17  ;;  %4174 = vmatpush3.msra.mxu1 %v5016_v18  ;;  %5969 = vst [vmem:[#allocation55_spill] sm:$0xff] %v5085_v15  ;;  %v1078_v17 = vld [vmem:[#allocation11 + $0xc58] sm:$0xff] }
 0x2e9   :  { %1615 = vmatpush2.msra.mxu0 %v843_v21  ;;  %4175 = vmatprep.subr.mxu1 %v5022_v23  ;;  %v5092_v21 = vld [vmem:[%s5878_s7 + $0x108] sm:$0xff] }
 0x2ea   :  { %1616 = vmatprep.subr.mxu0 %v838_v24  ;;  %4176 = vmatpush3.msra.mxu1 %v5030_v30  ;;  %5970 = vst [vmem:[#allocation56_spill] sm:$0xff] %v5092_v21  ;;  %v5098_v24 = vld [vmem:[%s5878_s7 + $0x180] sm:$0xff] }
 0x2eb   :  { %1617 = vmatpush2.msra.mxu0 %v837_v25  ;;  %4177 = vmatprep.subr.mxu1 %v5035_v39  ;;  %5971 = vst [vmem:[#allocation57_spill] sm:$0xff] %v5098_v24  ;;  %v1072_v25 = vld [vmem:[#allocation11 + $0xc28] sm:$0xff] }
 0x2ec   :  { %1618 = vmatprep.subr.mxu0 %v832_v26  ;;  %4178 = vmatpush3.msra.mxu1 %v5042_v44  ;;  %v5104_v26 = vld [vmem:[%s5878_s7 + $0x100] sm:$0xff] }
 0x2ed   :  { %1619 = vmatpush2.msra.mxu0 %v831_v27  ;;  %4179 = vmatprep.subr.mxu1 %v5047_v46  ;;  %5972 = vst [vmem:[#allocation58_spill] sm:$0xff] %v5104_v26  ;;  %v1071_v27 = vld [vmem:[#allocation11 + $0xc20] sm:$0xff] }
 0x2ee   :  { %1620 = vmatprep.subr.mxu0 %v826_v28  ;;  %4180 = vmatpush3.msra.mxu1 %v5052_v48  ;;  %v1816_v28 = vld [vmem:[%s5878_s7 + $0xf8] sm:$0xff] }
 0x2ef   :  { %1621 = vmatpush2.msra.mxu0 %v825_v29  ;;  %4181 = vmatprep.subr.mxu1 %v5058_v52  ;;  %v5114_v29 = vld [vmem:[%s5878_s7 + $0x78] sm:$0xff] }
 0x2f0   :  { %1622 = vmatprep.subr.mxu0 %v820_v31  ;;  %4182 = vmatpush3.msra.mxu1 %v5064_v56  ;;  %v5120_v31 = vld [vmem:[%s5878_s7 + $0xf0] sm:$0xff]  ;;  %v5301_v56 = vld [vmem:[#allocation13] sm:$0x3f] }
 0x2f1   :  { %1623 = vmatpush2.msra.mxu0 %v819_v32  ;;  %4183 = vmatprep.subr.mxu1 %v5070_v63  ;;  %v5127_v32 = vld [vmem:[%s5878_s7 + $0x70] sm:$0xff]  ;;  %v1100_v19 = vrot.slane %v5301_v56, %v4836_v22  ;;  %v1096_v52 = vrot.slane %v5301_v56, %v4833_v20  ;;  %v5314_v22 = vld [vmem:[%s5878_s7 + $0x278] sm:$0xff] }
 0x2f2   :  { %1624 = vmatprep.subr.mxu0 %v814_v33  ;;  %4184 = vmatpush3.msra.mxu1 %v5078_v7  ;;  %v5133_v33 = vld [vmem:[%s5878_s7 + $0xe8] sm:$0xff]  ;;  %v5973_v7 = vmov 0.0   ;;  %5974 = vst [vmem:[#allocation59_spill] sm:$0xff] %v5314_v22  ;;  %v5405_v20 = vld [vmem:[%s5878_s7 + $0x210] sm:$0xff] }
 0x2f3   :  { %1625 = vmatpush2.msra.mxu0 %v813_v34  ;;  %4185 = vmatprep.subr.mxu1 %v5085_v15  ;;  %v5139_v34 = vld [vmem:[%s5878_s7 + $0x68] sm:$0xff]  ;;  %v5295_v15 = vld [vmem:[%s5878_s7] sm:$0xff]  ;;  %5987 = vst [vmem:[#allocation72_spill] sm:$0xff] %v5405_v20 }
 0x2f4   :  { %1626 = vmatprep.subr.mxu0 %v808_v35  ;;  %4186 = vmatpush3.msra.mxu1 %v5092_v21  ;;  %v5151_v35 = vld [vmem:[%s5878_s7 + $0x60] sm:$0xff] }
 0x2f5   :  { %1627 = vmatpush2.msra.mxu0 %v807_v36  ;;  %4187 = vmatprep.subr.mxu1 %v5098_v24  ;;  %v5157_v36 = vld [vmem:[%s5878_s7 + $0xd8] sm:$0xff]  ;;  %v5283_v24 = vld [vmem:[%s5878_s7 + $0x8] sm:$0xff]  ;;  %v5289_v21 = vld [vmem:[%s5878_s7 + $0x80] sm:$0xff] }
 0x2f6   :  { %1628 = vmatprep.subr.mxu0 %v802_v37  ;;  %4188 = vmatpush3.msra.mxu1 %v5104_v26  ;;  %v5163_v37 = vld [vmem:[%s5878_s7 + $0x58] sm:$0xff]  ;;  %v5277_v26 = vld [vmem:[%s5878_s7 + $0x88] sm:$0xff] }
 0x2f7   :  { %1629 = vmatpush2.msra.mxu0 %v801_v11  ;;  %4192 = vmatprep.subr.mxu1 %v1816_v28  ;;  %v5169_v11 = vld [vmem:[%s5878_s7 + $0xd0] sm:$0xff] }
 0x2f8   :  { %1630 = vmatprep.subr.mxu0 %v796_v38  ;;  %v5175_v38 = vld [vmem:[%s5878_s7 + $0x50] sm:$0xff] }
 0x2f9   :  { %1631 = vmatpush2.msra.mxu0 %v795_v40  ;;  %v5181_v40 = vld [vmem:[%s5878_s7 + $0xc8] sm:$0xff] }
 0x2fa   :  { %1632 = vmatprep.subr.mxu0 %v790_v41  ;;  %v5187_v41 = vld [vmem:[%s5878_s7 + $0x48] sm:$0xff] }
 0x2fb   :  { %1633 = vmatpush2.msra.mxu0 %v789_v50  ;;  %v5193_v50 = vld [vmem:[%s5878_s7 + $0xc0] sm:$0xff] }
 0x2fc   :  { %1634 = vmatprep.subr.mxu0 %v784_v54  ;;  %v5199_v54 = vld [vmem:[%s5878_s7 + $0x40] sm:$0xff] }
 0x2fd   :  { %1635 = vmatpush2.msra.mxu0 %v783_v61  ;;  %v5205_v61 = vld [vmem:[%s5878_s7 + $0xb8] sm:$0xff] }
 0x2fe   :  { %1637 = vmatmul.mubr.f32.vlgmr.msra.gmra.mxu0 %v4883_v12  ;;  %4108 = vmatprep.subr.msk.mxu0 %vm1127_vm3, %v1090_v2  ;;  %v1077_v12 = vld [vmem:[#allocation11 + $0xc50] sm:$0xff] }
 0x2ff   :  { %4109 = vmatpush1.msk.msra.mxu0 %vm1127_vm3, %v1089_v10  ;;  %1778 = vmatprep.mubr.f32.mxu0 %v5891_v0  ;;  %v5211_v2 = vld [vmem:[%s5878_s7 + $0x38] sm:$0xff]  ;;  %v5217_v10 = vld [vmem:[%s5878_s7 + $0xb0] sm:$0xff] }
 0x300   :  { %1740 = vmatprep.subr.mxu0 %v1084_v5  ;;  %v5223_v5 = vld [vmem:[%s5878_s7 + $0x30] sm:$0xff] }
 0x301   :  { %1741 = vmatpush1.msra.mxu0 %v1083_v9  ;;  %v5229_v9 = vld [vmem:[%s5878_s7 + $0xa8] sm:$0xff]  ;;  %v5271_v0 = vld [vmem:[%s5878_s7 + $0x10] sm:$0xff] }
 0x302   :  { %1742 = vmatprep.subr.mxu0 %v1078_v17  ;;  %v5235_v17 = vld [vmem:[%s5878_s7 + $0x28] sm:$0xff] }
 0x303   :  { %1743 = vmatpush1.msra.mxu0 %v1077_v12  ;;  %v5241_v12 = vld [vmem:[%s5878_s7 + $0xa0] sm:$0xff] }
 0x304   :  { %1744 = vmatprep.subr.mxu0 %v1072_v25  ;;  %v5247_v25 = vld [vmem:[%s5878_s7 + $0x20] sm:$0xff] }
 0x305   :  { %1745 = vmatpush1.msra.mxu0 %v1071_v27  ;;  %v5253_v27 = vld [vmem:[%s5878_s7 + $0x98] sm:$0xff] }
 0x306   :  { %4110 = vmatmul.mubr.msk.f32.vlgmr.msra.gmra.mxu0 %vm1123_vm4, %v4898_v3  ;;  %4122 = vmatprep.subr.mxu0 %v1816_v28  ;;  %v5145_v3 = vld [vmem:[%s5878_s7 + $0xe0] sm:$0xff]  ;;  %v5259_v28 = vld [vmem:[%s5878_s7 + $0x18] sm:$0xff] }
 0x307   :  { %4123 = vmatpush3.msra.mxu0 %v5114_v29 }
 0x308   :  { %4124 = vmatprep.subr.mxu0 %v5120_v31 }
 0x309   :  { %4125 = vmatpush3.msra.mxu0 %v5127_v32 }
 0x30a   :  { %4126 = vmatprep.subr.mxu0 %v5133_v33 }
 0x30b   :  { %4127 = vmatpush3.msra.mxu0 %v5139_v34 }
 0x30c   :  { %4128 = vmatprep.subr.mxu0 %v5145_v3 }
 0x30d   :  { %4129 = vmatpush3.msra.mxu0 %v5151_v35 }
 0x30e   :  { %4130 = vmatprep.subr.mxu0 %v5157_v36 }
 0x30f   :  { %4131 = vmatpush3.msra.mxu0 %v5163_v37 }
 0x310   :  { %4132 = vmatprep.subr.mxu0 %v5169_v11 }
 0x311   :  { %4133 = vmatpush3.msra.mxu0 %v5175_v38 }
 0x312   :  { %4134 = vmatprep.subr.mxu0 %v5181_v40  ;;  %v1212_v63 = vpop.f32.mrf.mxu0  ;;  %v1283_v46 = vpop.f32.mrf.mxu1 }
 0x313   :  { %4135 = vmatpush3.msra.mxu0 %v5187_v41  ;;  %v1213_v39 = vadd.f32 %v1212_v63, %v1096_v52  ;;  %v5391_v52 = vld [vmem:[%s5878_s7 + $0x220] sm:$0xff]  ;;  %v5398_v63 = vld [vmem:[%s5878_s7 + $0x218] sm:$0xff] }
 0x314   :  { %4136 = vmatprep.subr.mxu0 %v5193_v50  ;;  %v1214_v48 = vpop.f32.mrf.mxu0  ;;  %v1285_v30 = vpop.f32.mrf.mxu1  ;;  %5985 = vst [vmem:[#allocation70_spill] sm:$0xff] %v5391_v52  ;;  %5986 = vst [vmem:[#allocation71_spill] sm:$0xff] %v5398_v63 }
 0x315   :  { %4137 = vmatpush3.msra.mxu0 %v5199_v54  ;;  %v1215_v44 = vadd.f32 %v1214_v48, %v1100_v19  ;;  %v1284_v16 = vadd.f32 %v1283_v46, %v1213_v39  ;;  %v5321_v19 = vld [vmem:[%s5878_s7 + $0x270] sm:$0xff]  ;;  %v5363_v39 = vld [vmem:[%s5878_s7 + $0x240] sm:$0xff]  ;;  %v5384_v48 = vld [vmem:[%s5878_s7 + $0x228] sm:$0xff] }
 0x316   :  { %4138 = vmatprep.subr.mxu0 %v5205_v61  ;;  %5975 = vst [vmem:[#allocation60_spill] sm:$0xff] %v5321_v19  ;;  %5981 = vst [vmem:[#allocation66_spill] sm:$0xff] %v5363_v39  ;;  %v5377_v46 = vld [vmem:[%s5878_s7 + $0x230] sm:$0xff] }
 0x317   :  { %4139 = vmatpush3.msra.mxu0 %v5211_v2  ;;  %v1286_v18 = vadd.f32 %v1285_v30, %v1215_v44  ;;  %v5356_v30 = vld [vmem:[%s5878_s7 + $0x248] sm:$0xff]  ;;  %v5370_v44 = vld [vmem:[%s5878_s7 + $0x238] sm:$0xff]  ;;  %5983 = vst [vmem:[#allocation68_spill] sm:$0xff] %v5377_v46  ;;  %5984 = vst [vmem:[#allocation69_spill] sm:$0xff] %v5384_v48 }
 0x318   :  { %4140 = vmatprep.subr.mxu0 %v5217_v10  ;;  %5980 = vst [vmem:[#allocation65_spill] sm:$0xff] %v5356_v30  ;;  %5982 = vst [vmem:[#allocation67_spill] sm:$0xff] %v5370_v44 }
 0x319   :  { %4141 = vmatpush3.msra.mxu0 %v5223_v5 }
 0x31a   :  { %4142 = vmatprep.subr.mxu0 %v5229_v9 }
 0x31b   :  { %4143 = vmatpush3.msra.mxu0 %v5235_v17 }
 0x31c   :  { %4144 = vmatprep.subr.mxu0 %v5241_v12 }
 0x31d   :  { %4145 = vmatpush3.msra.mxu0 %v5247_v25 }
 0x31e   :  { %4146 = vmatprep.subr.mxu0 %v5253_v27 }
 0x31f   :  { %4147 = vmatpush3.msra.mxu0 %v5259_v28 }
 0x320   :  { %4148 = vmatprep.subr.mxu0 %v5265_v49 }
 0x321   :  { %4149 = vmatpush3.msra.mxu0 %v5271_v0 }
 0x322   :  { %4150 = vmatprep.subr.mxu0 %v5277_v26 }
 0x323   :  { %4151 = vmatpush3.msra.mxu0 %v5283_v24 }
 0x324   :  { %4152 = vmatprep.subr.mxu0 %v5289_v21 }
 0x325   :  { %4153 = vmatpush3.msra.mxu0 %v5295_v15 }
 0x326   :  { %2019 = vmatprep.subr.mxu0 %v5973_v7 }
 0x333   :  { %v1354_v23 = vpop.f32.mrf.mxu0 }
 0x334   :  { %v5309_v6 = vadd.f32 %v1354_v23, %v1284_v16  ;;  %v5335_v16 = vld [vmem:[%s5878_s7 + $0x260] sm:$0xff]  ;;  %v5349_v23 = vld [vmem:[%s5878_s7 + $0x250] sm:$0xff] }
 0x335   :  { %v1356_v14 = vpop.f32.mrf.mxu0  ;;  %5977 = vst [vmem:[#allocation62_spill] sm:$0xff] %v5335_v16  ;;  %5979 = vst [vmem:[#allocation64_spill] sm:$0xff] %v5349_v23 }
 0x336   :  { %v5307_v8 = vadd.f32 %v1356_v14, %v1286_v18  ;;  %v5328_v14 = vld [vmem:[%s5878_s7 + $0x268] sm:$0xff]  ;;  %v5342_v18 = vld [vmem:[%s5878_s7 + $0x258] sm:$0xff] }
 0x337   :  { %5976 = vst [vmem:[#allocation61_spill] sm:$0xff] %v5328_v14  ;;  %5978 = vst [vmem:[#allocation63_spill] sm:$0xff] %v5342_v18 }
 0x338   :  { %1943 = vmatprep.mubr.f32.mxu0 %v5307_v8 }
 0x339   :  { %1944 = vmatmul.mubr.f32.vlgmr.msra.gmra.mxu0 %v5309_v6 }
 0x33a   :  { %2020 = vmatpush1.msra.mxu0 %v5314_v22 }
 0x33b   :  { %2021 = vmatprep.subr.mxu0 %v5973_v7 }
 0x33c   :  { %2022 = vmatpush1.msra.mxu0 %v5321_v19 }
 0x33d   :  { %2023 = vmatprep.subr.mxu0 %v5973_v7 }
 0x33e   :  { %2024 = vmatpush1.msra.mxu0 %v5328_v14 }
 0x33f   :  { %2025 = vmatprep.subr.mxu0 %v5973_v7 }
 0x340   :  { %2026 = vmatpush1.msra.mxu0 %v5335_v16 }
 0x341   :  { %2027 = vmatprep.subr.mxu0 %v5973_v7 }
 0x342   :  { %2028 = vmatpush1.msra.mxu0 %v5342_v18 }
 0x343   :  { %2029 = vmatprep.subr.mxu0 %v5973_v7 }
 0x344   :  { %2030 = vmatpush1.msra.mxu0 %v5349_v23 }
 0x345   :  { %2031 = vmatprep.subr.mxu0 %v5973_v7 }
 0x346   :  { %2032 = vmatpush1.msra.mxu0 %v5356_v30 }
 0x347   :  { %2033 = vmatprep.subr.mxu0 %v5973_v7 }
 0x348   :  { %2034 = vmatpush1.msra.mxu0 %v5363_v39 }
 0x349   :  { %2035 = vmatprep.subr.mxu0 %v5973_v7 }
 0x34a   :  { %2036 = vmatpush1.msra.mxu0 %v5370_v44 }
 0x34b   :  { %2037 = vmatprep.subr.mxu0 %v5973_v7 }
 0x34c   :  { %2038 = vmatpush1.msra.mxu0 %v5377_v46  ;;  %v1108_v46 = vrot.slane %v5301_v56, %v4869_v60  ;;  %v2090_v60 = vmul.f32 %v5307_v8, %v5307_v8 }
 0x34d   :  { %2039 = vmatprep.subr.mxu0 %v5973_v7 }
 0x34e   :  { %2040 = vmatpush1.msra.mxu0 %v5384_v48  ;;  %v5412_v48 = vld [vmem:[%s5878_s7 + $0x208] sm:$0xff] }
 0x34f   :  { %2041 = vmatprep.subr.mxu0 %v5973_v7  ;;  %5988 = vst [vmem:[#allocation73_spill] sm:$0xff] %v5412_v48 }
 0x350   :  { %2042 = vmatpush1.msra.mxu0 %v5391_v52  ;;  %v5419_v52 = vld [vmem:[%s5878_s7 + $0x200] sm:$0xff] }
 0x351   :  { %2043 = vmatprep.subr.mxu0 %v5973_v7  ;;  %5989 = vst [vmem:[#allocation74_spill] sm:$0xff] %v5419_v52 }
 0x352   :  { %2044 = vmatpush1.msra.mxu0 %v5398_v63  ;;  %v5426_v63 = vld [vmem:[%s5878_s7 + $0x2c8] sm:$0xff] }
 0x353   :  { %2045 = vmatprep.subr.mxu0 %v5973_v7  ;;  %5990 = vst [vmem:[#allocation75_spill] sm:$0xff] %v5426_v63  ;;  %v1496_v39 = vpop.f32.mrf.mxu1 }
 0x354   :  { %2046 = vmatpush1.msra.mxu0 %v5405_v20  ;;  %v5433_v20 = vld [vmem:[%s5878_s7 + $0x2c0] sm:$0xff] }
 0x355   :  { %2047 = vmatprep.subr.mxu0 %v5973_v7  ;;  %5991 = vst [vmem:[#allocation76_spill] sm:$0xff] %v5433_v20  ;;  %v1498_v18 = vpop.f32.mrf.mxu1 }
 0x356   :  { %2048 = vmatpush1.msra.mxu0 %v5412_v48  ;;  %v5440_v48 = vld [vmem:[%s5878_s7 + $0x2b8] sm:$0xff] }
 0x357   :  { %2049 = vmatprep.subr.mxu0 %v5973_v7  ;;  %5992 = vst [vmem:[#allocation77_spill] sm:$0xff] %v5440_v48 }
 0x358   :  { %2050 = vmatpush1.msra.mxu0 %v5419_v52  ;;  %v5447_v52 = vld [vmem:[%s5878_s7 + $0x2b0] sm:$0xff] }
 0x359   :  { %2063 = vmatprep.subr.mxu0 %v5973_v7  ;;  %5993 = vst [vmem:[#allocation78_spill] sm:$0xff] %v5447_v52 }
 0x35a   :  { %2064 = vmatpush2.msra.mxu0 %v5426_v63  ;;  %v5454_v63 = vld [vmem:[%s5878_s7 + $0x2a8] sm:$0xff] }
 0x35b   :  { %2065 = vmatprep.subr.mxu0 %v5973_v7  ;;  %5994 = vst [vmem:[#allocation79_spill] sm:$0xff] %v5454_v63 }
 0x35c   :  { %2066 = vmatpush2.msra.mxu0 %v5433_v20  ;;  %v5461_v20 = vld [vmem:[%s5878_s7 + $0x2a0] sm:$0xff] }
 0x35d   :  { %2067 = vmatprep.subr.mxu0 %v5973_v7  ;;  %5995 = vst [vmem:[#allocation80_spill] sm:$0xff] %v5461_v20 }
 0x35e   :  { %2068 = vmatpush2.msra.mxu0 %v5440_v48  ;;  %v5468_v48 = vld [vmem:[%s5878_s7 + $0x298] sm:$0xff] }
 0x35f   :  { %2069 = vmatprep.subr.mxu0 %v5973_v7  ;;  %5996 = vst [vmem:[#allocation81_spill] sm:$0xff] %v5468_v48 }
 0x360   :  { %2070 = vmatpush2.msra.mxu0 %v5447_v52  ;;  %v5475_v52 = vld [vmem:[%s5878_s7 + $0x290] sm:$0xff] }
 0x361   :  { %2071 = vmatprep.subr.mxu0 %v5973_v7  ;;  %5997 = vst [vmem:[#allocation82_spill] sm:$0xff] %v5475_v52 }
 0x362   :  { %2072 = vmatpush2.msra.mxu0 %v5454_v63  ;;  %v5482_v63 = vld [vmem:[%s5878_s7 + $0x288] sm:$0xff] }
 0x363   :  { %2073 = vmatprep.subr.mxu0 %v5973_v7  ;;  %5998 = vst [vmem:[#allocation83_spill] sm:$0xff] %v5482_v63 }
 0x364   :  { %2074 = vmatpush2.msra.mxu0 %v5461_v20  ;;  %v5489_v20 = vld [vmem:[%s5878_s7 + $0x280] sm:$0xff] }
 0x365   :  { %2075 = vmatprep.subr.mxu0 %v5973_v7  ;;  %5999 = vst [vmem:[#allocation84_spill] sm:$0xff] %v5489_v20 }
 0x366   :  { %2076 = vmatpush2.msra.mxu0 %v5468_v48 }
 0x367   :  { %2077 = vmatprep.subr.mxu0 %v5973_v7 }
 0x368   :  { %2078 = vmatpush2.msra.mxu0 %v5475_v52  ;;  %v1104_v52 = vrot.slane %v5301_v56, %v4864_v58 }
 0x369   :  { %2079 = vmatprep.subr.mxu0 %v5973_v7 }
 0x36a   :  { %2080 = vmatpush2.msra.mxu0 %v5482_v63 }
 0x36b   :  { %2081 = vmatprep.subr.mxu0 %v5973_v7 }
 0x36c   :  { %2082 = vmatpush2.msra.mxu0 %v5489_v20 }
 0x36d   :  { %2238 = vmatprep.subr.mxu0 %v5973_v7 }
 0x374   :  { %v1425_v48 = vpop.f32.mrf.mxu0 }
 0x375   :  { %v1426_v23 = vadd.f32 %v1425_v48, %v1104_v52  ;;  %v6036_v48 = vld [vmem:[#allocation74_spill] sm:$0xff]  ;;  %v6037_v52 = vld [vmem:[#allocation75_spill] sm:$0xff] }
 0x376   :  { %v1427_v44 = vpop.f32.mrf.mxu0 }
 0x377   :  { %v1428_v30 = vadd.f32 %v1427_v44, %v1108_v46  ;;  %v1497_v14 = vadd.f32 %v1496_v39, %v1426_v23  ;;  %v6031_v23 = vld [vmem:[#allocation69_spill] sm:$0xff]  ;;  %v6033_v39 = vld [vmem:[#allocation71_spill] sm:$0xff]  ;;  %v6034_v44 = vld [vmem:[#allocation72_spill] sm:$0xff] }
 0x378   :  { %v6035_v46 = vld [vmem:[#allocation73_spill] sm:$0xff] }
 0x379   :  { %v1499_v63 = vadd.f32 %v1498_v18, %v1428_v30  ;;  %v6030_v18 = vld [vmem:[#allocation68_spill] sm:$0xff]  ;;  %v6032_v30 = vld [vmem:[#allocation70_spill] sm:$0xff] }
 0x37d   :  { %v1567_v16 = vpop.f32.mrf.mxu0 }
 0x37e   :  { %v5501_v20 = vadd.f32 %v1567_v16, %v1497_v14  ;;  %v6028_v14 = vld [vmem:[#allocation66_spill] sm:$0xff]  ;;  %v6029_v16 = vld [vmem:[#allocation67_spill] sm:$0xff] }
 0x37f   :  { %v1569_v19 = vpop.f32.mrf.mxu0 }
 0x380   :  { %v5499_v22 = vadd.f32 %v1569_v19, %v1499_v63  ;;  %v6027_v19 = vld [vmem:[#allocation65_spill] sm:$0xff]  ;;  %v6038_v63 = vld [vmem:[#allocation76_spill] sm:$0xff] }
 0x382   :  { %2013 = vmatprep.mubr.f32.mxu1 %v5499_v22 }
 0x383   :  { %2014 = vmatmul.mubr.f32.vlgmr.msra.gmra.mxu1 %v5501_v20 }
 0x384   :  { %4193 = vmatpush3.msra.mxu1 %v5114_v29  ;;  %2162 = vmatprep.mubr.f32.mxu1 %v2090_v60  ;;  %v2089_v60 = vmul.f32 %v5309_v6, %v5309_v6  ;;  %v2092_v29 = vmul.f32 %v5499_v22, %v5499_v22 }
 0x385   :  { %4194 = vmatprep.subr.mxu1 %v5120_v31 }
 0x386   :  { %4195 = vmatpush3.msra.mxu1 %v5127_v32 }
 0x387   :  { %4196 = vmatprep.subr.mxu1 %v5133_v33 }
 0x388   :  { %4197 = vmatpush3.msra.mxu1 %v5139_v34 }
 0x389   :  { %4198 = vmatprep.subr.mxu1 %v5145_v3  ;;  %v6018_v3 = vld [vmem:[#allocation56_spill] sm:$0xff] }
 0x38a   :  { %4199 = vmatpush3.msra.mxu1 %v5151_v35  ;;  %v2091_v35 = vmul.f32 %v5501_v20, %v5501_v20 }
 0x38b   :  { %4200 = vmatprep.subr.mxu1 %v5157_v36  ;;  %v6019_v36 = vld [vmem:[#allocation57_spill] sm:$0xff] }
 0x38c   :  { %4201 = vmatpush3.msra.mxu1 %v5163_v37 }
 0x38d   :  { %4202 = vmatprep.subr.mxu1 %v5169_v11  ;;  %v6020_v11 = vld [vmem:[#allocation58_spill] sm:$0xff] }
 0x38e   :  { %4203 = vmatpush3.msra.mxu1 %v5175_v38 }
 0x38f   :  { %4204 = vmatprep.subr.mxu1 %v5181_v40 }
 0x390   :  { %4205 = vmatpush3.msra.mxu1 %v5187_v41 }
 0x391   :  { %4206 = vmatprep.subr.mxu1 %v5193_v50 }
 0x392   :  { %4207 = vmatpush3.msra.mxu1 %v5199_v54 }
 0x393   :  { %4208 = vmatprep.subr.mxu1 %v5205_v61 }
 0x394   :  { %4209 = vmatpush3.msra.mxu1 %v5211_v2 }
 0x395   :  { %4210 = vmatprep.subr.mxu1 %v5217_v10 }
 0x396   :  { %4211 = vmatpush3.msra.mxu1 %v5223_v5  ;;  %v1709_v37 = vpop.f32.mrf.mxu1 }
 0x397   :  { %4212 = vmatprep.subr.mxu1 %v5229_v9  ;;  %v6021_v9 = vld [vmem:[#allocation59_spill] sm:$0xff] }
 0x398   :  { %4213 = vmatpush3.msra.mxu1 %v5235_v17  ;;  %v1711_v41 = vpop.f32.mrf.mxu1  ;;  %v6022_v17 = vld [vmem:[#allocation60_spill] sm:$0xff] }
 0x399   :  { %4214 = vmatprep.subr.mxu1 %v5241_v12  ;;  %v6023_v12 = vld [vmem:[#allocation61_spill] sm:$0xff] }
 0x39a   :  { %4215 = vmatpush3.msra.mxu1 %v5247_v25  ;;  %v6024_v25 = vld [vmem:[#allocation62_spill] sm:$0xff] }
 0x39b   :  { %4216 = vmatprep.subr.mxu1 %v5253_v27  ;;  %v6025_v27 = vld [vmem:[#allocation63_spill] sm:$0xff] }
 0x39c   :  { %4217 = vmatpush3.msra.mxu1 %v5259_v28  ;;  %v6026_v28 = vld [vmem:[#allocation64_spill] sm:$0xff] }
 0x39d   :  { %4218 = vmatprep.subr.mxu1 %v5265_v49  ;;  %v6001_v49 = vld [vmem:[#allocation41_spill] sm:$0xff] }
 0x39e   :  { %4219 = vmatpush3.msra.mxu1 %v5271_v0  ;;  %v6000_v0 = vld [vmem:[#allocation40_spill] sm:$0xff] }
 0x39f   :  { %4220 = vmatprep.subr.mxu1 %v5277_v26  ;;  %v6016_v26 = vld [vmem:[#allocation55_spill] sm:$0xff] }
 0x3a0   :  { %4221 = vmatpush3.msra.mxu1 %v5283_v24  ;;  %v6015_v24 = vld [vmem:[#allocation54_spill] sm:$0xff] }
 0x3a1   :  { %4222 = vmatprep.subr.mxu1 %v5289_v21 }
 0x3a2   :  { %4223 = vmatpush3.msra.mxu1 %v5295_v15  ;;  %v6014_v15 = vld [vmem:[#allocation53_spill] sm:$0xff] }
 0x3a3   :  { %2163 = vmatmul.mubr.f32.vlgmr.msra.gmra.mxu1 %v2089_v60  ;;  %4227 = vmatprep.subr.mxu1 %v4915_v42  ;;  %v6002_v42 = vld [vmem:[#allocation42_spill] sm:$0xff]  ;;  %v6039_v60 = vld [vmem:[#allocation77_spill] sm:$0xff] }
 0x3a4   :  { %4228 = vmatpush3.msra.mxu1 %v4920_v43  ;;  %2232 = vmatprep.mubr.f32.mxu1 %v2092_v29  ;;  %v6003_v43 = vld [vmem:[#allocation43_spill] sm:$0xff]  ;;  %v6040_v29 = vld [vmem:[#allocation78_spill] sm:$0xff] }
 0x3a5   :  { %4229 = vmatprep.subr.mxu1 %v4926_v45  ;;  %v6004_v45 = vld [vmem:[#allocation44_spill] sm:$0xff] }
 0x3a6   :  { %4230 = vmatpush3.msra.mxu1 %v4932_v47  ;;  %v6005_v47 = vld [vmem:[#allocation45_spill] sm:$0xff] }
 0x3a7   :  { %4231 = vmatprep.subr.mxu1 %v4938_v13  ;;  %v6006_v13 = vld [vmem:[#allocation46_spill] sm:$0xff] }
 0x3a8   :  { %4232 = vmatpush3.msra.mxu1 %v4944_v51  ;;  %v6007_v51 = vld [vmem:[#allocation47_spill] sm:$0xff] }
 0x3a9   :  { %4233 = vmatprep.subr.mxu1 %v4950_v53  ;;  %v6008_v53 = vld [vmem:[#allocation48_spill] sm:$0xff] }
 0x3aa   :  { %4234 = vmatpush3.msra.mxu1 %v4956_v55  ;;  %v6009_v55 = vld [vmem:[#allocation49_spill] sm:$0xff] }
 0x3ab   :  { %4235 = vmatprep.subr.mxu1 %v4962_v57  ;;  %v6010_v57 = vld [vmem:[#allocation50_spill] sm:$0xff] }
 0x3ac   :  { %4236 = vmatpush3.msra.mxu1 %v4968_v62  ;;  %v6011_v62 = vld [vmem:[#allocation51_spill] sm:$0xff] }
 0x3ad   :  { %4237 = vmatprep.subr.mxu1 %v4974_v1  ;;  %v6012_v1 = vld [vmem:[#allocation36_spill] sm:$0xff] }
 0x3ae   :  { %4238 = vmatpush3.msra.mxu1 %v4980_v4  ;;  %v1115_v4 = vsub.s32 5, %v6012_v1  ;;  %v6017_v32 = vsub.s32 4, %v6012_v1  ;;  %v5658_v1 = vld [vmem:[#allocation14 + $0x60] sm:$0xff] }
 0x3af   :  { %4239 = vmatprep.subr.mxu1 %v4986_v59  ;;  %v6013_v59 = vld [vmem:[#allocation52_spill] sm:$0xff] }
 0x3b0   :  { %4240 = vmatpush3.msra.mxu1 %v6000_v0  ;;  %v1116_v31 = vrot.slane %v5301_v56, %v1115_v4  ;;  %v1112_v33 = vrot.slane %v5301_v56, %v6017_v32  ;;  %v6041_v0 = vld [vmem:[#allocation79_spill] sm:$0xff] }
 0x3b1   :  { %4241 = vmatprep.subr.mxu1 %v6001_v49  ;;  %v6042_v49 = vld [vmem:[#allocation80_spill] sm:$0xff] }
 0x3b2   :  { %4242 = vmatpush3.msra.mxu1 %v6002_v42  ;;  %v6043_v42 = vld [vmem:[#allocation81_spill] sm:$0xff]  ;;  %v5661_v4 = vld [vmem:[#allocation14 + $0x38] sm:$0xff] }
 0x3b3   :  { %4243 = vmatprep.subr.mxu1 %v6003_v43  ;;  %v6044_v43 = vld [vmem:[#allocation82_spill] sm:$0xff] }
 0x3b4   :  { %4244 = vmatpush3.msra.mxu1 %v6004_v45  ;;  %v6045_v45 = vld [vmem:[#allocation83_spill] sm:$0xff] }
 0x3b5   :  { %4245 = vmatprep.subr.mxu1 %v6005_v47 }
 0x3b6   :  { %4246 = vmatpush3.msra.mxu1 %v6006_v13  ;;  %v6046_v13 = vld [vmem:[#allocation84_spill] sm:$0xff] }
 0x3b7   :  { %4247 = vmatprep.subr.mxu1 %v6007_v51  ;;  %v5645_v51 = vld [vmem:[#allocation14 + $0xc8] sm:$0xff] }
 0x3b8   :  { %4248 = vmatpush3.msra.mxu1 %v6008_v53  ;;  %v5647_v53 = vld [vmem:[#allocation14 + $0xc0] sm:$0xff] }
 0x3b9   :  { %4249 = vmatprep.subr.mxu1 %v6009_v55  ;;  %v5649_v55 = vld [vmem:[#allocation14 + $0x98] sm:$0xff] }
 0x3ba   :  { %4250 = vmatpush3.msra.mxu1 %v6010_v57  ;;  %v5652_v57 = vld [vmem:[#allocation14 + $0x90] sm:$0xff] }
 0x3bb   :  { %4251 = vmatprep.subr.mxu1 %v6011_v62  ;;  %v5655_v62 = vld [vmem:[#allocation14 + $0x68] sm:$0xff] }
 0x3bc   :  { %4252 = vmatpush3.msra.mxu1 %v6013_v59  ;;  %v5664_v59 = vld [vmem:[#allocation14 + $0x30] sm:$0xff] }
 0x3bd   :  { %4253 = vmatprep.subr.mxu1 %v6014_v15  ;;  %v5667_v15 = vld [vmem:[#allocation14 + $0x8] sm:$0xff] }
 0x3be   :  { %v1638_v21 = vpop.f32.mrf.mxu0  ;;  %4254 = vmatpush3.msra.mxu1 %v6015_v24  ;;  %v5673_v24 = vld [vmem:[#allocation14 + $0xd8] sm:$0xff] }
 0x3bf   :  { %4255 = vmatprep.subr.mxu1 %v6016_v26  ;;  %v1639_v40 = vadd.f32 %v1638_v21, %v1112_v33  ;;  %v5670_v21 = vld [vmem:[#allocation14] sm:$0xff] }
 0x3c0   :  { %v1640_v34 = vpop.f32.mrf.mxu0  ;;  %4256 = vmatpush3.msra.mxu1 %v6018_v3  ;;  %v2924_v3 = vld [vmem:[#allocation19 + $0x1e0] sm:$0xff] }
 0x3c1   :  { %4257 = vmatprep.subr.mxu1 %v6019_v36  ;;  %v1641_v38 = vadd.f32 %v1640_v34, %v1116_v31  ;;  %v1710_v56 = vadd.f32 %v1709_v37, %v1639_v40  ;;  %v2925_v34 = vld [vmem:[#allocation19 + $0x1e8] sm:$0xff]  ;;  %v2920_v36 = vld [vmem:[#allocation19 + $0x1c0] sm:$0xff] }
 0x3c2   :  { %4258 = vmatpush3.msra.mxu1 %v6020_v11  ;;  %v2917_v37 = vld [vmem:[#allocation19 + $0x1a8] sm:$0xff]  ;;  %v2916_v11 = vld [vmem:[#allocation19 + $0x1a0] sm:$0xff] }
 0x3c3   :  { %2233 = vmatmul.mubr.f32.vlgmr.msra.gmra.mxu1 %v2091_v35  ;;  %v1712_v54 = vadd.f32 %v1711_v41, %v1641_v38  ;;  %2391 = vmatprep.subr.mxu1 %v5645_v51  ;;  %v2921_v35 = vld [vmem:[#allocation19 + $0x1c8] sm:$0xff]  ;;  %v2912_v40 = vld [vmem:[#allocation19 + $0x180] sm:$0xff] }
 0x3c4   :  { %2433 = vmatprep.mubr.f32.mxu1 %v5973_v7  ;;  %2392 = vmatpush1.msra.mxu1 %v5647_v53  ;;  %v2913_v38 = vld [vmem:[#allocation19 + $0x188] sm:$0xff] }
 0x3c5   :  { %2393 = vmatprep.subr.mxu1 %v5649_v55  ;;  %v2909_v41 = vld [vmem:[#allocation19 + $0x168] sm:$0xff] }
 0x3c6   :  { %v1780_v50 = vpop.f32.mrf.mxu0  ;;  %2394 = vmatpush1.msra.mxu1 %v5652_v57 }
 0x3c7   :  { %v5584_v10 = vadd.f32 %v1780_v50, %v1710_v56  ;;  %2395 = vmatprep.subr.mxu1 %v5655_v62  ;;  %v2908_v50 = vld [vmem:[#allocation19 + $0x160] sm:$0xff]  ;;  %v2905_v56 = vld [vmem:[#allocation19 + $0x148] sm:$0xff] }
 0x3c8   :  { %v1782_v61 = vpop.f32.mrf.mxu0  ;;  %2396 = vmatpush1.msra.mxu1 %v5658_v1 }
 0x3c9   :  { %v5582_v2 = vadd.f32 %v1782_v61, %v1712_v54  ;;  %v2093_v47 = vmul.f32 %v5584_v10, %v5584_v10  ;;  %2397 = vmatprep.subr.mxu1 %v5661_v4  ;;  %v2904_v61 = vld [vmem:[#allocation19 + $0x140] sm:$0xff] }
 0x3ca   :  { %2398 = vmatpush1.msra.mxu1 %v5664_v59 }
 0x3cb   :  { %v2094_v5 = vmul.f32 %v5582_v2, %v5582_v2  ;;  %4111 = vmatprep.mubr.msk.f32.mxu0 %vm1875_vm5, %v5582_v2  ;;  %2399 = vmatprep.subr.mxu1 %v5667_v15 }
 0x3cc   :  { %2084 = vmatmul.mubr.f32.vlgmr.msra.gmra.mxu0 %v5584_v10  ;;  %2400 = vmatpush1.msra.mxu1 %v5670_v21 }
 0x3cd   :  { %2239 = vmatpush1.msra.mxu0 %v6021_v9  ;;  %4112 = vmatprep.mubr.msk.f32.mxu0 %vm1875_vm5, %v2094_v5  ;;  %v2901_v5 = vld [vmem:[#allocation19 + $0x128] sm:$0xff]  ;;  %v2900_v9 = vld [vmem:[#allocation19 + $0x120] sm:$0xff] }
 0x3ce   :  { %2240 = vmatprep.subr.mxu0 %v5973_v7  ;;  %2462 = vmatprep.subr.mxu1 %v5673_v24 }
 0x3cf   :  { %2241 = vmatpush1.msra.mxu0 %v6022_v17 }
 0x3d0   :  { %2242 = vmatprep.subr.mxu0 %v5973_v7 }
 0x3d1   :  { %2243 = vmatpush1.msra.mxu0 %v6023_v12  ;;  %v2897_v12 = vld [vmem:[#allocation19 + $0x108] sm:$0xff] }
 0x3d2   :  { %2244 = vmatprep.subr.mxu0 %v5973_v7 }
 0x3d3   :  { %2245 = vmatpush1.msra.mxu0 %v6024_v25  ;;  %v2896_v25 = vld [vmem:[#allocation19 + $0x100] sm:$0xff] }
 0x3d4   :  { %2246 = vmatprep.subr.mxu0 %v5973_v7 }
 0x3d5   :  { %2247 = vmatpush1.msra.mxu0 %v6025_v27  ;;  %v2893_v27 = vld [vmem:[#allocation19 + $0xe8] sm:$0xff] }
 0x3d6   :  { %2248 = vmatprep.subr.mxu0 %v5973_v7 }
 0x3d7   :  { %2249 = vmatpush1.msra.mxu0 %v6026_v28 }
 0x3d8   :  { %2250 = vmatprep.subr.mxu0 %v5973_v7 }
 0x3d9   :  { %2251 = vmatpush1.msra.mxu0 %v6027_v19  ;;  %v2892_v19 = vld [vmem:[#allocation19 + $0xe0] sm:$0xff] }
 0x3da   :  { %2252 = vmatprep.subr.mxu0 %v5973_v7 }
 0x3db   :  { %2253 = vmatpush1.msra.mxu0 %v6028_v14  ;;  %v2889_v14 = vld [vmem:[#allocation19 + $0xc8] sm:$0xff] }
 0x3dc   :  { %2254 = vmatprep.subr.mxu0 %v5973_v7 }
 0x3dd   :  { %2255 = vmatpush1.msra.mxu0 %v6029_v16 }
 0x3de   :  { %2256 = vmatprep.subr.mxu0 %v5973_v7 }
 0x3df   :  { %2257 = vmatpush1.msra.mxu0 %v6030_v18  ;;  %v2888_v18 = vld [vmem:[#allocation19 + $0xc0] sm:$0xff] }
 0x3e0   :  { %2258 = vmatprep.subr.mxu0 %v5973_v7 }
 0x3e1   :  { %2259 = vmatpush1.msra.mxu0 %v6031_v23  ;;  %v2885_v23 = vld [vmem:[#allocation19 + $0xa8] sm:$0xff] }
 0x3e2   :  { %2260 = vmatprep.subr.mxu0 %v5973_v7 }
 0x3e3   :  { %2261 = vmatpush1.msra.mxu0 %v6032_v30 }
 0x3e4   :  { %2262 = vmatprep.subr.mxu0 %v5973_v7 }
 0x3e5   :  { %2263 = vmatpush1.msra.mxu0 %v6033_v39  ;;  %v2884_v39 = vld [vmem:[#allocation19 + $0xa0] sm:$0xff] }
 0x3e6   :  { %2264 = vmatprep.subr.mxu0 %v5973_v7 }
 0x3e7   :  { %2265 = vmatpush1.msra.mxu0 %v6034_v44  ;;  %v2881_v44 = vld [vmem:[#allocation19 + $0x88] sm:$0xff] }
 0x3e8   :  { %2266 = vmatprep.subr.mxu0 %v5973_v7 }
 0x3e9   :  { %2267 = vmatpush1.msra.mxu0 %v6035_v46 }
 0x3ea   :  { %2268 = vmatprep.subr.mxu0 %v5973_v7 }
 0x3eb   :  { %2269 = vmatpush1.msra.mxu0 %v6036_v48  ;;  %v2880_v48 = vld [vmem:[#allocation19 + $0x80] sm:$0xff] }
 0x3ec   :  { %2282 = vmatprep.subr.mxu0 %v5973_v7 }
 0x3ed   :  { %2283 = vmatpush2.msra.mxu0 %v6037_v52 }
 0x3ee   :  { %2284 = vmatprep.subr.mxu0 %v5973_v7 }
 0x3ef   :  { %2285 = vmatpush2.msra.mxu0 %v6038_v63  ;;  %v2877_v63 = vld [vmem:[#allocation19 + $0x68] sm:$0xff] }
 0x3f0   :  { %2286 = vmatprep.subr.mxu0 %v5973_v7 }
 0x3f1   :  { %2287 = vmatpush2.msra.mxu0 %v6039_v60  ;;  %v2876_v60 = vld [vmem:[#allocation19 + $0x60] sm:$0xff] }
 0x3f2   :  { %2288 = vmatprep.subr.mxu0 %v5973_v7 }
 0x3f3   :  { %2289 = vmatpush2.msra.mxu0 %v6040_v29 }
 0x3f4   :  { %2290 = vmatprep.subr.mxu0 %v5973_v7 }
 0x3f5   :  { %2291 = vmatpush2.msra.mxu0 %v6041_v0 }
 0x3f6   :  { %2292 = vmatprep.subr.mxu0 %v5973_v7 }
 0x3f7   :  { %2293 = vmatpush2.msra.mxu0 %v6042_v49 }
 0x3f8   :  { %2294 = vmatprep.subr.mxu0 %v5973_v7 }
 0x3f9   :  { %2295 = vmatpush2.msra.mxu0 %v6043_v42  ;;  %v4154_v26 = vpop.f32.mrf.mxu0 }
 0x3fa   :  { %2296 = vmatprep.subr.mxu0 %v5973_v7 }
 0x3fb   :  { %2297 = vmatpush2.msra.mxu0 %v6044_v43  ;;  %v4155_v31 = vpop.f32.mrf.mxu0 }
 0x3fc   :  { %2298 = vmatprep.subr.mxu0 %v5973_v7  ;;  %v4156_v16 = vadd.f32 %v4155_v31, %v4154_v26 }
 0x3fd   :  { %2299 = vmatpush2.msra.mxu0 %v6045_v45 }
 0x3fe   :  { %2300 = vmatprep.subr.mxu0 %v5973_v7 }
 0x3ff   :  { %2301 = vmatpush2.msra.mxu0 %v6046_v13 }
 0x400   :  { %2303 = vmatmul.mubr.f32.vlgmr.msra.gmra.mxu0 %v2093_v47  ;;  %3249 = vmatprep.subr.mxu0 %v2925_v34 }
 0x401   :  { %3250 = vmatpush1.msra.mxu0 %v2924_v3 }
 0x402   :  { %3251 = vmatprep.subr.mxu0 %v2921_v35 }
 0x403   :  { %3252 = vmatpush1.msra.mxu0 %v2920_v36 }
 0x404   :  { %3253 = vmatprep.subr.mxu0 %v2917_v37 }
 0x405   :  { %3254 = vmatpush1.msra.mxu0 %v2916_v11 }
 0x406   :  { %3255 = vmatprep.subr.mxu0 %v2913_v38 }
 0x407   :  { %3256 = vmatpush1.msra.mxu0 %v2912_v40 }
 0x408   :  { %3257 = vmatprep.subr.mxu0 %v2909_v41 }
 0x409   :  { %3258 = vmatpush1.msra.mxu0 %v2908_v50 }
 0x40a   :  { %3259 = vmatprep.subr.mxu0 %v2905_v56 }
 0x40b   :  { %3260 = vmatpush1.msra.mxu0 %v2904_v61 }
 0x40c   :  { %3261 = vmatprep.subr.mxu0 %v2901_v5 }
 0x40d   :  { %3262 = vmatpush1.msra.mxu0 %v2900_v9 }
 0x40e   :  { %3263 = vmatprep.subr.mxu0 %v2897_v12  ;;  %v2330_v12 = vld [vmem:[#allocation16] sm:$0x1] }
 0x40f   :  { %3264 = vmatpush1.msra.mxu0 %v2896_v25 }
 0x410   :  { %3265 = vmatprep.subr.mxu0 %v2893_v27 }
 0x411   :  { %3266 = vmatpush1.msra.mxu0 %v2892_v19  ;;  %v2356_v19 = vld [vmem:[#allocation14 + $0xa8] sm:$0xff] }
 0x412   :  { %3267 = vmatprep.subr.mxu0 %v2889_v14  ;;  %v2355_v14 = vld [vmem:[#allocation14 + $0xa0] sm:$0xff] }
 0x413   :  { %3268 = vmatpush1.msra.mxu0 %v2888_v18  ;;  %v2349_v18 = vld [vmem:[#allocation14 + $0x70] sm:$0xff] }
 0x414   :  { %3269 = vmatprep.subr.mxu0 %v2885_v23  ;;  %v2344_v23 = vld [vmem:[#allocation14 + $0x48] sm:$0xff] }
 0x415   :  { %3270 = vmatpush1.msra.mxu0 %v2884_v39  ;;  %v2338_v39 = vld [vmem:[#allocation14 + $0x18] sm:$0xff] }
 0x416   :  { %3271 = vmatprep.subr.mxu0 %v2881_v44  ;;  %v2337_v44 = vld [vmem:[#allocation14 + $0x10] sm:$0xff] }
 0x417   :  { %3272 = vmatpush1.msra.mxu0 %v2880_v48  ;;  %v2363_v48 = vld [vmem:[#allocation14 + $0xe0] sm:$0xff] }
 0x418   :  { %3273 = vmatprep.subr.mxu0 %v2877_v63  ;;  %v2357_v63 = vld [vmem:[#allocation14 + $0xb0] sm:$0xff] }
 0x419   :  { %3274 = vmatpush1.msra.mxu0 %v2876_v60  ;;  %v2352_v60 = vld [vmem:[#allocation14 + $0x88] sm:$0xff] }
 0x443   :  { %v4189_v54 = vpop.f32.mrf.mxu1 }
 0x445   :  { %v4190_v17 = vpop.f32.mrf.mxu1 }
 0x446   :  { %v4191_v28 = vadd.f32 %v4190_v17, %v4189_v54 }
 0x448   :  { %v2016_v30 = vadd.f32 %v4191_v28, %v4156_v16  ;;  %v2361_v28 = vld [vmem:[#allocation14 + $0xd0] sm:$0xff]  ;;  %v2350_v16 = vld [vmem:[#allocation14 + $0x78] sm:$0xff] }
 0x463   :  { %v4224_v52 = vpop.f32.mrf.mxu1 }
 0x465   :  { %v4225_v0 = vpop.f32.mrf.mxu1 }
 0x466   :  { %v4226_v26 = vadd.f32 %v4225_v0, %v4224_v52  ;;  %v2358_v52 = vld [vmem:[#allocation14 + $0xb8] sm:$0xff] }
 0x467   :  { %v2346_v0 = vld [vmem:[#allocation14 + $0x58] sm:$0xff] }
 0x483   :  { %v4259_v49 = vpop.f32.mrf.mxu1 }
 0x485   :  { %v4260_v43 = vpop.f32.mrf.mxu1 }
 0x486   :  { %v4261_v47 = vadd.f32 %v4260_v43, %v4259_v49  ;;  %v2345_v49 = vld [vmem:[#allocation14 + $0x50] sm:$0xff]  ;;  %v2339_v43 = vld [vmem:[#allocation14 + $0x20] sm:$0xff] }
 0x488   :  { %v2235_v31 = vadd.f32 %v4261_v47, %v4226_v26  ;;  %v2332_v47 = vld [vmem:[#allocation17] sm:$0x1]  ;;  %v3029_v26 = vld [vmem:[#allocation19 + $0x528] sm:$0xff] }
 0x48c   :  { %v2085_v32 = vpop.f32.mrf.mxu0 }
 0x48d   :  { %v2086_v46 = vadd.f32 %v2085_v32, %v2016_v30  ;;  %v2343_v30 = vld [vmem:[#allocation14 + $0x40] sm:$0xff] }
 0x48e   :  { %v2087_v33 = vpop.f32.mrf.mxu0 }
 0x48f   :  { %v2309_v29 = vsel %vm2308_vm6, %v2086_v46, 0.0  ;;  %v2364_v46 = vld [vmem:[#allocation14 + $0xe8] sm:$0xff] }
 0x490   :  { %v2310_v42 = vrot.slane %v2309_v29, 4 }
 0x492   :  { %v2311_v45 = vadd.f32 %v2310_v42, %v2309_v29  ;;  %v2351_v29 = vld [vmem:[#allocation14 + $0x80] sm:$0xff]  ;;  %v2340_v42 = vld [vmem:[#allocation14 + $0x28] sm:$0xff] }
 0x494   :  { %v2312_v13 = vrot.slane %v2311_v45, 2 }
 0x496   :  { %v2313_v32 = vadd.f32 %v2312_v13, %v2311_v45  ;;  %v3032_v13 = vld [vmem:[#allocation19 + $0x540] sm:$0xff] }
 0x498   :  { %v2314_v36 = vrot.slane %v2313_v32, 1 }
 0x49a   :  { %v2315_v38 = vadd.f32 %v2314_v36, %v2313_v32  ;;  %v3025_v32 = vld [vmem:[#allocation19 + $0x508] sm:$0xff]  ;;  %v3020_v36 = vld [vmem:[#allocation19 + $0x4e0] sm:$0xff] }
 0x49c   :  { %v2317_v50 = vmul.f32 0.027777778, %v2315_v38  ;;  %v2868_v38 = vld [vmem:[#allocation19 + $0x20] sm:$0xff] }
 0x49e   :  { %v2326_v61 = vmul.f32 %v2317_v50, %v2317_v50 }
 0x4c0   :  { %v2304_v33 = vpop.f32.mrf.mxu0 }
 0x4c1   :  { %v2305_v34 = vadd.f32 %v2304_v33, %v2235_v31  ;;  %v3028_v31 = vld [vmem:[#allocation19 + $0x520] sm:$0xff] }
 0x4c2   :  { %v2306_v3 = vpop.f32.mrf.mxu0  ;;  %v3024_v33 = vld [vmem:[#allocation19 + $0x500] sm:$0xff] }
 0x4c3   :  { %v2318_v35 = vsel %vm2308_vm6, %v2305_v34, 0.0  ;;  %v2873_v34 = vld [vmem:[#allocation19 + $0x48] sm:$0xff] }
 0x4c4   :  { %v2319_v37 = vrot.slane %v2318_v35, 4  ;;  %v3021_v3 = vld [vmem:[#allocation19 + $0x4e8] sm:$0xff]  ;;  %3275 = vmatprep.subr.mxu0 %v2873_v34 }
 0x4c5   :  { %v3093_v34 = vld [vmem:[#allocation19 + $0x728] sm:$0xff] }
 0x4c6   :  { %v2320_v11 = vadd.f32 %v2319_v37, %v2318_v35  ;;  %v2872_v35 = vld [vmem:[#allocation19 + $0x40] sm:$0xff]  ;;  %v2869_v37 = vld [vmem:[#allocation19 + $0x28] sm:$0xff] }
 0x4c7   :  { %3276 = vmatpush1.msra.mxu0 %v2872_v35  ;;  %v3092_v35 = vld [vmem:[#allocation19 + $0x720] sm:$0xff] }
 0x4c8   :  { %v2321_v40 = vrot.slane %v2320_v11, 2  ;;  %3277 = vmatprep.subr.mxu0 %v2869_v37  ;;  %v3089_v37 = vld [vmem:[#allocation19 + $0x708] sm:$0xff] }
 0x4c9   :  { %3278 = vmatpush1.msra.mxu0 %v2868_v38  ;;  %v3088_v38 = vld [vmem:[#allocation19 + $0x700] sm:$0xff] }
 0x4ca   :  { %v2322_v41 = vadd.f32 %v2321_v40, %v2320_v11  ;;  %v3017_v11 = vld [vmem:[#allocation19 + $0x4c8] sm:$0xff]  ;;  %v3016_v40 = vld [vmem:[#allocation19 + $0x4c0] sm:$0xff] }
 0x4cc   :  { %v2323_v54 = vrot.slane %v2322_v41, 1 }
 0x4ce   :  { %v2324_v56 = vadd.f32 %v2323_v54, %v2322_v41  ;;  %v2865_v41 = vld [vmem:[#allocation19 + $0x8] sm:$0xff]  ;;  %v2864_v54 = vld [vmem:[#allocation19] sm:$0xff] }
 0x4cf   :  { %3279 = vmatprep.subr.mxu0 %v2865_v41  ;;  %v3085_v41 = vld [vmem:[#allocation19 + $0x6e8] sm:$0xff] }
 0x4d0   :  { %v2325_v5 = vmul.f32 0.027777778, %v2324_v56  ;;  %v3012_v56 = vld [vmem:[#allocation19 + $0x4a0] sm:$0xff]  ;;  %3280 = vmatpush1.msra.mxu0 %v2864_v54 }
 0x4d1   :  { %v3084_v54 = vld [vmem:[#allocation19 + $0x6e0] sm:$0xff] }
 0x4d2   :  { %v2327_v9 = vsub.f32 %v2325_v5, %v2326_v61  ;;  %v2989_v61 = vld [vmem:[#allocation19 + $0x3e8] sm:$0xff] }
 0x4d3   :  { %v3009_v5 = vld [vmem:[#allocation19 + $0x488] sm:$0xff]  ;;  %3281 = vmatprep.subr.mxu0 %v2989_v61 }
 0x4d4   :  { %v2328_v17 = vadd.f32 1e-05, %v2327_v9  ;;  %v2988_v9 = vld [vmem:[#allocation19 + $0x3e0] sm:$0xff]  ;;  %v3081_v61 = vld [vmem:[#allocation19 + $0x6c8] sm:$0xff] }
 0x4d5   :  { %3282 = vmatpush2.msra.mxu0 %v2988_v9  ;;  %v3080_v9 = vld [vmem:[#allocation19 + $0x6c0] sm:$0xff] }
 0x4d6   :  { %4322 = vrsqrt.f32 %v2328_v17  ;;  %v3008_v17 = vld [vmem:[#allocation19 + $0x480] sm:$0xff] }
 0x4e3   :  { %v4323_v25 = vpop.eup %4322 }
 0x4e4   :  { %v2331_v27 = vmul.f32 %v4323_v25, %v2330_v12  ;;  %v2985_v12 = vld [vmem:[#allocation19 + $0x3c8] sm:$0xff] }
 0x4e5   :  { %v3005_v25 = vld [vmem:[#allocation19 + $0x468] sm:$0xff]  ;;  %3283 = vmatprep.subr.mxu0 %v2985_v12 }
 0x4e6   :  { %4113 = vmatmul.mubr.msk.f32.vlgmr.msra.gmra.mxu1 %vm2365_vm7, %v2331_v27  ;;  %v2333_v45 = vmul.f32 %v2331_v27, %v2317_v50  ;;  %v3013_v50 = vld [vmem:[#allocation19 + $0x4a8] sm:$0xff] }
 0x4e7   :  { %2463 = vmatpush1.msra.mxu1 %v2361_v28  ;;  %2504 = vmatprep.mubr.f32.mxu1 %v5973_v7  ;;  %v3077_v12 = vld [vmem:[#allocation19 + $0x6a8] sm:$0xff] }
 0x4e8   :  { %2464 = vmatprep.subr.mxu1 %v2356_v19 }
 0x4e9   :  { %2465 = vmatpush1.msra.mxu1 %v2355_v14 }
 0x4ea   :  { %2466 = vmatprep.subr.mxu1 %v2350_v16 }
 0x4eb   :  { %2467 = vmatpush1.msra.mxu1 %v2349_v18 }
 0x4ec   :  { %2468 = vmatprep.subr.mxu1 %v2344_v23 }
 0x4ed   :  { %2469 = vmatpush1.msra.mxu1 %v2343_v30 }
 0x4ee   :  { %2470 = vmatprep.subr.mxu1 %v2338_v39 }
 0x4ef   :  { %2471 = vmatpush1.msra.mxu1 %v2337_v44 }
 0x4f0   :  { %4114 = vmatmul.mubr.msk.f32.vlgmr.msra.gmra.mxu1 %vm2365_vm7, %v2331_v27  ;;  %2533 = vmatprep.subr.mxu1 %v2364_v46 }
 0x4f1   :  { %2534 = vmatpush1.msra.mxu1 %v2363_v48  ;;  %2575 = vmatprep.mubr.f32.mxu1 %v5973_v7 }
 0x4f2   :  { %2535 = vmatprep.subr.mxu1 %v2358_v52 }
 0x4f3   :  { %2536 = vmatpush1.msra.mxu1 %v2357_v63 }
 0x4f4   :  { %2537 = vmatprep.subr.mxu1 %v2352_v60 }
 0x4f5   :  { %2538 = vmatpush1.msra.mxu1 %v2351_v29 }
 0x4f6   :  { %2539 = vmatprep.subr.mxu1 %v2346_v0 }
 0x4f7   :  { %2540 = vmatpush1.msra.mxu1 %v2345_v49 }
 0x4f8   :  { %2541 = vmatprep.subr.mxu1 %v2340_v42 }
 0x4f9   :  { %2542 = vmatpush1.msra.mxu1 %v2339_v43 }
 0x4fa   :  { %4115 = vmatmul.mubr.msk.f32.vlgmr.msra.gmra.mxu1 %vm2365_vm7, %v2331_v27  ;;  %2607 = vmatprep.subr.mxu1 %v5645_v51  ;;  %v2334_v51 = vsub.f32 %v2332_v47, %v2333_v45  ;;  %v2984_v27 = vld [vmem:[#allocation19 + $0x3c0] sm:$0xff] }
 0x4fb   :  { %2608 = vmatpush1.msra.mxu1 %v5647_v53  ;;  %2649 = vmatprep.mubr.f32.mxu1 %v5973_v7  ;;  %v3053_v53 = vld [vmem:[#allocation19 + $0x5e8] sm:$0xff]  ;;  %v2964_v45 = vld [vmem:[#allocation19 + $0x320] sm:$0xff] }
 0x4fc   :  { %2609 = vmatprep.subr.mxu1 %v5649_v55  ;;  %v3052_v55 = vld [vmem:[#allocation19 + $0x5e0] sm:$0xff]  ;;  %3284 = vmatpush2.msra.mxu0 %v2984_v27 }
 0x4fd   :  { %2610 = vmatpush1.msra.mxu1 %v5652_v57  ;;  %v3049_v57 = vld [vmem:[#allocation19 + $0x5c8] sm:$0xff]  ;;  %v3112_v47 = vld [vmem:[#allocation19 + $0x7c0] sm:$0xff] }
 0x4fe   :  { %2611 = vmatprep.subr.mxu1 %v5655_v62  ;;  %v3048_v62 = vld [vmem:[#allocation19 + $0x5c0] sm:$0xff] }
 0x4ff   :  { %2612 = vmatpush1.msra.mxu1 %v5658_v1  ;;  %v3045_v1 = vld [vmem:[#allocation19 + $0x5a8] sm:$0xff]  ;;  %v3076_v27 = vld [vmem:[#allocation19 + $0x6a0] sm:$0xff] }
 0x500   :  { %2613 = vmatprep.subr.mxu1 %v5661_v4  ;;  %v3044_v4 = vld [vmem:[#allocation19 + $0x5a0] sm:$0xff] }
 0x501   :  { %2614 = vmatpush1.msra.mxu1 %v5664_v59  ;;  %v3040_v59 = vld [vmem:[#allocation19 + $0x580] sm:$0xff] }
 0x502   :  { %2615 = vmatprep.subr.mxu1 %v5667_v15  ;;  %v3037_v15 = vld [vmem:[#allocation19 + $0x568] sm:$0xff] }
 0x503   :  { %2616 = vmatpush1.msra.mxu1 %v5670_v21  ;;  %v3036_v21 = vld [vmem:[#allocation19 + $0x560] sm:$0xff] }
 0x504   :  { %4116 = vmatmul.mubr.msk.f32.vlgmr.msra.gmra.mxu1 %vm2365_vm7, %v2334_v51  ;;  %2678 = vmatprep.subr.mxu1 %v5673_v24  ;;  %v3033_v24 = vld [vmem:[#allocation19 + $0x548] sm:$0xff] }
 0x505   :  { %2679 = vmatpush1.msra.mxu1 %v2361_v28  ;;  %2720 = vmatprep.mubr.f32.mxu1 %v5973_v7  ;;  %v3004_v28 = vld [vmem:[#allocation19 + $0x460] sm:$0xff] }
 0x506   :  { %2680 = vmatprep.subr.mxu1 %v2356_v19  ;;  %v2981_v19 = vld [vmem:[#allocation19 + $0x3a8] sm:$0xff] }
 0x507   :  { %2681 = vmatpush1.msra.mxu1 %v2355_v14  ;;  %v3001_v14 = vld [vmem:[#allocation19 + $0x448] sm:$0xff]  ;;  %3285 = vmatprep.subr.mxu0 %v2981_v19 }
 0x508   :  { %2682 = vmatprep.subr.mxu1 %v2350_v16  ;;  %v2980_v16 = vld [vmem:[#allocation19 + $0x3a0] sm:$0xff]  ;;  %v3181_v19 = vld [vmem:[#allocation19 + $0x9e8] sm:$0xff] }
 0x509   :  { %2683 = vmatpush1.msra.mxu1 %v2349_v18  ;;  %v3000_v18 = vld [vmem:[#allocation19 + $0x440] sm:$0xff]  ;;  %3286 = vmatpush2.msra.mxu0 %v2980_v16  ;;  %v3069_v16 = vld [vmem:[#allocation19 + $0x668] sm:$0xff] }
 0x50a   :  { %2684 = vmatprep.subr.mxu1 %v2344_v23  ;;  %v2977_v23 = vld [vmem:[#allocation19 + $0x388] sm:$0xff] }
 0x50b   :  { %2685 = vmatpush1.msra.mxu1 %v2343_v30  ;;  %v2997_v30 = vld [vmem:[#allocation19 + $0x428] sm:$0xff]  ;;  %3287 = vmatprep.subr.mxu0 %v2977_v23 }
 0x50c   :  { %2686 = vmatprep.subr.mxu1 %v2338_v39  ;;  %v2976_v39 = vld [vmem:[#allocation19 + $0x380] sm:$0xff]  ;;  %v3065_v23 = vld [vmem:[#allocation19 + $0x648] sm:$0xff] }
 0x50d   :  { %2687 = vmatpush1.msra.mxu1 %v2337_v44  ;;  %v2996_v44 = vld [vmem:[#allocation19 + $0x420] sm:$0xff]  ;;  %3288 = vmatpush2.msra.mxu0 %v2976_v39  ;;  %v3061_v39 = vld [vmem:[#allocation19 + $0x628] sm:$0xff] }
 0x50e   :  { %4117 = vmatmul.mubr.msk.f32.vlgmr.msra.gmra.mxu1 %vm2365_vm7, %v2334_v51  ;;  %2749 = vmatprep.subr.mxu1 %v2364_v46  ;;  %v2973_v46 = vld [vmem:[#allocation19 + $0x368] sm:$0xff] }
 0x50f   :  { %2750 = vmatpush1.msra.mxu1 %v2363_v48  ;;  %2791 = vmatprep.mubr.f32.mxu1 %v5973_v7  ;;  %v3041_v7 = vld [vmem:[#allocation19 + $0x588] sm:$0xff] }
 0x510   :  { %2751 = vmatprep.subr.mxu1 %v2358_v52  ;;  %v2993_v48 = vld [vmem:[#allocation19 + $0x408] sm:$0xff]  ;;  %3289 = vmatprep.subr.mxu0 %v2973_v46  ;;  %v2972_v52 = vld [vmem:[#allocation19 + $0x360] sm:$0xff] }
 0x511   :  { %2752 = vmatpush1.msra.mxu1 %v2357_v63  ;;  %v2992_v63 = vld [vmem:[#allocation19 + $0x400] sm:$0xff]  ;;  %3290 = vmatpush2.msra.mxu0 %v2972_v52  ;;  %v3057_v46 = vld [vmem:[#allocation19 + $0x608] sm:$0xff]  ;;  %v2927_v52 = vld [vmem:[#allocation19 + $0x1f8] sm:$0xff] }
 0x512   :  { %2753 = vmatprep.subr.mxu1 %v2352_v60  ;;  %v2969_v60 = vld [vmem:[#allocation19 + $0x348] sm:$0xff] }
 0x513   :  { %2754 = vmatpush1.msra.mxu1 %v2351_v29  ;;  %v3117_v29 = vld [vmem:[#allocation19 + $0x7e8] sm:$0xff]  ;;  %3291 = vmatprep.subr.mxu0 %v2969_v60 }
 0x514   :  { %2755 = vmatprep.subr.mxu1 %v2346_v0  ;;  %v2968_v0 = vld [vmem:[#allocation19 + $0x340] sm:$0xff] }
 0x515   :  { %2756 = vmatpush1.msra.mxu1 %v2345_v49  ;;  %v3116_v49 = vld [vmem:[#allocation19 + $0x7e0] sm:$0xff]  ;;  %3292 = vmatpush2.msra.mxu0 %v2968_v0 }
 0x516   :  { %2757 = vmatprep.subr.mxu1 %v2340_v42  ;;  %v2965_v42 = vld [vmem:[#allocation19 + $0x328] sm:$0xff] }
 0x517   :  { %2758 = vmatpush1.msra.mxu1 %v2339_v43  ;;  %v3113_v43 = vld [vmem:[#allocation19 + $0x7c8] sm:$0xff]  ;;  %3293 = vmatprep.subr.mxu0 %v2965_v42  ;;  %v6047_v42 = vld [vmem:[#allocation37_spill] sm:$0xff] }
 0x518   :  { %4118 = vmatmul.mubr.msk.f32.vlgmr.msra.gmra.mxu1 %vm2365_vm7, %v2334_v51  ;;  %3320 = vmatprep.subr.mxu1 %v3053_v53  ;;  %v2961_v51 = vld [vmem:[#allocation19 + $0x308] sm:$0xff] }
 0x519   :  { %3321 = vmatpush1.msra.mxu1 %v3052_v55  ;;  %3294 = vmatpush2.msra.mxu0 %v2964_v45  ;;  %v3109_v53 = vld [vmem:[#allocation19 + $0x7a8] sm:$0xff]  ;;  %v2960_v55 = vld [vmem:[#allocation19 + $0x300] sm:$0xff] }
 0x51a   :  { %3322 = vmatprep.subr.mxu1 %v3049_v57  ;;  %3295 = vmatprep.subr.mxu0 %v2961_v51  ;;  %v3108_v57 = vld [vmem:[#allocation19 + $0x7a0] sm:$0xff] }
 0x51b   :  { %3323 = vmatpush1.msra.mxu1 %v3048_v62  ;;  %3296 = vmatpush2.msra.mxu0 %v2960_v55  ;;  %v2957_v62 = vld [vmem:[#allocation19 + $0x2e8] sm:$0xff] }
 0x51c   :  { %3324 = vmatprep.subr.mxu1 %v3045_v1  ;;  %v3105_v1 = vld [vmem:[#allocation19 + $0x788] sm:$0xff]  ;;  %3297 = vmatprep.subr.mxu0 %v2957_v62 }
 0x51d   :  { %3325 = vmatpush1.msra.mxu1 %v3044_v4  ;;  %v2956_v4 = vld [vmem:[#allocation19 + $0x2e0] sm:$0xff] }
 0x51e   :  { %3326 = vmatprep.subr.mxu1 %v3041_v7  ;;  %v3104_v7 = vld [vmem:[#allocation19 + $0x780] sm:$0xff]  ;;  %3298 = vmatpush2.msra.mxu0 %v2956_v4 }
 0x51f   :  { %3327 = vmatpush1.msra.mxu1 %v3040_v59  ;;  %v2953_v59 = vld [vmem:[#allocation19 + $0x2c8] sm:$0xff] }
 0x520   :  { %3328 = vmatprep.subr.mxu1 %v3037_v15  ;;  %v3101_v15 = vld [vmem:[#allocation19 + $0x768] sm:$0xff]  ;;  %3299 = vmatprep.subr.mxu0 %v2953_v59 }
 0x521   :  { %3329 = vmatpush1.msra.mxu1 %v3036_v21  ;;  %v2952_v21 = vld [vmem:[#allocation19 + $0x2c0] sm:$0xff] }
 0x522   :  { %3330 = vmatprep.subr.mxu1 %v3033_v24  ;;  %v3100_v24 = vld [vmem:[#allocation19 + $0x760] sm:$0xff]  ;;  %3300 = vmatpush2.msra.mxu0 %v2952_v21 }
 0x523   :  { %3331 = vmatpush1.msra.mxu1 %v3032_v13  ;;  %v2949_v13 = vld [vmem:[#allocation19 + $0x2a8] sm:$0xff] }
 0x524   :  { %3332 = vmatprep.subr.mxu1 %v3029_v26  ;;  %v3097_v26 = vld [vmem:[#allocation19 + $0x748] sm:$0xff]  ;;  %3301 = vmatprep.subr.mxu0 %v2949_v13 }
 0x525   :  { %3333 = vmatpush1.msra.mxu1 %v3028_v31  ;;  %v2948_v31 = vld [vmem:[#allocation19 + $0x2a0] sm:$0xff] }
 0x526   :  { %3334 = vmatprep.subr.mxu1 %v3025_v32  ;;  %v3096_v32 = vld [vmem:[#allocation19 + $0x740] sm:$0xff]  ;;  %3302 = vmatpush2.msra.mxu0 %v2948_v31 }
 0x527   :  { %3335 = vmatpush1.msra.mxu1 %v3024_v33  ;;  %v2945_v33 = vld [vmem:[#allocation19 + $0x288] sm:$0xff] }
 0x528   :  { %3336 = vmatprep.subr.mxu1 %v3021_v3  ;;  %3303 = vmatprep.subr.mxu0 %v2945_v33  ;;  %v2944_v3 = vld [vmem:[#allocation19 + $0x280] sm:$0xff] }
 0x529   :  { %3337 = vmatpush1.msra.mxu1 %v3020_v36  ;;  %3304 = vmatpush2.msra.mxu0 %v2944_v3  ;;  %v2941_v36 = vld [vmem:[#allocation19 + $0x268] sm:$0xff]  ;;  %v3172_v3 = vld [vmem:[#allocation19 + $0x9a0] sm:$0xff] }
 0x52a   :  { %3338 = vmatprep.subr.mxu1 %v3017_v11  ;;  %3305 = vmatprep.subr.mxu0 %v2941_v36  ;;  %v2940_v11 = vld [vmem:[#allocation19 + $0x260] sm:$0xff] }
 0x52b   :  { %3339 = vmatpush1.msra.mxu1 %v3016_v40  ;;  %3306 = vmatpush2.msra.mxu0 %v2940_v11  ;;  %v2937_v40 = vld [vmem:[#allocation19 + $0x248] sm:$0xff] }
 0x52c   :  { %3340 = vmatprep.subr.mxu1 %v3013_v50  ;;  %3307 = vmatprep.subr.mxu0 %v2937_v40  ;;  %v2936_v50 = vld [vmem:[#allocation19 + $0x240] sm:$0xff] }
 0x52d   :  { %3341 = vmatpush1.msra.mxu1 %v3012_v56  ;;  %3308 = vmatpush2.msra.mxu0 %v2936_v50  ;;  %v2933_v56 = vld [vmem:[#allocation19 + $0x228] sm:$0xff]  ;;  %v3164_v50 = vld [vmem:[#allocation19 + $0x960] sm:$0xff] }
 0x52e   :  { %3342 = vmatprep.subr.mxu1 %v3009_v5  ;;  %3309 = vmatprep.subr.mxu0 %v2933_v56  ;;  %v2932_v5 = vld [vmem:[#allocation19 + $0x220] sm:$0xff] }
 0x52f   :  { %3343 = vmatpush1.msra.mxu1 %v3008_v17  ;;  %3310 = vmatpush2.msra.mxu0 %v2932_v5  ;;  %v2929_v17 = vld [vmem:[#allocation19 + $0x208] sm:$0xff]  ;;  %v3160_v56 = vld [vmem:[#allocation19 + $0x940] sm:$0xff] }
 0x530   :  { %3344 = vmatprep.subr.mxu1 %v3005_v25  ;;  %3311 = vmatprep.subr.mxu0 %v2929_v17  ;;  %v2928_v25 = vld [vmem:[#allocation19 + $0x200] sm:$0xff]  ;;  %v2923_v17 = vld [vmem:[#allocation19 + $0x1d8] sm:$0xff] }
 0x531   :  { %3345 = vmatpush1.msra.mxu1 %v3004_v28  ;;  %3312 = vmatpush2.msra.mxu0 %v2928_v25  ;;  %v3073_v28 = vld [vmem:[#allocation19 + $0x688] sm:$0xff]  ;;  %v3156_v25 = vld [vmem:[#allocation19 + $0x920] sm:$0xff] }
 0x532   :  { %3346 = vmatprep.subr.mxu1 %v3001_v14  ;;  %3391 = vmatprep.subr.mxu0 %v3181_v19  ;;  %v3072_v14 = vld [vmem:[#allocation19 + $0x680] sm:$0xff] }
 0x533   :  { %3347 = vmatpush1.msra.mxu1 %v3000_v18  ;;  %v3068_v18 = vld [vmem:[#allocation19 + $0x660] sm:$0xff] }
 0x534   :  { %3348 = vmatprep.subr.mxu1 %v2997_v30  ;;  %v3064_v30 = vld [vmem:[#allocation19 + $0x640] sm:$0xff] }
 0x535   :  { %3349 = vmatpush1.msra.mxu1 %v2996_v44  ;;  %v3060_v44 = vld [vmem:[#allocation19 + $0x620] sm:$0xff] }
 0x536   :  { %3350 = vmatprep.subr.mxu1 %v2993_v48  ;;  %v3056_v48 = vld [vmem:[#allocation19 + $0x600] sm:$0xff] }
 0x537   :  { %3351 = vmatpush1.msra.mxu1 %v2992_v63 }
 0x538   :  { %3352 = vmatprep.subr.mxu1 %v3117_v29 }
 0x539   :  { %3353 = vmatpush2.msra.mxu1 %v3116_v49 }
 0x53a   :  { %3354 = vmatprep.subr.mxu1 %v3113_v43 }
 0x53b   :  { %3355 = vmatpush2.msra.mxu1 %v3112_v47 }
 0x53c   :  { %3356 = vmatprep.subr.mxu1 %v3109_v53 }
 0x53d   :  { %3357 = vmatpush2.msra.mxu1 %v3108_v57 }
 0x53e   :  { %3358 = vmatprep.subr.mxu1 %v3105_v1 }
 0x53f   :  { %3359 = vmatpush2.msra.mxu1 %v3104_v7 }
 0x540   :  { %3360 = vmatprep.subr.mxu1 %v3101_v15 }
 0x541   :  { %3361 = vmatpush2.msra.mxu1 %v3100_v24  ;;  %v3180_v24 = vld [vmem:[#allocation19 + $0x9e0] sm:$0xff] }
 0x542   :  { %3362 = vmatprep.subr.mxu1 %v3097_v26  ;;  %v3177_v26 = vld [vmem:[#allocation19 + $0x9c8] sm:$0xff] }
 0x543   :  { %3363 = vmatpush2.msra.mxu1 %v3096_v32  ;;  %v3173_v32 = vld [vmem:[#allocation19 + $0x9a8] sm:$0xff] }
 0x544   :  { %3364 = vmatprep.subr.mxu1 %v3093_v34 }
 0x545   :  { %3365 = vmatpush2.msra.mxu1 %v3092_v35 }
 0x546   :  { %3366 = vmatprep.subr.mxu1 %v3089_v37  ;;  %v3169_v37 = vld [vmem:[#allocation19 + $0x988] sm:$0xff] }
 0x547   :  { %3367 = vmatpush2.msra.mxu1 %v3088_v38  ;;  %v3168_v38 = vld [vmem:[#allocation19 + $0x980] sm:$0xff] }
 0x548   :  { %3368 = vmatprep.subr.mxu1 %v3085_v41  ;;  %v3165_v41 = vld [vmem:[#allocation19 + $0x968] sm:$0xff] }
 0x549   :  { %3369 = vmatpush2.msra.mxu1 %v3084_v54  ;;  %v3161_v54 = vld [vmem:[#allocation19 + $0x948] sm:$0xff] }
 0x54a   :  { %3370 = vmatprep.subr.mxu1 %v3081_v61  ;;  %v2926_v61 = vld [vmem:[#allocation19 + $0x1f0] sm:$0xff] }
 0x54b   :  { %3371 = vmatpush2.msra.mxu1 %v3080_v9  ;;  %v3157_v9 = vld [vmem:[#allocation19 + $0x928] sm:$0xff] }
 0x54c   :  { %3372 = vmatprep.subr.mxu1 %v3077_v12 }
 0x54d   :  { %3373 = vmatpush2.msra.mxu1 %v3076_v27  ;;  %v2922_v27 = vld [vmem:[#allocation19 + $0x1d0] sm:$0xff] }
 0x54e   :  { %3374 = vmatprep.subr.mxu1 %v3073_v28  ;;  %v3153_v28 = vld [vmem:[#allocation19 + $0x908] sm:$0xff] }
 0x54f   :  { %3375 = vmatpush2.msra.mxu1 %v3072_v14  ;;  %v2919_v14 = vld [vmem:[#allocation19 + $0x1b8] sm:$0xff] }
 0x550   :  { %3376 = vmatprep.subr.mxu1 %v3069_v16  ;;  %v3152_v16 = vld [vmem:[#allocation19 + $0x900] sm:$0xff] }
 0x551   :  { %3377 = vmatpush2.msra.mxu1 %v3068_v18 }
 0x552   :  { %3378 = vmatprep.subr.mxu1 %v3065_v23 }
 0x553   :  { %3379 = vmatpush2.msra.mxu1 %v3064_v30  ;;  %v2918_v30 = vld [vmem:[#allocation19 + $0x1b0] sm:$0xff] }
 0x554   :  { %3380 = vmatprep.subr.mxu1 %v3061_v39  ;;  %v3149_v39 = vld [vmem:[#allocation19 + $0x8e8] sm:$0xff] }
 0x555   :  { %3381 = vmatpush2.msra.mxu1 %v3060_v44  ;;  %v2915_v44 = vld [vmem:[#allocation19 + $0x198] sm:$0xff] }
 0x556   :  { %3382 = vmatprep.subr.mxu1 %v3057_v46  ;;  %v3148_v46 = vld [vmem:[#allocation19 + $0x8e0] sm:$0xff] }
 0x557   :  { %3383 = vmatpush2.msra.mxu1 %v3056_v48 }
 0x558   :  { %3462 = vmatprep.subr.mxu1 %v2927_v52  ;;  %v2914_v52 = vld [vmem:[#allocation19 + $0x190] sm:$0xff] }
 0x5a6   :  { %v2435_v63 = vpop.f32.mrf.mxu1 }
 0x5a7   :  { %v2801_v43 = vrot.slane %v2435_v63, %v6047_v42  ;;  %v3145_v63 = vld [vmem:[#allocation19 + $0x8c8] sm:$0xff] }
 0x5a8   :  { %v2437_v60 = vpop.f32.mrf.mxu1 }
 0x5a9   :  { %v2805_v47 = vrot.slane %v2437_v60, %v6047_v42  ;;  %v2822_v55 = vmul.f32 %v2801_v43, %v5309_v6  ;;  %v3176_v6 = vld [vmem:[#allocation19 + $0x9c0] sm:$0xff]  ;;  %v2911_v60 = vld [vmem:[#allocation19 + $0x178] sm:$0xff]  ;;  %v3141_v43 = vld [vmem:[#allocation19 + $0x8a8] sm:$0xff] }
 0x5ab   :  { %v2823_v62 = vmul.f32 %v2805_v47, %v5307_v8  ;;  %v3140_v47 = vld [vmem:[#allocation19 + $0x8a0] sm:$0xff] }
 0x5b0   :  { %v2506_v29 = vpop.f32.mrf.mxu1 }
 0x5b1   :  { %v2809_v15 = vrot.slane %v2506_v29, %v6047_v42 }
 0x5b2   :  { %v2508_v0 = vpop.f32.mrf.mxu1 }
 0x5b3   :  { %v2813_v13 = vrot.slane %v2508_v0, %v6047_v42  ;;  %v2824_v33 = vmul.f32 %v2809_v15, %v5501_v20  ;;  %v2910_v0 = vld [vmem:[#allocation19 + $0x170] sm:$0xff] }
 0x5b4   :  { %v2898_v15 = vld [vmem:[#allocation19 + $0x110] sm:$0xff] }
 0x5b5   :  { %v2825_v35 = vmul.f32 %v2813_v13, %v5499_v22  ;;  %v2895_v13 = vld [vmem:[#allocation19 + $0xf8] sm:$0xff] }
 0x5ba   :  { %v5702_v49 = vpop.f32.mrf.mxu1 }
 0x5bc   :  { %v5705_v45 = vpop.f32.mrf.mxu1 }
 0x5bd   :  { %v2821_v5 = vrot.slane %v5705_v45, %v6047_v42  ;;  %v2907_v45 = vld [vmem:[#allocation19 + $0x158] sm:$0xff] }
 0x5bf   :  { %v2827_v18 = vmul.f32 %v2821_v5, %v5582_v2  ;;  %v3144_v2 = vld [vmem:[#allocation19 + $0x8c0] sm:$0xff]  ;;  %v2878_v5 = vld [vmem:[#allocation19 + $0x70] sm:$0xff] }
 0x5c4   :  { %v2651_v51 = vpop.f32.mrf.mxu1 }
 0x5c5   :  { %v2831_v53 = vrot.slane %v2651_v51, %v6047_v42  ;;  %v2906_v51 = vld [vmem:[#allocation19 + $0x150] sm:$0xff] }
 0x5c6   :  { %v2653_v57 = vpop.f32.mrf.mxu1 }
 0x5c7   :  { %v2835_v1 = vrot.slane %v2653_v57, %v6047_v42  ;;  %v5712_v4 = vadd.f32 %v2831_v53, %v2822_v55  ;;  %v3137_v53 = vld [vmem:[#allocation19 + $0x888] sm:$0xff]  ;;  %v2903_v55 = vld [vmem:[#allocation19 + $0x138] sm:$0xff]  ;;  %v3136_v57 = vld [vmem:[#allocation19 + $0x880] sm:$0xff] }
 0x5c9   :  { %v2853_v7 = vadd.f32 %v2835_v1, %v2823_v62  ;;  %v2858_v21 = vmax.f32 %v5712_v4, 0.0  ;;  %v2902_v62 = vld [vmem:[#allocation19 + $0x130] sm:$0xff]  ;;  %v3133_v1 = vld [vmem:[#allocation19 + $0x868] sm:$0xff]  ;;  %v2999_v4 = vld [vmem:[#allocation19 + $0x438] sm:$0xff] }
 0x5cb   :  { %v2859_v59 = vmax.f32 %v2853_v7, 0.0  ;;  %v2899_v7 = vld [vmem:[#allocation19 + $0x118] sm:$0xff] }
 0x5cd   :  { %3313 = vmatprep.mubr.f32.mxu0 %v2859_v59 }
 0x5ce   :  { %v2722_v31 = vpop.f32.mrf.mxu1  ;;  %3314 = vmatmul.mubr.f32.vlgmr.msra.gmra.mxu0 %v2858_v21 }
 0x5cf   :  { %v2839_v8 = vrot.slane %v2722_v31, %v6047_v42  ;;  %3392 = vmatpush1.msra.mxu0 %v3180_v24  ;;  %v3129_v24 = vld [vmem:[#allocation19 + $0x848] sm:$0xff]  ;;  %v2894_v31 = vld [vmem:[#allocation19 + $0xf0] sm:$0xff] }
 0x5d0   :  { %3393 = vmatprep.subr.mxu0 %v3177_v26  ;;  %v2724_v34 = vpop.f32.mrf.mxu1  ;;  %v3128_v26 = vld [vmem:[#allocation19 + $0x840] sm:$0xff] }
 0x5d1   :  { %v2843_v36 = vrot.slane %v2724_v34, %v6047_v42  ;;  %3394 = vmatpush1.msra.mxu0 %v3176_v6  ;;  %v5723_v11 = vadd.f32 %v2839_v8, %v2824_v33  ;;  %v3125_v6 = vld [vmem:[#allocation19 + $0x828] sm:$0xff]  ;;  %v2891_v8 = vld [vmem:[#allocation19 + $0xd8] sm:$0xff]  ;;  %v2890_v33 = vld [vmem:[#allocation19 + $0xd0] sm:$0xff] }
 0x5d2   :  { %3395 = vmatprep.subr.mxu0 %v3173_v32  ;;  %v3124_v32 = vld [vmem:[#allocation19 + $0x820] sm:$0xff]  ;;  %v3121_v34 = vld [vmem:[#allocation19 + $0x808] sm:$0xff] }
 0x5d3   :  { %v5725_v40 = vadd.f32 %v2843_v36, %v2825_v35  ;;  %3396 = vmatpush1.msra.mxu0 %v3172_v3  ;;  %v2860_v22 = vmax.f32 %v5723_v11, 0.0  ;;  %v2887_v3 = vld [vmem:[#allocation19 + $0xb8] sm:$0xff]  ;;  %v3120_v35 = vld [vmem:[#allocation19 + $0x800] sm:$0xff]  ;;  %v2886_v36 = vld [vmem:[#allocation19 + $0xb0] sm:$0xff] }
 0x5d4   :  { %3397 = vmatprep.subr.mxu0 %v3169_v37  ;;  %v3221_v37 = vld [vmem:[#allocation19 + $0xb28] sm:$0xff] }
 0x5d5   :  { %v2861_v20 = vmax.f32 %v5725_v40, 0.0  ;;  %3398 = vmatpush1.msra.mxu0 %v3168_v38  ;;  %v2883_v38 = vld [vmem:[#allocation19 + $0x98] sm:$0xff]  ;;  %v2954_v40 = vld [vmem:[#allocation19 + $0x2d0] sm:$0xff] }
 0x5d6   :  { %3399 = vmatprep.subr.mxu0 %v3165_v41  ;;  %v3220_v41 = vld [vmem:[#allocation19 + $0xb20] sm:$0xff]  ;;  %v3704_v11 = vld [vmem:[#allocation22 + $0xc8] sm:$0xff] }
 0x5d7   :  { %3400 = vmatpush1.msra.mxu0 %v3164_v50  ;;  %3384 = vmatprep.mubr.f32.mxu1 %v2861_v20  ;;  %v2882_v50 = vld [vmem:[#allocation19 + $0x90] sm:$0xff] }
 0x5d8   :  { %3401 = vmatprep.subr.mxu0 %v3161_v54  ;;  %v5733_v12 = vpop.f32.mrf.mxu1  ;;  %3385 = vmatmul.mubr.f32.vlgmr.msra.gmra.mxu1 %v2860_v22  ;;  %v3217_v54 = vld [vmem:[#allocation19 + $0xb08] sm:$0xff] }
 0x5d9   :  { %3402 = vmatpush1.msra.mxu0 %v3160_v56  ;;  %3463 = vmatpush1.msra.mxu1 %v2926_v61  ;;  %v2879_v56 = vld [vmem:[#allocation19 + $0x78] sm:$0xff]  ;;  %v3216_v61 = vld [vmem:[#allocation19 + $0xb00] sm:$0xff] }
 0x5da   :  { %3403 = vmatprep.subr.mxu0 %v3157_v9  ;;  %3464 = vmatprep.subr.mxu1 %v2923_v17  ;;  %v2795_v19 = vpop.f32.mrf.mxu1  ;;  %v3213_v9 = vld [vmem:[#allocation19 + $0xae8] sm:$0xff]  ;;  %v2875_v17 = vld [vmem:[#allocation19 + $0x58] sm:$0xff] }
 0x5db   :  { %3526 = vmatprep.mubr.f32.mxu1 %v2859_v59  ;;  %v2851_v23 = vrot.slane %v2795_v19, %v6047_v42  ;;  %3404 = vmatpush1.msra.mxu0 %v3156_v25  ;;  %v3132_v59 = vld [vmem:[#allocation19 + $0x860] sm:$0xff]  ;;  %v2871_v19 = vld [vmem:[#allocation19 + $0x38] sm:$0xff] }
 0x5dc   :  { %3465 = vmatpush1.msra.mxu1 %v2922_v27  ;;  %3405 = vmatprep.subr.mxu0 %v3153_v28  ;;  %v3212_v25 = vld [vmem:[#allocation19 + $0xae0] sm:$0xff]  ;;  %v2874_v27 = vld [vmem:[#allocation19 + $0x50] sm:$0xff]  ;;  %v3209_v28 = vld [vmem:[#allocation19 + $0xac8] sm:$0xff] }
 0x5dd   :  { %v5739_v48 = vadd.f32 %v2851_v23, %v2827_v18  ;;  %3466 = vmatprep.subr.mxu1 %v2919_v14  ;;  %3406 = vmatpush1.msra.mxu0 %v3152_v16  ;;  %v3208_v14 = vld [vmem:[#allocation19 + $0xac0] sm:$0xff]  ;;  %v2870_v16 = vld [vmem:[#allocation19 + $0x30] sm:$0xff]  ;;  %v3205_v18 = vld [vmem:[#allocation19 + $0xaa8] sm:$0xff] }
 0x5de   :  { %3467 = vmatpush1.msra.mxu1 %v2918_v30  ;;  %3407 = vmatprep.subr.mxu0 %v3149_v39  ;;  %v2867_v23 = vld [vmem:[#allocation19 + $0x18] sm:$0xff]  ;;  %v3204_v30 = vld [vmem:[#allocation19 + $0xaa0] sm:$0xff]  ;;  %v2866_v39 = vld [vmem:[#allocation19 + $0x10] sm:$0xff] }
 0x5df   :  { %v2863_v29 = vmax.f32 %v5739_v48, 0.0  ;;  %3468 = vmatprep.subr.mxu1 %v2915_v44  ;;  %3408 = vmatpush1.msra.mxu0 %v3148_v46  ;;  %v3201_v44 = vld [vmem:[#allocation19 + $0xa88] sm:$0xff]  ;;  %v2991_v46 = vld [vmem:[#allocation19 + $0x3f8] sm:$0xff] }
 0x5e0   :  { %3469 = vmatpush1.msra.mxu1 %v2914_v52  ;;  %3409 = vmatprep.subr.mxu0 %v3145_v63  ;;  %v2817_v52 = vrot.slane %v5702_v49, %v6047_v42  ;;  %v3200_v63 = vld [vmem:[#allocation19 + $0xa80] sm:$0xff]  ;;  %v3167_v48 = vld [vmem:[#allocation19 + $0x978] sm:$0xff] }
 0x5e1   :  { %3470 = vmatprep.subr.mxu1 %v2911_v60  ;;  %3410 = vmatpush1.msra.mxu0 %v3144_v2  ;;  %v2990_v60 = vld [vmem:[#allocation19 + $0x3f0] sm:$0xff]  ;;  %v3197_v2 = vld [vmem:[#allocation19 + $0xa68] sm:$0xff] }
 0x5e2   :  { %3471 = vmatpush1.msra.mxu1 %v2910_v0  ;;  %3411 = vmatprep.subr.mxu0 %v3141_v43  ;;  %v2987_v0 = vld [vmem:[#allocation19 + $0x3d8] sm:$0xff]  ;;  %v2847_v43 = vrot.slane %v5733_v12, %v6047_v42  ;;  %v2826_v49 = vmul.f32 %v2817_v52, %v5584_v10  ;;  %v3188_v12 = vld [vmem:[#allocation19 + $0xa20] sm:$0xff] }
 0x5e3   :  { %4119 = vmatprep.mubr.msk.f32.mxu0 %vm1875_vm5, %v2863_v29  ;;  %3472 = vmatprep.subr.mxu1 %v2907_v45  ;;  %v3196_v45 = vld [vmem:[#allocation19 + $0xa60] sm:$0xff]  ;;  %v3023_v52 = vld [vmem:[#allocation19 + $0x4f8] sm:$0xff] }
 0x5e4   :  { %3412 = vmatpush1.msra.mxu0 %v3140_v47  ;;  %3473 = vmatpush1.msra.mxu1 %v2906_v51  ;;  %v2986_v47 = vld [vmem:[#allocation19 + $0x3d0] sm:$0xff]  ;;  %v3193_v51 = vld [vmem:[#allocation19 + $0xa48] sm:$0xff]  ;;  %v3184_v10 = vld [vmem:[#allocation19 + $0xa00] sm:$0xff] }
 0x5e5   :  { %3413 = vmatprep.subr.mxu0 %v3137_v53  ;;  %3474 = vmatprep.subr.mxu1 %v2903_v55  ;;  %v2983_v53 = vld [vmem:[#allocation19 + $0x3b8] sm:$0xff]  ;;  %v3192_v55 = vld [vmem:[#allocation19 + $0xa40] sm:$0xff] }
 0x5e6   :  { %3414 = vmatpush1.msra.mxu0 %v3136_v57  ;;  %3475 = vmatpush1.msra.mxu1 %v2902_v62  ;;  %v2982_v57 = vld [vmem:[#allocation19 + $0x3b0] sm:$0xff]  ;;  %v3189_v62 = vld [vmem:[#allocation19 + $0xa28] sm:$0xff] }
 0x5e7   :  { %3415 = vmatprep.subr.mxu0 %v3133_v1  ;;  %3476 = vmatprep.subr.mxu1 %v2899_v7  ;;  %v2979_v1 = vld [vmem:[#allocation19 + $0x398] sm:$0xff]  ;;  %v5750_v7 = vadd.f32 %v2847_v43, %v2826_v49  ;;  %v2934_v43 = vld [vmem:[#allocation19 + $0x230] sm:$0xff] }
 0x5e8   :  { %3416 = vmatpush1.msra.mxu0 %v3132_v59  ;;  %3477 = vmatpush1.msra.mxu1 %v2898_v15  ;;  %v2978_v59 = vld [vmem:[#allocation19 + $0x390] sm:$0xff]  ;;  %v3185_v15 = vld [vmem:[#allocation19 + $0xa08] sm:$0xff] }
 0x5e9   :  { %3417 = vmatprep.subr.mxu0 %v3129_v24  ;;  %3478 = vmatprep.subr.mxu1 %v2895_v13  ;;  %v2975_v24 = vld [vmem:[#allocation19 + $0x378] sm:$0xff]  ;;  %v2974_v13 = vld [vmem:[#allocation19 + $0x370] sm:$0xff] }
 0x5ea   :  { %3418 = vmatpush1.msra.mxu0 %v3128_v26  ;;  %3479 = vmatpush1.msra.mxu1 %v2894_v31  ;;  %v2971_v26 = vld [vmem:[#allocation19 + $0x358] sm:$0xff]  ;;  %v2862_v31 = vmax.f32 %v5750_v7, 0.0  ;;  %v3014_v49 = vld [vmem:[#allocation19 + $0x4b0] sm:$0xff] }
 0x5eb   :  { %3419 = vmatprep.subr.mxu0 %v3125_v6  ;;  %3480 = vmatprep.subr.mxu1 %v2891_v8  ;;  %v3055_v6 = vld [vmem:[#allocation19 + $0x5f8] sm:$0xff]  ;;  %v2970_v8 = vld [vmem:[#allocation19 + $0x350] sm:$0xff] }
 0x5ec   :  { %3420 = vmatpush1.msra.mxu0 %v3124_v32  ;;  %3481 = vmatpush1.msra.mxu1 %v2890_v33  ;;  %v3054_v32 = vld [vmem:[#allocation19 + $0x5f0] sm:$0xff]  ;;  %v2967_v33 = vld [vmem:[#allocation19 + $0x338] sm:$0xff] }
 0x5ed   :  { %3421 = vmatprep.subr.mxu0 %v3121_v34  ;;  %3482 = vmatprep.subr.mxu1 %v2887_v3  ;;  %v3051_v34 = vld [vmem:[#allocation19 + $0x5d8] sm:$0xff]  ;;  %v2966_v3 = vld [vmem:[#allocation19 + $0x330] sm:$0xff] }
 0x5ee   :  { %3422 = vmatpush1.msra.mxu0 %v3120_v35  ;;  %3483 = vmatpush1.msra.mxu1 %v2886_v36  ;;  %v3050_v35 = vld [vmem:[#allocation19 + $0x5d0] sm:$0xff]  ;;  %v2963_v36 = vld [vmem:[#allocation19 + $0x318] sm:$0xff] }
 0x5ef   :  { %3435 = vmatprep.subr.mxu0 %v3221_v37  ;;  %3484 = vmatprep.subr.mxu1 %v2883_v38  ;;  %v3047_v37 = vld [vmem:[#allocation19 + $0x5b8] sm:$0xff]  ;;  %v2962_v38 = vld [vmem:[#allocation19 + $0x310] sm:$0xff] }
 0x5f0   :  { %3436 = vmatpush2.msra.mxu0 %v3220_v41  ;;  %3485 = vmatpush1.msra.mxu1 %v2882_v50  ;;  %v3046_v41 = vld [vmem:[#allocation19 + $0x5b0] sm:$0xff]  ;;  %v2959_v50 = vld [vmem:[#allocation19 + $0x2f8] sm:$0xff] }
 0x5f1   :  { %3437 = vmatprep.subr.mxu0 %v3217_v54  ;;  %3486 = vmatprep.subr.mxu1 %v2879_v56  ;;  %v3043_v54 = vld [vmem:[#allocation19 + $0x598] sm:$0xff]  ;;  %v2958_v56 = vld [vmem:[#allocation19 + $0x2f0] sm:$0xff] }
 0x5f2   :  { %3438 = vmatpush2.msra.mxu0 %v3216_v61  ;;  %3487 = vmatpush1.msra.mxu1 %v2878_v5  ;;  %v3042_v61 = vld [vmem:[#allocation19 + $0x590] sm:$0xff]  ;;  %v2955_v5 = vld [vmem:[#allocation19 + $0x2d8] sm:$0xff] }
 0x5f3   :  { %3439 = vmatprep.subr.mxu0 %v3213_v9  ;;  %3488 = vmatprep.subr.mxu1 %v2875_v17  ;;  %v3039_v9 = vld [vmem:[#allocation19 + $0x578] sm:$0xff]  ;;  %v3692_v7 = vld [vmem:[#allocation22 + $0x68] sm:$0xff] }
 0x5f4   :  { %3440 = vmatpush2.msra.mxu0 %v3212_v25  ;;  %3489 = vmatpush1.msra.mxu1 %v2874_v27  ;;  %v2951_v17 = vld [vmem:[#allocation19 + $0x2b8] sm:$0xff]  ;;  %v2950_v27 = vld [vmem:[#allocation19 + $0x2b0] sm:$0xff] }
 0x5f5   :  { %3441 = vmatprep.subr.mxu0 %v3209_v28  ;;  %3490 = vmatprep.subr.mxu1 %v2871_v19  ;;  %v3035_v25 = vld [vmem:[#allocation19 + $0x558] sm:$0xff]  ;;  %v3034_v28 = vld [vmem:[#allocation19 + $0x550] sm:$0xff] }
 0x5f6   :  { %3442 = vmatpush2.msra.mxu0 %v3208_v14  ;;  %3491 = vmatpush1.msra.mxu1 %v2870_v16  ;;  %v2947_v19 = vld [vmem:[#allocation19 + $0x298] sm:$0xff]  ;;  %v2946_v16 = vld [vmem:[#allocation19 + $0x290] sm:$0xff] }
 0x5f7   :  { %3443 = vmatprep.subr.mxu0 %v3205_v18  ;;  %3492 = vmatprep.subr.mxu1 %v2867_v23  ;;  %v3031_v14 = vld [vmem:[#allocation19 + $0x538] sm:$0xff]  ;;  %v3030_v18 = vld [vmem:[#allocation19 + $0x530] sm:$0xff] }
 0x5f8   :  { %3444 = vmatpush2.msra.mxu0 %v3204_v30  ;;  %3493 = vmatpush1.msra.mxu1 %v2866_v39  ;;  %v2943_v23 = vld [vmem:[#allocation19 + $0x278] sm:$0xff]  ;;  %v2942_v39 = vld [vmem:[#allocation19 + $0x270] sm:$0xff] }
 0x5f9   :  { %3445 = vmatprep.subr.mxu0 %v3201_v44  ;;  %3494 = vmatprep.subr.mxu1 %v2991_v46  ;;  %v3027_v30 = vld [vmem:[#allocation19 + $0x518] sm:$0xff]  ;;  %v3026_v44 = vld [vmem:[#allocation19 + $0x510] sm:$0xff] }
 0x5fa   :  { %3446 = vmatpush2.msra.mxu0 %v3200_v63  ;;  %3495 = vmatpush2.msra.mxu1 %v2990_v60  ;;  %v2939_v46 = vld [vmem:[#allocation19 + $0x258] sm:$0xff]  ;;  %v2938_v63 = vld [vmem:[#allocation19 + $0x250] sm:$0xff] }
 0x5fb   :  { %3447 = vmatprep.subr.mxu0 %v3197_v2  ;;  %3496 = vmatprep.subr.mxu1 %v2987_v0  ;;  %v3022_v60 = vld [vmem:[#allocation19 + $0x4f0] sm:$0xff]  ;;  %v2935_v2 = vld [vmem:[#allocation19 + $0x238] sm:$0xff] }
 0x5fc   :  { %3448 = vmatpush2.msra.mxu0 %v3196_v45  ;;  %3497 = vmatpush2.msra.mxu1 %v2986_v47  ;;  %v3019_v0 = vld [vmem:[#allocation19 + $0x4d8] sm:$0xff]  ;;  %v3018_v45 = vld [vmem:[#allocation19 + $0x4d0] sm:$0xff] }
 0x5fd   :  { %3449 = vmatprep.subr.mxu0 %v3193_v51  ;;  %3498 = vmatprep.subr.mxu1 %v2983_v53  ;;  %v2931_v47 = vld [vmem:[#allocation19 + $0x218] sm:$0xff]  ;;  %v2930_v53 = vld [vmem:[#allocation19 + $0x210] sm:$0xff] }
 0x5fe   :  { %3450 = vmatpush2.msra.mxu0 %v3192_v55  ;;  %3499 = vmatpush2.msra.mxu1 %v2982_v57  ;;  %v3015_v51 = vld [vmem:[#allocation19 + $0x4b8] sm:$0xff] }
 0x5ff   :  { %3451 = vmatprep.subr.mxu0 %v3189_v62  ;;  %3500 = vmatprep.subr.mxu1 %v2979_v1  ;;  %v3011_v55 = vld [vmem:[#allocation19 + $0x498] sm:$0xff]  ;;  %v3010_v62 = vld [vmem:[#allocation19 + $0x490] sm:$0xff] }
 0x600   :  { %3452 = vmatpush2.msra.mxu0 %v3188_v12  ;;  %3501 = vmatpush2.msra.mxu1 %v2978_v59  ;;  %v3183_v57 = vld [vmem:[#allocation19 + $0x9f8] sm:$0xff]  ;;  %v3182_v1 = vld [vmem:[#allocation19 + $0x9f0] sm:$0xff] }
 0x601   :  { %3453 = vmatprep.subr.mxu0 %v3185_v15  ;;  %3502 = vmatprep.subr.mxu1 %v2975_v24  ;;  %v3007_v12 = vld [vmem:[#allocation19 + $0x478] sm:$0xff]  ;;  %v3006_v15 = vld [vmem:[#allocation19 + $0x470] sm:$0xff] }
 0x602   :  { %3454 = vmatpush2.msra.mxu0 %v3184_v10  ;;  %3503 = vmatpush2.msra.mxu1 %v2974_v13  ;;  %v3179_v59 = vld [vmem:[#allocation19 + $0x9d8] sm:$0xff]  ;;  %v3178_v24 = vld [vmem:[#allocation19 + $0x9d0] sm:$0xff] }
 0x603   :  { %3456 = vmatmul.mubr.f32.vlgmr.msra.gmra.mxu0 %v2862_v31  ;;  %3504 = vmatprep.subr.mxu1 %v2971_v26  ;;  %v3003_v10 = vld [vmem:[#allocation19 + $0x458] sm:$0xff]  ;;  %v3002_v26 = vld [vmem:[#allocation19 + $0x450] sm:$0xff] }
 0x604   :  { %3533 = vmatprep.subr.mxu0 %v3055_v6  ;;  %3505 = vmatpush2.msra.mxu1 %v2970_v8  ;;  %v3175_v13 = vld [vmem:[#allocation19 + $0x9b8] sm:$0xff]  ;;  %v3174_v6 = vld [vmem:[#allocation19 + $0x9b0] sm:$0xff] }
 0x605   :  { %3534 = vmatpush1.msra.mxu0 %v3054_v32  ;;  %3597 = vmatprep.mubr.f32.mxu0 %v2861_v20  ;;  %v3038_v20 = vld [vmem:[#allocation19 + $0x570] sm:$0xff] }
 0x606   :  { %3506 = vmatprep.subr.mxu1 %v2967_v33  ;;  %3535 = vmatprep.subr.mxu0 %v3051_v34  ;;  %v2998_v8 = vld [vmem:[#allocation19 + $0x430] sm:$0xff]  ;;  %v2995_v33 = vld [vmem:[#allocation19 + $0x418] sm:$0xff] }
 0x607   :  { %3507 = vmatpush2.msra.mxu1 %v2966_v3  ;;  %3536 = vmatpush1.msra.mxu0 %v3050_v35  ;;  %v3170_v32 = vld [vmem:[#allocation19 + $0x990] sm:$0xff]  ;;  %v3119_v3 = vld [vmem:[#allocation19 + $0x7f8] sm:$0xff] }
 0x608   :  { %3508 = vmatprep.subr.mxu1 %v2963_v36  ;;  %3537 = vmatprep.subr.mxu0 %v3047_v37  ;;  %v3166_v34 = vld [vmem:[#allocation19 + $0x970] sm:$0xff]  ;;  %v3163_v35 = vld [vmem:[#allocation19 + $0x958] sm:$0xff] }
 0x609   :  { %3509 = vmatpush2.msra.mxu1 %v2962_v38  ;;  %3538 = vmatpush1.msra.mxu0 %v3046_v41  ;;  %v3118_v36 = vld [vmem:[#allocation19 + $0x7f0] sm:$0xff]  ;;  %v3115_v38 = vld [vmem:[#allocation19 + $0x7d8] sm:$0xff] }
 0x60a   :  { %3510 = vmatprep.subr.mxu1 %v2959_v50  ;;  %3539 = vmatprep.subr.mxu0 %v3043_v54  ;;  %v3162_v37 = vld [vmem:[#allocation19 + $0x950] sm:$0xff]  ;;  %v3159_v41 = vld [vmem:[#allocation19 + $0x938] sm:$0xff] }
 0x60b   :  { %3511 = vmatpush2.msra.mxu1 %v2958_v56  ;;  %3540 = vmatpush1.msra.mxu0 %v3042_v61  ;;  %v3114_v50 = vld [vmem:[#allocation19 + $0x7d0] sm:$0xff]  ;;  %v3111_v56 = vld [vmem:[#allocation19 + $0x7b8] sm:$0xff] }
 0x60c   :  { %3512 = vmatprep.subr.mxu1 %v2955_v5  ;;  %3541 = vmatprep.subr.mxu0 %v3039_v9  ;;  %v3158_v54 = vld [vmem:[#allocation19 + $0x930] sm:$0xff]  ;;  %v3155_v61 = vld [vmem:[#allocation19 + $0x918] sm:$0xff] }
 0x60d   :  { %3513 = vmatpush2.msra.mxu1 %v2954_v40  ;;  %3542 = vmatpush1.msra.mxu0 %v3038_v20  ;;  %v3110_v5 = vld [vmem:[#allocation19 + $0x7b0] sm:$0xff]  ;;  %v3107_v40 = vld [vmem:[#allocation19 + $0x798] sm:$0xff] }
 0x60e   :  { %3514 = vmatprep.subr.mxu1 %v2951_v17  ;;  %3543 = vmatprep.subr.mxu0 %v3035_v25  ;;  %v3154_v9 = vld [vmem:[#allocation19 + $0x910] sm:$0xff]  ;;  %v3151_v20 = vld [vmem:[#allocation19 + $0x8f8] sm:$0xff] }
 0x60f   :  { %3515 = vmatpush2.msra.mxu1 %v2950_v27  ;;  %3544 = vmatpush1.msra.mxu0 %v3034_v28  ;;  %v3106_v17 = vld [vmem:[#allocation19 + $0x790] sm:$0xff]  ;;  %v3103_v27 = vld [vmem:[#allocation19 + $0x778] sm:$0xff] }
 0x610   :  { %3516 = vmatprep.subr.mxu1 %v2947_v19  ;;  %3545 = vmatprep.subr.mxu0 %v3031_v14  ;;  %v3150_v25 = vld [vmem:[#allocation19 + $0x8f0] sm:$0xff]  ;;  %v3147_v28 = vld [vmem:[#allocation19 + $0x8d8] sm:$0xff] }
 0x611   :  { %3517 = vmatpush2.msra.mxu1 %v2946_v16  ;;  %3546 = vmatpush1.msra.mxu0 %v3030_v18  ;;  %v3102_v19 = vld [vmem:[#allocation19 + $0x770] sm:$0xff]  ;;  %v3099_v16 = vld [vmem:[#allocation19 + $0x758] sm:$0xff] }
 0x612   :  { %3518 = vmatprep.subr.mxu1 %v2943_v23  ;;  %3547 = vmatprep.subr.mxu0 %v3027_v30  ;;  %v3146_v14 = vld [vmem:[#allocation19 + $0x8d0] sm:$0xff]  ;;  %v3143_v18 = vld [vmem:[#allocation19 + $0x8b8] sm:$0xff] }
 0x613   :  { %3519 = vmatpush2.msra.mxu1 %v2942_v39  ;;  %3548 = vmatpush1.msra.mxu0 %v3026_v44  ;;  %v3098_v23 = vld [vmem:[#allocation19 + $0x750] sm:$0xff]  ;;  %v3095_v39 = vld [vmem:[#allocation19 + $0x738] sm:$0xff] }
 0x614   :  { %3520 = vmatprep.subr.mxu1 %v2939_v46  ;;  %3549 = vmatprep.subr.mxu0 %v3023_v52  ;;  %v3142_v30 = vld [vmem:[#allocation19 + $0x8b0] sm:$0xff]  ;;  %v3139_v44 = vld [vmem:[#allocation19 + $0x898] sm:$0xff] }
 0x615   :  { %3521 = vmatpush2.msra.mxu1 %v2938_v63  ;;  %3550 = vmatpush1.msra.mxu0 %v3022_v60  ;;  %v3094_v46 = vld [vmem:[#allocation19 + $0x730] sm:$0xff]  ;;  %v3091_v63 = vld [vmem:[#allocation19 + $0x718] sm:$0xff] }
 0x616   :  { %3522 = vmatprep.subr.mxu1 %v2935_v2  ;;  %3551 = vmatprep.subr.mxu0 %v3019_v0  ;;  %v3138_v52 = vld [vmem:[#allocation19 + $0x890] sm:$0xff]  ;;  %v3135_v60 = vld [vmem:[#allocation19 + $0x878] sm:$0xff] }
 0x617   :  { %3523 = vmatpush2.msra.mxu1 %v2934_v43  ;;  %3552 = vmatpush1.msra.mxu0 %v3018_v45  ;;  %v3090_v2 = vld [vmem:[#allocation19 + $0x710] sm:$0xff]  ;;  %v3087_v43 = vld [vmem:[#allocation19 + $0x6f8] sm:$0xff] }
 0x618   :  { %3524 = vmatprep.subr.mxu1 %v2931_v47  ;;  %3553 = vmatprep.subr.mxu0 %v3015_v51  ;;  %v3134_v0 = vld [vmem:[#allocation19 + $0x870] sm:$0xff]  ;;  %v3131_v45 = vld [vmem:[#allocation19 + $0x858] sm:$0xff] }
 0x619   :  { %3525 = vmatpush2.msra.mxu1 %v2930_v53  ;;  %3554 = vmatpush1.msra.mxu0 %v3014_v49  ;;  %v3086_v47 = vld [vmem:[#allocation19 + $0x6f0] sm:$0xff]  ;;  %v3083_v53 = vld [vmem:[#allocation19 + $0x6d8] sm:$0xff] }
 0x61a   :  { %3527 = vmatmul.mubr.f32.vlgmr.msra.gmra.mxu1 %v2858_v21  ;;  %3555 = vmatprep.subr.mxu0 %v3011_v55  ;;  %v3171_v21 = vld [vmem:[#allocation19 + $0x998] sm:$0xff]  ;;  %v3130_v51 = vld [vmem:[#allocation19 + $0x850] sm:$0xff] }
 0x61b   :  { %3604 = vmatprep.subr.mxu1 %v3183_v57  ;;  %3556 = vmatpush1.msra.mxu0 %v3010_v62  ;;  %v3127_v49 = vld [vmem:[#allocation19 + $0x838] sm:$0xff]  ;;  %v3082_v55 = vld [vmem:[#allocation19 + $0x6d0] sm:$0xff] }
 0x61c   :  { %3605 = vmatpush1.msra.mxu1 %v3182_v1  ;;  %4120 = vmatprep.mubr.msk.f32.mxu1 %vm1875_vm5, %v2863_v29  ;;  %v2994_v29 = vld [vmem:[#allocation19 + $0x410] sm:$0xff]  ;;  %v3079_v62 = vld [vmem:[#allocation19 + $0x6b8] sm:$0xff] }
 0x61d   :  { %3557 = vmatprep.subr.mxu0 %v3007_v12  ;;  %3606 = vmatprep.subr.mxu1 %v3179_v59  ;;  %v3126_v57 = vld [vmem:[#allocation19 + $0x830] sm:$0xff]  ;;  %v3123_v1 = vld [vmem:[#allocation19 + $0x818] sm:$0xff] }
 0x61e   :  { %3558 = vmatpush1.msra.mxu0 %v3006_v15  ;;  %3607 = vmatpush1.msra.mxu1 %v3178_v24  ;;  %v3078_v12 = vld [vmem:[#allocation19 + $0x6b0] sm:$0xff]  ;;  %v3075_v15 = vld [vmem:[#allocation19 + $0x698] sm:$0xff] }
 0x61f   :  { %3559 = vmatprep.subr.mxu0 %v3003_v10  ;;  %3608 = vmatprep.subr.mxu1 %v3175_v13  ;;  %v3122_v59 = vld [vmem:[#allocation19 + $0x810] sm:$0xff]  ;;  %v3223_v24 = vld [vmem:[#allocation19 + $0xb38] sm:$0xff] }
 0x620   :  { %3560 = vmatpush1.msra.mxu0 %v3002_v26  ;;  %3609 = vmatpush1.msra.mxu1 %v3174_v6  ;;  %v3074_v10 = vld [vmem:[#allocation19 + $0x690] sm:$0xff]  ;;  %v3071_v26 = vld [vmem:[#allocation19 + $0x678] sm:$0xff] }
 0x621   :  { %3561 = vmatprep.subr.mxu0 %v2999_v4  ;;  %3610 = vmatprep.subr.mxu1 %v3171_v21  ;;  %v3222_v13 = vld [vmem:[#allocation19 + $0xb30] sm:$0xff]  ;;  %v3219_v6 = vld [vmem:[#allocation19 + $0xb18] sm:$0xff] }
 0x622   :  { %3562 = vmatpush1.msra.mxu0 %v2998_v8  ;;  %3611 = vmatpush1.msra.mxu1 %v3170_v32  ;;  %v3070_v4 = vld [vmem:[#allocation19 + $0x670] sm:$0xff]  ;;  %v3067_v8 = vld [vmem:[#allocation19 + $0x658] sm:$0xff] }
 0x623   :  { %3563 = vmatprep.subr.mxu0 %v2995_v33  ;;  %3612 = vmatprep.subr.mxu1 %v3167_v48  ;;  %v3218_v21 = vld [vmem:[#allocation19 + $0xb10] sm:$0xff]  ;;  %v3215_v32 = vld [vmem:[#allocation19 + $0xaf8] sm:$0xff] }
 0x624   :  { %3564 = vmatpush1.msra.mxu0 %v2994_v29  ;;  %3613 = vmatpush1.msra.mxu1 %v3166_v34  ;;  %v3066_v33 = vld [vmem:[#allocation19 + $0x650] sm:$0xff]  ;;  %v3063_v29 = vld [vmem:[#allocation19 + $0x638] sm:$0xff] }
 0x625   :  { %3565 = vmatprep.subr.mxu0 %v3119_v3  ;;  %3614 = vmatprep.subr.mxu1 %v3163_v35  ;;  %v3214_v48 = vld [vmem:[#allocation19 + $0xaf0] sm:$0xff]  ;;  %v3211_v34 = vld [vmem:[#allocation19 + $0xad8] sm:$0xff] }
 0x626   :  { %3566 = vmatpush2.msra.mxu0 %v3118_v36  ;;  %3615 = vmatpush1.msra.mxu1 %v3162_v37  ;;  %v3062_v3 = vld [vmem:[#allocation19 + $0x630] sm:$0xff]  ;;  %v3059_v36 = vld [vmem:[#allocation19 + $0x618] sm:$0xff] }
 0x627   :  { %3567 = vmatprep.subr.mxu0 %v3115_v38  ;;  %3616 = vmatprep.subr.mxu1 %v3159_v41  ;;  %v3210_v35 = vld [vmem:[#allocation19 + $0xad0] sm:$0xff]  ;;  %v3207_v37 = vld [vmem:[#allocation19 + $0xab8] sm:$0xff] }
 0x628   :  { %3568 = vmatpush2.msra.mxu0 %v3114_v50  ;;  %3617 = vmatpush1.msra.mxu1 %v3158_v54  ;;  %v3058_v38 = vld [vmem:[#allocation19 + $0x610] sm:$0xff]  ;;  %v3203_v50 = vld [vmem:[#allocation19 + $0xa98] sm:$0xff] }
 0x629   :  { %3569 = vmatprep.subr.mxu0 %v3111_v56  ;;  %3618 = vmatprep.subr.mxu1 %v3155_v61  ;;  %v3206_v41 = vld [vmem:[#allocation19 + $0xab0] sm:$0xff]  ;;  %v3710_v56 = vld [vmem:[#allocation22 + $0xf8] sm:$0xff] }
 0x62a   :  { %3570 = vmatpush2.msra.mxu0 %v3110_v5  ;;  %3619 = vmatpush1.msra.mxu1 %v3154_v9  ;;  %v3202_v54 = vld [vmem:[#allocation19 + $0xa90] sm:$0xff]  ;;  %v3199_v61 = vld [vmem:[#allocation19 + $0xa78] sm:$0xff] }
 0x62b   :  { %3571 = vmatprep.subr.mxu0 %v3107_v40  ;;  %3620 = vmatprep.subr.mxu1 %v3151_v20  ;;  %v3709_v5 = vld [vmem:[#allocation22 + $0xf0] sm:$0xff]  ;;  %v3708_v40 = vld [vmem:[#allocation22 + $0xe8] sm:$0xff] }
 0x62c   :  { %3572 = vmatpush2.msra.mxu0 %v3106_v17  ;;  %3621 = vmatpush1.msra.mxu1 %v3150_v25  ;;  %v3198_v9 = vld [vmem:[#allocation19 + $0xa70] sm:$0xff]  ;;  %v3195_v20 = vld [vmem:[#allocation19 + $0xa58] sm:$0xff]  ;;  %v3707_v17 = vld [vmem:[#allocation22 + $0xe0] sm:$0xff] }
 0x62d   :  { %3573 = vmatprep.subr.mxu0 %v3103_v27  ;;  %3622 = vmatprep.subr.mxu1 %v3147_v28  ;;  %v3194_v25 = vld [vmem:[#allocation19 + $0xa50] sm:$0xff]  ;;  %v3706_v27 = vld [vmem:[#allocation22 + $0xd8] sm:$0xff] }
 0x62e   :  { %3574 = vmatpush2.msra.mxu0 %v3102_v19  ;;  %3623 = vmatpush1.msra.mxu1 %v3146_v14  ;;  %v3191_v28 = vld [vmem:[#allocation19 + $0xa38] sm:$0xff]  ;;  %v3190_v14 = vld [vmem:[#allocation19 + $0xa30] sm:$0xff] }
 0x62f   :  { %3575 = vmatprep.subr.mxu0 %v3099_v16  ;;  %3624 = vmatprep.subr.mxu1 %v3143_v18  ;;  %v3705_v19 = vld [vmem:[#allocation22 + $0xd0] sm:$0xff]  ;;  %v3703_v16 = vld [vmem:[#allocation22 + $0xc0] sm:$0xff] }
 0x630   :  { %3576 = vmatpush2.msra.mxu0 %v3098_v23  ;;  %3625 = vmatpush1.msra.mxu1 %v3142_v30  ;;  %v3186_v18 = vld [vmem:[#allocation19 + $0xa10] sm:$0xff]  ;;  %v3702_v23 = vld [vmem:[#allocation22 + $0xb8] sm:$0xff] }
 0x631   :  { %3577 = vmatprep.subr.mxu0 %v3095_v39  ;;  %3626 = vmatprep.subr.mxu1 %v3139_v44  ;;  %v3701_v30 = vld [vmem:[#allocation22 + $0xb0] sm:$0xff]  ;;  %v3700_v39 = vld [vmem:[#allocation22 + $0xa8] sm:$0xff]  ;;  %v3774_v44 = vld [vmem:[#allocation22 + $0x2f8] sm:$0xff] }
 0x632   :  { %3578 = vmatpush2.msra.mxu0 %v3094_v46  ;;  %3627 = vmatpush1.msra.mxu1 %v3138_v52  ;;  %v3699_v46 = vld [vmem:[#allocation22 + $0xa0] sm:$0xff]  ;;  %v3773_v52 = vld [vmem:[#allocation22 + $0x2f0] sm:$0xff] }
 0x633   :  { %3579 = vmatprep.subr.mxu0 %v3091_v63  ;;  %3628 = vmatprep.subr.mxu1 %v3135_v60  ;;  %v3698_v63 = vld [vmem:[#allocation22 + $0x98] sm:$0xff]  ;;  %v3772_v60 = vld [vmem:[#allocation22 + $0x2e8] sm:$0xff] }
 0x634   :  { %3580 = vmatpush2.msra.mxu0 %v3090_v2  ;;  %3629 = vmatpush1.msra.mxu1 %v3134_v0  ;;  %v3697_v2 = vld [vmem:[#allocation22 + $0x90] sm:$0xff]  ;;  %v3771_v0 = vld [vmem:[#allocation22 + $0x2e0] sm:$0xff] }
 0x635   :  { %3581 = vmatprep.subr.mxu0 %v3087_v43  ;;  %3630 = vmatprep.subr.mxu1 %v3131_v45  ;;  %v3696_v43 = vld [vmem:[#allocation22 + $0x88] sm:$0xff]  ;;  %v3695_v45 = vld [vmem:[#allocation22 + $0x80] sm:$0xff] }
 0x636   :  { %3582 = vmatpush2.msra.mxu0 %v3086_v47  ;;  %3631 = vmatpush1.msra.mxu1 %v3130_v51  ;;  %v3694_v47 = vld [vmem:[#allocation22 + $0x78] sm:$0xff]  ;;  %v3693_v51 = vld [vmem:[#allocation22 + $0x70] sm:$0xff] }
 0x637   :  { %3583 = vmatprep.subr.mxu0 %v3083_v53  ;;  %3632 = vmatprep.subr.mxu1 %v3127_v49  ;;  %v3690_v53 = vld [vmem:[#allocation22 + $0x58] sm:$0xff]  ;;  %v3689_v49 = vld [vmem:[#allocation22 + $0x50] sm:$0xff] }
 0x638   :  { %3584 = vmatpush2.msra.mxu0 %v3082_v55  ;;  %3633 = vmatpush1.msra.mxu1 %v3126_v57  ;;  %v3688_v55 = vld [vmem:[#allocation22 + $0x48] sm:$0xff]  ;;  %v3687_v57 = vld [vmem:[#allocation22 + $0x40] sm:$0xff] }
 0x639   :  { %3585 = vmatprep.subr.mxu0 %v3079_v62  ;;  %3634 = vmatprep.subr.mxu1 %v3123_v1  ;;  %v3770_v62 = vld [vmem:[#allocation22 + $0x2d8] sm:$0xff] }
 0x63a   :  { %3586 = vmatpush2.msra.mxu0 %v3078_v12  ;;  %3635 = vmatpush1.msra.mxu1 %v3122_v59  ;;  %v3686_v1 = vld [vmem:[#allocation22 + $0x38] sm:$0xff]  ;;  %v3769_v12 = vld [vmem:[#allocation22 + $0x2d0] sm:$0xff] }
 0x63b   :  { %3587 = vmatprep.subr.mxu0 %v3075_v15  ;;  %3648 = vmatprep.subr.mxu1 %v3223_v24  ;;  %v3685_v59 = vld [vmem:[#allocation22 + $0x30] sm:$0xff]  ;;  %v3684_v15 = vld [vmem:[#allocation22 + $0x28] sm:$0xff] }
 0x63c   :  { %3588 = vmatpush2.msra.mxu0 %v3074_v10  ;;  %3649 = vmatpush2.msra.mxu1 %v3222_v13  ;;  %v3768_v24 = vld [vmem:[#allocation22 + $0x2c8] sm:$0xff]  ;;  %v3767_v10 = vld [vmem:[#allocation22 + $0x2c0] sm:$0xff]  ;;  %v3766_v13 = vld [vmem:[#allocation22 + $0x2b8] sm:$0xff] }
 0x63d   :  { %3589 = vmatprep.subr.mxu0 %v3071_v26  ;;  %3650 = vmatprep.subr.mxu1 %v3219_v6  ;;  %v3765_v26 = vld [vmem:[#allocation22 + $0x2b0] sm:$0xff]  ;;  %v3683_v6 = vld [vmem:[#allocation22 + $0x20] sm:$0xff] }
 0x63e   :  { %3590 = vmatpush2.msra.mxu0 %v3070_v4  ;;  %3651 = vmatpush2.msra.mxu1 %v3218_v21  ;;  %v3764_v4 = vld [vmem:[#allocation22 + $0x2a8] sm:$0xff]  ;;  %v3682_v21 = vld [vmem:[#allocation22 + $0x18] sm:$0xff] }
 0x63f   :  { %3591 = vmatprep.subr.mxu0 %v3067_v8  ;;  %3652 = vmatprep.subr.mxu1 %v3215_v32  ;;  %v3763_v8 = vld [vmem:[#allocation22 + $0x2a0] sm:$0xff]  ;;  %v3681_v32 = vld [vmem:[#allocation22 + $0x10] sm:$0xff] }
 0x640   :  { %3592 = vmatpush2.msra.mxu0 %v3066_v33  ;;  %3653 = vmatpush2.msra.mxu1 %v3214_v48  ;;  %v3762_v33 = vld [vmem:[#allocation22 + $0x298] sm:$0xff]  ;;  %v3680_v48 = vld [vmem:[#allocation22 + $0x8] sm:$0xff] }
 0x641   :  { %3593 = vmatprep.subr.mxu0 %v3063_v29  ;;  %3654 = vmatprep.subr.mxu1 %v3211_v34  ;;  %v3761_v29 = vld [vmem:[#allocation22 + $0x290] sm:$0xff]  ;;  %v3679_v34 = vld [vmem:[#allocation22] sm:$0xff] }
 0x642   :  { %3594 = vmatpush2.msra.mxu0 %v3062_v3  ;;  %3655 = vmatpush2.msra.mxu1 %v3210_v35  ;;  %v3760_v3 = vld [vmem:[#allocation22 + $0x288] sm:$0xff]  ;;  %v3742_v35 = vld [vmem:[#allocation22 + $0x1f8] sm:$0xff] }
 0x643   :  { %3595 = vmatprep.subr.mxu0 %v3059_v36  ;;  %3656 = vmatprep.subr.mxu1 %v3207_v37  ;;  %v3759_v36 = vld [vmem:[#allocation22 + $0x280] sm:$0xff]  ;;  %v3741_v37 = vld [vmem:[#allocation22 + $0x1f0] sm:$0xff] }
 0x644   :  { %3596 = vmatpush2.msra.mxu0 %v3058_v38  ;;  %3657 = vmatpush2.msra.mxu1 %v3206_v41  ;;  %v3758_v38 = vld [vmem:[#allocation22 + $0x278] sm:$0xff]  ;;  %v3740_v41 = vld [vmem:[#allocation22 + $0x1e8] sm:$0xff] }
 0x645   :  { %3598 = vmatmul.mubr.f32.vlgmr.msra.gmra.mxu0 %v2860_v22  ;;  %3658 = vmatprep.subr.mxu1 %v3203_v50  ;;  %v3187_v22 = vld [vmem:[#allocation19 + $0xa18] sm:$0xff] }
 0x646   :  { %3659 = vmatpush2.msra.mxu1 %v3202_v54  ;;  %3819 = vmatprep.subr.mxu0 %v3710_v56  ;;  %v3757_v50 = vld [vmem:[#allocation22 + $0x270] sm:$0xff]  ;;  %v3739_v54 = vld [vmem:[#allocation22 + $0x1e0] sm:$0xff]  ;;  %v3756_v56 = vld [vmem:[#allocation22 + $0x268] sm:$0xff] }
 0x647   :  { %3660 = vmatprep.subr.mxu1 %v3199_v61  ;;  %3820 = vmatpush1.msra.mxu0 %v3709_v5  ;;  %v3738_v61 = vld [vmem:[#allocation22 + $0x1d8] sm:$0xff]  ;;  %v3755_v5 = vld [vmem:[#allocation22 + $0x260] sm:$0xff] }
 0x648   :  { %3661 = vmatpush2.msra.mxu1 %v3198_v9  ;;  %3821 = vmatprep.subr.mxu0 %v3708_v40  ;;  %v3737_v9 = vld [vmem:[#allocation22 + $0x1d0] sm:$0xff]  ;;  %v3754_v40 = vld [vmem:[#allocation22 + $0x258] sm:$0xff] }
 0x649   :  { %3662 = vmatprep.subr.mxu1 %v3195_v20  ;;  %3822 = vmatpush1.msra.mxu0 %v3707_v17  ;;  %v3736_v20 = vld [vmem:[#allocation22 + $0x1c8] sm:$0xff]  ;;  %v3753_v17 = vld [vmem:[#allocation22 + $0x250] sm:$0xff] }
 0x64a   :  { %3663 = vmatpush2.msra.mxu1 %v3194_v25  ;;  %3823 = vmatprep.subr.mxu0 %v3706_v27  ;;  %v3735_v25 = vld [vmem:[#allocation22 + $0x1c0] sm:$0xff]  ;;  %v3752_v27 = vld [vmem:[#allocation22 + $0x248] sm:$0xff] }
 0x64b   :  { %3664 = vmatprep.subr.mxu1 %v3191_v28  ;;  %3824 = vmatpush1.msra.mxu0 %v3705_v19  ;;  %v3734_v28 = vld [vmem:[#allocation22 + $0x1b8] sm:$0xff]  ;;  %v3751_v19 = vld [vmem:[#allocation22 + $0x240] sm:$0xff] }
 0x64c   :  { %3665 = vmatpush2.msra.mxu1 %v3190_v14  ;;  %3825 = vmatprep.subr.mxu0 %v3704_v11  ;;  %v3733_v14 = vld [vmem:[#allocation22 + $0x1b0] sm:$0xff]  ;;  %v3750_v11 = vld [vmem:[#allocation22 + $0x238] sm:$0xff] }
 0x64d   :  { %3666 = vmatprep.subr.mxu1 %v3187_v22  ;;  %3826 = vmatpush1.msra.mxu0 %v3703_v16  ;;  %v3732_v22 = vld [vmem:[#allocation22 + $0x1a8] sm:$0xff]  ;;  %v3749_v16 = vld [vmem:[#allocation22 + $0x230] sm:$0xff] }
 0x64e   :  { %3667 = vmatpush2.msra.mxu1 %v3186_v18  ;;  %3827 = vmatprep.subr.mxu0 %v3702_v23  ;;  %v3731_v18 = vld [vmem:[#allocation22 + $0x1a0] sm:$0xff]  ;;  %v3748_v23 = vld [vmem:[#allocation22 + $0x228] sm:$0xff] }
 0x64f   :  { %3669 = vmatmul.mubr.f32.vlgmr.msra.gmra.mxu1 %v2862_v31  ;;  %3828 = vmatpush1.msra.mxu0 %v3701_v30  ;;  %v3691_v31 = vld [vmem:[#allocation22 + $0x60] sm:$0xff]  ;;  %v3730_v30 = vld [vmem:[#allocation22 + $0x198] sm:$0xff] }
 0x650   :  { %3829 = vmatprep.subr.mxu0 %v3700_v39  ;;  %3890 = vmatprep.subr.mxu1 %v3774_v44  ;;  %v3747_v39 = vld [vmem:[#allocation22 + $0x220] sm:$0xff]  ;;  %v3729_v44 = vld [vmem:[#allocation22 + $0x190] sm:$0xff] }
 0x651   :  { %3830 = vmatpush1.msra.mxu0 %v3699_v46  ;;  %3891 = vmatpush1.msra.mxu1 %v3773_v52  ;;  %v3746_v46 = vld [vmem:[#allocation22 + $0x218] sm:$0xff]  ;;  %v3728_v52 = vld [vmem:[#allocation22 + $0x188] sm:$0xff] }
 0x652   :  { %3831 = vmatprep.subr.mxu0 %v3698_v63  ;;  %3892 = vmatprep.subr.mxu1 %v3772_v60  ;;  %v3745_v63 = vld [vmem:[#allocation22 + $0x210] sm:$0xff]  ;;  %v3727_v60 = vld [vmem:[#allocation22 + $0x180] sm:$0xff] }
 0x653   :  { %3832 = vmatpush1.msra.mxu0 %v3697_v2  ;;  %3893 = vmatpush1.msra.mxu1 %v3771_v0  ;;  %v3744_v2 = vld [vmem:[#allocation22 + $0x208] sm:$0xff]  ;;  %v3726_v0 = vld [vmem:[#allocation22 + $0x178] sm:$0xff] }
 0x654   :  { %3833 = vmatprep.subr.mxu0 %v3696_v43  ;;  %3894 = vmatprep.subr.mxu1 %v3770_v62  ;;  %v3743_v43 = vld [vmem:[#allocation22 + $0x200] sm:$0xff]  ;;  %v3802_v62 = vld [vmem:[#allocation22 + $0x3d8] sm:$0xff] }
 0x655   :  { %3834 = vmatpush1.msra.mxu0 %v3695_v45  ;;  %3895 = vmatpush1.msra.mxu1 %v3769_v12  ;;  %v3725_v45 = vld [vmem:[#allocation22 + $0x170] sm:$0xff] }
 0x656   :  { %3835 = vmatprep.subr.mxu0 %v3694_v47  ;;  %3896 = vmatprep.subr.mxu1 %v3768_v24  ;;  %v3806_v47 = vld [vmem:[#allocation22 + $0x3f8] sm:$0xff]  ;;  %v3801_v12 = vld [vmem:[#allocation22 + $0x3d0] sm:$0xff] }
 0x657   :  { %3836 = vmatpush1.msra.mxu0 %v3693_v51  ;;  %3897 = vmatpush1.msra.mxu1 %v3767_v10  ;;  %v3724_v51 = vld [vmem:[#allocation22 + $0x168] sm:$0xff]  ;;  %v3718_v24 = vld [vmem:[#allocation22 + $0x138] sm:$0xff]  ;;  %v3799_v10 = vld [vmem:[#allocation22 + $0x3c0] sm:$0xff] }
 0x658   :  { %3837 = vmatprep.subr.mxu0 %v3692_v7  ;;  %3898 = vmatprep.subr.mxu1 %v3766_v13  ;;  %v3805_v7 = vld [vmem:[#allocation22 + $0x3f0] sm:$0xff] }
 0x659   :  { %3838 = vmatpush1.msra.mxu0 %v3691_v31  ;;  %3899 = vmatpush1.msra.mxu1 %v3765_v26  ;;  %v3723_v31 = vld [vmem:[#allocation22 + $0x160] sm:$0xff]  ;;  %v3717_v13 = vld [vmem:[#allocation22 + $0x130] sm:$0xff]  ;;  %v3798_v26 = vld [vmem:[#allocation22 + $0x3b8] sm:$0xff] }
 0x65a   :  { %3839 = vmatprep.subr.mxu0 %v3690_v53  ;;  %3900 = vmatprep.subr.mxu1 %v3764_v4  ;;  %v3804_v53 = vld [vmem:[#allocation22 + $0x3e8] sm:$0xff]  ;;  %v3797_v4 = vld [vmem:[#allocation22 + $0x3b0] sm:$0xff] }
 0x65b   :  { %3840 = vmatpush1.msra.mxu0 %v3689_v49  ;;  %3901 = vmatpush1.msra.mxu1 %v3763_v8  ;;  %v3722_v49 = vld [vmem:[#allocation22 + $0x158] sm:$0xff]  ;;  %v3796_v8 = vld [vmem:[#allocation22 + $0x3a8] sm:$0xff] }
 0x65c   :  { %3841 = vmatprep.subr.mxu0 %v3688_v55  ;;  %3902 = vmatprep.subr.mxu1 %v3762_v33  ;;  %v3803_v55 = vld [vmem:[#allocation22 + $0x3e0] sm:$0xff] }
 0x65d   :  { %3842 = vmatpush1.msra.mxu0 %v3687_v57  ;;  %3903 = vmatpush1.msra.mxu1 %v3761_v29  ;;  %v3721_v57 = vld [vmem:[#allocation22 + $0x150] sm:$0xff]  ;;  %v3795_v33 = vld [vmem:[#allocation22 + $0x3a0] sm:$0xff]  ;;  %v3794_v29 = vld [vmem:[#allocation22 + $0x398] sm:$0xff] }
 0x65e   :  { %3843 = vmatprep.subr.mxu0 %v3686_v1  ;;  %3904 = vmatprep.subr.mxu1 %v3760_v3  ;;  %v3720_v1 = vld [vmem:[#allocation22 + $0x148] sm:$0xff]  ;;  %v3793_v3 = vld [vmem:[#allocation22 + $0x390] sm:$0xff] }
 0x65f   :  { %3844 = vmatpush1.msra.mxu0 %v3685_v59  ;;  %3905 = vmatpush1.msra.mxu1 %v3759_v36  ;;  %v3719_v59 = vld [vmem:[#allocation22 + $0x140] sm:$0xff]  ;;  %v3792_v36 = vld [vmem:[#allocation22 + $0x388] sm:$0xff] }
 0x660   :  { %3845 = vmatprep.subr.mxu0 %v3684_v15  ;;  %3906 = vmatprep.subr.mxu1 %v3758_v38  ;;  %v3800_v15 = vld [vmem:[#allocation22 + $0x3c8] sm:$0xff]  ;;  %v3790_v38 = vld [vmem:[#allocation22 + $0x378] sm:$0xff] }
 0x661   :  { %3846 = vmatpush1.msra.mxu0 %v3683_v6  ;;  %3907 = vmatpush1.msra.mxu1 %v3757_v50  ;;  %v3716_v6 = vld [vmem:[#allocation22 + $0x128] sm:$0xff] }
 0x662   :  { %3847 = vmatprep.subr.mxu0 %v3682_v21  ;;  %3908 = vmatprep.subr.mxu1 %v3756_v56  ;;  %v3715_v21 = vld [vmem:[#allocation22 + $0x120] sm:$0xff]  ;;  %v3788_v50 = vld [vmem:[#allocation22 + $0x368] sm:$0xff]  ;;  %v3786_v56 = vld [vmem:[#allocation22 + $0x358] sm:$0xff] }
 0x663   :  { %3848 = vmatpush1.msra.mxu0 %v3681_v32  ;;  %3909 = vmatpush1.msra.mxu1 %v3755_v5  ;;  %v3714_v32 = vld [vmem:[#allocation22 + $0x118] sm:$0xff]  ;;  %v3784_v5 = vld [vmem:[#allocation22 + $0x348] sm:$0xff] }
 0x664   :  { %3849 = vmatprep.subr.mxu0 %v3680_v48  ;;  %3910 = vmatprep.subr.mxu1 %v3754_v40  ;;  %v3713_v48 = vld [vmem:[#allocation22 + $0x110] sm:$0xff]  ;;  %v3782_v40 = vld [vmem:[#allocation22 + $0x338] sm:$0xff] }
 0x665   :  { %3850 = vmatpush1.msra.mxu0 %v3679_v34  ;;  %3911 = vmatpush1.msra.mxu1 %v3753_v17  ;;  %v3712_v34 = vld [vmem:[#allocation22 + $0x108] sm:$0xff] }
 0x666   :  { %3851 = vmatprep.subr.mxu0 %v3742_v35  ;;  %3912 = vmatprep.subr.mxu1 %v3752_v27  ;;  %v3711_v35 = vld [vmem:[#allocation22 + $0x100] sm:$0xff]  ;;  %v3780_v17 = vld [vmem:[#allocation22 + $0x328] sm:$0xff]  ;;  %v3778_v27 = vld [vmem:[#allocation22 + $0x318] sm:$0xff] }
 0x667   :  { %3852 = vmatpush2.msra.mxu0 %v3741_v37  ;;  %3913 = vmatpush1.msra.mxu1 %v3751_v19  ;;  %v3791_v37 = vld [vmem:[#allocation22 + $0x380] sm:$0xff]  ;;  %v3776_v19 = vld [vmem:[#allocation22 + $0x308] sm:$0xff] }
 0x668   :  { %3853 = vmatprep.subr.mxu0 %v3740_v41  ;;  %3914 = vmatprep.subr.mxu1 %v3750_v11  ;;  %v3789_v41 = vld [vmem:[#allocation22 + $0x370] sm:$0xff]  ;;  %v3224_v11 = vld [vmem:[#allocation20] sm:$0xf] }
 0x669   :  { %3854 = vmatpush2.msra.mxu0 %v3739_v54  ;;  %3915 = vmatpush1.msra.mxu1 %v3749_v16  ;;  %v3787_v54 = vld [vmem:[#allocation22 + $0x360] sm:$0xff]  ;;  %v3229_v16 = vrot.slane %v3224_v11, %v6047_v42 }
 0x66a   :  { %3855 = vmatprep.subr.mxu0 %v3738_v61  ;;  %3916 = vmatprep.subr.mxu1 %v3748_v23  ;;  %v3785_v61 = vld [vmem:[#allocation22 + $0x350] sm:$0xff] }
 0x66b   :  { %3856 = vmatpush2.msra.mxu0 %v3737_v9  ;;  %3917 = vmatpush1.msra.mxu1 %v3747_v39  ;;  %v3783_v9 = vld [vmem:[#allocation22 + $0x340] sm:$0xff]  ;;  %v6048_v23 = vld [vmem:[#allocation38_spill] sm:$0xff] }
 0x66c   :  { %3857 = vmatprep.subr.mxu0 %v3736_v20  ;;  %3918 = vmatprep.subr.mxu1 %v3746_v46  ;;  %v3781_v20 = vld [vmem:[#allocation22 + $0x330] sm:$0xff] }
 0x66d   :  { %3858 = vmatpush2.msra.mxu0 %v3735_v25  ;;  %3919 = vmatpush1.msra.mxu1 %v3745_v63  ;;  %v3779_v25 = vld [vmem:[#allocation22 + $0x320] sm:$0xff] }
 0x66e   :  { %3859 = vmatprep.subr.mxu0 %v3734_v28  ;;  %3920 = vmatprep.subr.mxu1 %v3744_v2  ;;  %v3777_v28 = vld [vmem:[#allocation22 + $0x310] sm:$0xff] }
 0x66f   :  { %3860 = vmatpush2.msra.mxu0 %v3733_v14  ;;  %3921 = vmatpush1.msra.mxu1 %v3743_v43  ;;  %v3775_v14 = vld [vmem:[#allocation22 + $0x300] sm:$0xff] }
 0x670   :  { %3861 = vmatprep.subr.mxu0 %v3732_v22  ;;  %3922 = vmatprep.subr.mxu1 %v3806_v47 }
 0x671   :  { %3862 = vmatpush2.msra.mxu0 %v3731_v18  ;;  %3923 = vmatpush2.msra.mxu1 %v3805_v7 }
 0x672   :  { %3863 = vmatprep.subr.mxu0 %v3730_v30  ;;  %3924 = vmatprep.subr.mxu1 %v3804_v53  ;;  %v3233_v30 = vrot.slane %v3224_v11, %v6048_v23 }
 0x673   :  { %3864 = vmatpush2.msra.mxu0 %v3729_v44  ;;  %3925 = vmatpush2.msra.mxu1 %v3803_v55 }
 0x674   :  { %3865 = vmatprep.subr.mxu0 %v3728_v52  ;;  %3926 = vmatprep.subr.mxu1 %v3802_v62 }
 0x675   :  { %3866 = vmatpush2.msra.mxu0 %v3727_v60  ;;  %3927 = vmatpush2.msra.mxu1 %v3801_v12 }
 0x676   :  { %3867 = vmatprep.subr.mxu0 %v3726_v0  ;;  %3928 = vmatprep.subr.mxu1 %v3800_v15  ;;  %v3978_v15 = vld [vmem:[%s5886_s15 + $0x78] sm:$0xff] }
 0x677   :  { %3868 = vmatpush2.msra.mxu0 %v3725_v45  ;;  %3929 = vmatpush2.msra.mxu1 %v3799_v10 }
 0x678   :  { %3869 = vmatprep.subr.mxu0 %v3724_v51  ;;  %3930 = vmatprep.subr.mxu1 %v3798_v26 }
 0x679   :  { %3870 = vmatpush2.msra.mxu0 %v3723_v31  ;;  %3931 = vmatpush2.msra.mxu1 %v3797_v4  ;;  %v3237_v31 = vrot.slane %v3224_v11, %v4864_v58 }
 0x67a   :  { %3871 = vmatprep.subr.mxu0 %v3722_v49  ;;  %3932 = vmatprep.subr.mxu1 %v3796_v8  ;;  %v6049_v49 = vld [vmem:[#allocation39_spill] sm:$0xff] }
 0x67b   :  { %3872 = vmatpush2.msra.mxu0 %v3721_v57  ;;  %3933 = vmatpush2.msra.mxu1 %v3795_v33  ;;  %v3241_v55 = vrot.slane %v3224_v11, %v6049_v49  ;;  %v3976_v8 = vld [vmem:[%s5886_s15 + $0x68] sm:$0xff]  ;;  %v3991_v33 = vld [vmem:[%s5886_s15 + $0xe0] sm:$0xff] }
 0x67c   :  { %3873 = vmatprep.subr.mxu0 %v3720_v1  ;;  %3934 = vmatprep.subr.mxu1 %v3794_v29  ;;  %v3980_v11 = vld [vmem:[%s5886_s15 + $0x88] sm:$0xff] }
 0x67d   :  { %3874 = vmatpush2.msra.mxu0 %v3719_v59  ;;  %3935 = vmatpush2.msra.mxu1 %v3793_v3  ;;  %v3994_v59 = vld [vmem:[%s5886_s15 + $0xf8] sm:$0xff] }
 0x67e   :  { %3875 = vmatprep.subr.mxu0 %v3718_v24  ;;  %3936 = vmatprep.subr.mxu1 %v3792_v36  ;;  %v3993_v24 = vld [vmem:[%s5886_s15 + $0xf0] sm:$0xff] }
 0x67f   :  { %3876 = vmatpush2.msra.mxu0 %v3717_v13  ;;  %3937 = vmatpush2.msra.mxu1 %v3791_v37  ;;  %v3977_v13 = vld [vmem:[%s5886_s15 + $0x70] sm:$0xff] }
 0x680   :  { %3877 = vmatprep.subr.mxu0 %v3716_v6  ;;  %3938 = vmatprep.subr.mxu1 %v3790_v38  ;;  %v3992_v6 = vld [vmem:[%s5886_s15 + $0xe8] sm:$0xff]  ;;  %v3989_v36 = vld [vmem:[%s5886_s15 + $0xd0] sm:$0xff] }
 0x681   :  { %3878 = vmatpush2.msra.mxu0 %v3715_v21  ;;  %3939 = vmatpush2.msra.mxu1 %v3789_v41  ;;  %v3973_v37 = vld [vmem:[%s5886_s15 + $0x50] sm:$0xff]  ;;  %v3988_v38 = vld [vmem:[%s5886_s15 + $0xc8] sm:$0xff] }
 0x682   :  { %3879 = vmatprep.subr.mxu0 %v3714_v32  ;;  %3940 = vmatprep.subr.mxu1 %v3788_v50  ;;  %v3972_v41 = vld [vmem:[%s5886_s15 + $0x48] sm:$0xff]  ;;  %v3987_v50 = vld [vmem:[%s5886_s15 + $0xc0] sm:$0xff] }
 0x683   :  { %3880 = vmatpush2.msra.mxu0 %v3713_v48  ;;  %3941 = vmatpush2.msra.mxu1 %v3787_v54  ;;  %v3975_v48 = vld [vmem:[%s5886_s15 + $0x60] sm:$0xff] }
 0x684   :  { %3881 = vmatprep.subr.mxu0 %v3712_v34  ;;  %3942 = vmatprep.subr.mxu1 %v3786_v56  ;;  %v3990_v34 = vld [vmem:[%s5886_s15 + $0xd8] sm:$0xff]  ;;  %v3971_v54 = vld [vmem:[%s5886_s15 + $0x40] sm:$0xff] }
 0x685   :  { %3882 = vmatpush2.msra.mxu0 %v3711_v35  ;;  %3943 = vmatpush2.msra.mxu1 %v3785_v61  ;;  %v3974_v35 = vld [vmem:[%s5886_s15 + $0x58] sm:$0xff] }
 0x686   :  { %3944 = vmatprep.subr.mxu1 %v3784_v5  ;;  %4262 = vmatprep.subr.mxu0 %v3994_v59  ;;  %v3986_v56 = vld [vmem:[%s5886_s15 + $0xb8] sm:$0xff]  ;;  %v3985_v5 = vld [vmem:[%s5886_s15 + $0xb0] sm:$0xff] }
 0x687   :  { %3945 = vmatpush2.msra.mxu1 %v3783_v9  ;;  %v3970_v61 = vld [vmem:[%s5886_s15 + $0x38] sm:$0xff]  ;;  %v3969_v9 = vld [vmem:[%s5886_s15 + $0x30] sm:$0xff] }
 0x688   :  { %3946 = vmatprep.subr.mxu1 %v3782_v40  ;;  %v3984_v40 = vld [vmem:[%s5886_s15 + $0xa8] sm:$0xff] }
 0x689   :  { %3947 = vmatpush2.msra.mxu1 %v3781_v20  ;;  %v3968_v20 = vld [vmem:[%s5886_s15 + $0x28] sm:$0xff] }
 0x68a   :  { %3948 = vmatprep.subr.mxu1 %v3780_v17  ;;  %v3983_v17 = vld [vmem:[%s5886_s15 + $0xa0] sm:$0xff] }
 0x68b   :  { %3949 = vmatpush2.msra.mxu1 %v3779_v25  ;;  %v3967_v25 = vld [vmem:[%s5886_s15 + $0x20] sm:$0xff] }
 0x68c   :  { %3950 = vmatprep.subr.mxu1 %v3778_v27  ;;  %v3982_v27 = vld [vmem:[%s5886_s15 + $0x98] sm:$0xff] }
 0x68d   :  { %3951 = vmatpush2.msra.mxu1 %v3777_v28  ;;  %v3966_v28 = vld [vmem:[%s5886_s15 + $0x18] sm:$0xff] }
 0x68e   :  { %3952 = vmatprep.subr.mxu1 %v3776_v19  ;;  %v3315_v22 = vpop.f32.mrf.mxu0  ;;  %v3981_v19 = vld [vmem:[%s5886_s15 + $0x90] sm:$0xff] }
 0x68f   :  { %3953 = vmatpush2.msra.mxu1 %v3775_v14  ;;  %v3316_v44 = vadd.f32 %v3315_v22, %v3229_v16  ;;  %v3965_v14 = vld [vmem:[%s5886_s15 + $0x10] sm:$0xff]  ;;  %v3964_v22 = vld [vmem:[%s5886_s15 + $0x8] sm:$0xff]  ;;  %v3979_v16 = vld [vmem:[%s5886_s15 + $0x80] sm:$0xff] }
 0x690   :  { %v3317_v39 = vpop.f32.mrf.mxu0 }
 0x691   :  { %v3318_v52 = vadd.f32 %v3317_v39, %v3233_v30  ;;  %v3807_v30 = vld [vmem:[#allocation23] sm:$0x3] }
 0x698   :  { %v3386_v18 = vpop.f32.mrf.mxu1 }
 0x699   :  { %v3387_v63 = vadd.f32 %v3386_v18, %v3316_v44  ;;  %v3963_v18 = vld [vmem:[%s5886_s15] sm:$0xff]  ;;  %v3812_v44 = vrot.slane %v3807_v30, %v6047_v42  ;;  %s4686_s15 = smov [#allocation26]  }
 0x69a   :  { %v3388_v46 = vpop.f32.mrf.mxu1  ;;  %s4080_s1 = sshll.u32 %s4686_s15, 4  ;;  %s4081_s1 = int_to_ptr.vmem [resolvable:$true] %s4080_s1 }
 0x69b   :  { %v3389_v2 = vadd.f32 %v3388_v46, %v3318_v52  ;;  %v3816_v46 = vrot.slane %v3807_v30, %v6048_v23  ;;  %s4624_s3 = scalar_lea.vmem %s4081_s1, 32  ;;  %p4629_p6 = scmp.lt.s32.totalorder %s4081_s1, %s4081_s1 }
 0x69c   :  { %p4625_p5 = scmp.ne.s32.totalorder %s4081_s1, %s4624_s3  ;;  %p4630_p7 = scmp.lt.s32.totalorder %s4624_s3, %s4624_s3 }
 0x69e   :  { %p4631_p8 = por %p4630_p7, %p4629_p6 }
 0x6a0   :  { %p4632_p9 = pnand %p4631_p8, %p4625_p5 }
 0x6c3   :  { %v3457_v60 = vpop.f32.mrf.mxu0 }
 0x6c4   :  { %v3458_v0 = vadd.f32 %v3457_v60, %v3387_v63 }
 0x6c5   :  { %v3459_v43 = vpop.f32.mrf.mxu0 }
 0x6c6   :  { %v3460_v45 = vadd.f32 %v3459_v43, %v3389_v2  ;;  %v3675_v51 = vmax.f32 %v3458_v0, 0.0 }
 0x6c8   :  { %v3676_v47 = vmax.f32 %v3460_v45, 0.0 }
 0x6ca   :  { %3883 = vmatprep.mubr.f32.mxu0 %v3676_v47 }
 0x6cb   :  { %3884 = vmatmul.mubr.f32.vlgmr.msra.gmra.mxu0 %v3675_v51 }
 0x6cc   :  { %4263 = vmatpush3.msra.mxu0 %v3978_v15 }
 0x6cd   :  { %4264 = vmatprep.subr.mxu0 %v3993_v24 }
 0x6ce   :  { %4265 = vmatpush3.msra.mxu0 %v3977_v13 }
 0x6cf   :  { %4266 = vmatprep.subr.mxu0 %v3992_v6 }
 0x6d0   :  { %4267 = vmatpush3.msra.mxu0 %v3976_v8 }
 0x6d1   :  { %4268 = vmatprep.subr.mxu0 %v3991_v33 }
 0x6d2   :  { %4269 = vmatpush3.msra.mxu0 %v3975_v48 }
 0x6d3   :  { %4270 = vmatprep.subr.mxu0 %v3990_v34 }
 0x6d4   :  { %4271 = vmatpush3.msra.mxu0 %v3974_v35 }
 0x6d5   :  { %4272 = vmatprep.subr.mxu0 %v3989_v36 }
 0x6d6   :  { %4273 = vmatpush3.msra.mxu0 %v3973_v37 }
 0x6d7   :  { %4274 = vmatprep.subr.mxu0 %v3988_v38 }
 0x6d8   :  { %4275 = vmatpush3.msra.mxu0 %v3972_v41 }
 0x6d9   :  { %4276 = vmatprep.subr.mxu0 %v3987_v50 }
 0x6da   :  { %v3528_v7 = vpop.f32.mrf.mxu1  ;;  %4277 = vmatpush3.msra.mxu0 %v3971_v54 }
 0x6db   :  { %v3529_v62 = vadd.f32 %v3528_v7, %v3237_v31  ;;  %4278 = vmatprep.subr.mxu0 %v3986_v56  ;;  %v4121_v31 = vld [vmem:[#allocation25] ss:$0 sm:$0xff] }
 0x6dc   :  { %v3530_v57 = vpop.f32.mrf.mxu1  ;;  %4279 = vmatpush3.msra.mxu0 %v3970_v61 }
 0x6dd   :  { %v3531_v12 = vadd.f32 %v3530_v57, %v3241_v55  ;;  %4280 = vmatprep.subr.mxu0 %v3985_v5 }
 0x6de   :  { %4281 = vmatpush3.msra.mxu0 %v3969_v9 }
 0x6df   :  { %4282 = vmatprep.subr.mxu0 %v3984_v40 }
 0x6e0   :  { %4283 = vmatpush3.msra.mxu0 %v3968_v20 }
 0x6e1   :  { %4284 = vmatprep.subr.mxu0 %v3983_v17 }
 0x6e2   :  { %4285 = vmatpush3.msra.mxu0 %v3967_v25 }
 0x6e3   :  { %4286 = vmatprep.subr.mxu0 %v3982_v27 }
 0x6e4   :  { %4287 = vmatpush3.msra.mxu0 %v3966_v28 }
 0x6e5   :  { %4288 = vmatprep.subr.mxu0 %v3981_v19 }
 0x6e6   :  { %4289 = vmatpush3.msra.mxu0 %v3965_v14 }
 0x6e7   :  { %4290 = vmatprep.subr.mxu0 %v3980_v11 }
 0x6e8   :  { %4291 = vmatpush3.msra.mxu0 %v3964_v22 }
 0x6e9   :  { %4292 = vmatprep.subr.mxu0 %v3979_v16 }
 0x6ea   :  { %4293 = vmatpush3.msra.mxu0 %v3963_v18 }
 0x705   :  { %v3599_v53 = vpop.f32.mrf.mxu0 }
 0x706   :  { %v3600_v58 = vadd.f32 %v3599_v53, %v3529_v62 }
 0x707   :  { %v3601_v1 = vpop.f32.mrf.mxu0 }
 0x708   :  { %v3602_v26 = vadd.f32 %v3601_v1, %v3531_v12 }
 0x70f   :  { %v3670_v10 = vpop.f32.mrf.mxu1 }
 0x710   :  { %v3671_v4 = vadd.f32 %v3670_v10, %v3600_v58 }
 0x711   :  { %v3672_v21 = vpop.f32.mrf.mxu1 }
 0x712   :  { %v3673_v32 = vadd.f32 %v3672_v21, %v3602_v26  ;;  %v3677_v3 = vmax.f32 %v3671_v4, 0.0 }
 0x714   :  { %v3678_v29 = vmax.f32 %v3673_v32, 0.0 }
 0x716   :  { %3954 = vmatprep.mubr.f32.mxu1 %v3678_v29 }
 0x717   :  { %3955 = vmatmul.mubr.f32.vlgmr.msra.gmra.mxu1 %v3677_v3 }
 0x78b   :  { %v3885_v39 = vpop.f32.mrf.mxu0 }
 0x78c   :  { %v3886_v63 = vadd.f32 %v3885_v39, %v3812_v44 }
 0x78d   :  { %v3887_v52 = vpop.f32.mrf.mxu0 }
 0x78e   :  { %v3888_v2 = vadd.f32 %v3887_v52, %v3816_v46 }
 0x7d7   :  { %v3956_v60 = vpop.f32.mrf.mxu1 }
 0x7d8   :  { %v3957_v0 = vadd.f32 %v3956_v60, %v3886_v63 }
 0x7d9   :  { %v3958_v43 = vpop.f32.mrf.mxu1 }
 0x7da   :  { %v3959_v45 = vadd.f32 %v3958_v43, %v3888_v2  ;;  %v3961_v51 = vmax.f32 %v3957_v0, 0.0 }
 0x7dc   :  { %v3962_v47 = vmax.f32 %v3959_v45, 0.0 }
 0x7de   :  { %4066 = vmatprep.mubr.f32.mxu0 %v3962_v47 }
 0x7df   :  { %4067 = vmatmul.mubr.f32.vlgmr.msra.gmra.mxu0 %v3961_v51 }
 0x89f   :  { %v4294_v7 = vpop.f32.mrf.mxu0 }
 0x8a1   :  { %v4295_v53 = vpop.f32.mrf.mxu0 }
 0x8a2   :  { %v4296_v49 = vadd.f32 %v4295_v53, %v4294_v7 }
 0x8a4   :  { %v4069_v42 = vadd.f32 %v4296_v49, %v4121_v31 }
 0x8a6   :  { %4073 = vst.msk [vmem:[#allocation26] sm:$0x3] %vm4072_vm8, %v4069_v42 }
 0x8a7   :  { %4635 = shalt.err (!%p4632_p9)
}
 0x8a8   :  { %4083 = dma.vmem_to_hbm [thread:$0]  %s4081_s1, 32, %s5888_s17, [#allocation4]  }
 0x8a9   :  { %4660 = dma.done.wait [#allocation4], 32  }
 0x8aa   :  { %4661 = vsyncadd [#allocation4], 4294967264 }
 0x8ab   :  { %4087 = vsyncpa [#allocation3], 1 }
 0x8ac   :  { %4088 = vsyncpa [#allocation6], 1 }
 0x8ad   :  { %4089 = vsyncpa [#allocation9], 1 }
 0x8ae   :  { %4090 = vsyncpa [#allocation12], 1 }
 0x8af   :  { %4091 = vsyncpa [#allocation15], 1 }
 0x8b0   :  { %4092 = vsyncpa [#allocation18], 1 }
 0x8b1   :  { %4093 = vsyncpa [#allocation21], 1 }
 0x8b2   :  { %4094 = vsyncpa [#allocation24], 1 }
 0x8b3   :  { %4095 = vsyncpa [#allocation4], 1 }

</bundles_post_ra>
